<compile_context>
chip_gen: v5e
topology: v5e:2x2
jax: 0.10.0
libtpu: 0.0.40
codegen_flags: <defaults>
</compile_context>

<pallas_src>
import functools
import math
from types import SimpleNamespace

import jax
import jax.numpy as jnp
from jax import lax
from jax.experimental import pallas as pl
from jax.experimental.pallas import tpu as pltpu

DT = 0.2
PI = math.pi
TWO_PI = 2.0 * math.pi
INV_TWO_PI = 1.0 / TWO_PI

LANES = 128               # TPU lane width
BLOCK_SUBLANES = 32       # tile for vreg pressure, not VMEM (block is only ~0.5 MiB)
NUM_FEATURES = 11         # [x, y, psi, v] + [tx, ty, tpsi] + [ox, oy, orad] + [target_v]
_PARTIAL_SLOTS = 8        # sublane slots: dist, angle, obs_inv, obs_cnt, vel, pad...


def make_options(horizon=8):
    # deterministic, in-script "Options" (no checkpoint / yaml load)
    return SimpleNamespace(
        vehicles=(1,),          # number_of_vehicles (must be 1, see layout note)
        obstacles=(1,),         # number_of_obstacles
        vehicle=SimpleNamespace(
            horizon=horizon,
            loss=SimpleNamespace(
                distance_cost=1.0,
                angle_cost=0.5,
                obstacle_cost=0.1,
                velocity_cost=0.2,
                just_last_step=False,     # TODO(synk): just_last_step=True branch not implemented
                target_velocity=False,
                triangluar_loss=False,    # TODO(synk): triangular_loss branch not implemented
            ),
        ),
    )


def _mod_two_pi(t):
    # t mod 2*pi via multiply-by-reciprocal + floor (no EUP divide).
    return t - jnp.floor(t * INV_TWO_PI) * TWO_PI


def _loss_kernel(inputs_ref, controls_ref, out_ref, *, horizon, use_obstacle_term):
    """inputs_ref:   (F, bs, 128) f32 -- vehicle index packed onto (sublane, lane)
       controls_ref: (H, 2, bs, 128)  -- (accel, steer); any float dtype, upcast here
       out_ref:      (1, 8, 128) f32  -- per-block partials, one per sublane:
                     [dist, angle, obs_inv, obs_cnt, vel, 0, 0, 0] (lane-broadcast)."""
    x, y, psi, v = inputs_ref[0], inputs_ref[1], inputs_ref[2], inputs_ref[3]
    tgt_x, tgt_y, tgt_psi = inputs_ref[4], inputs_ref[5], inputs_ref[6]
    if use_obstacle_term:
        obs_x, obs_y = inputs_ref[7], inputs_ref[8]
        # reference uses `od < r`, which is never true for r < 0; clamp so r^2 matches
        obs_r = jnp.maximum(inputs_ref[9], 0.0)
        obs_r2 = obs_r * obs_r
    zeros = jnp.zeros_like(x)

    def body(i, carry):
        if use_obstacle_term:
            x, y, psi, v, dist_acc, ang_acc, obs_num, obs_cnt = carry
        else:
            x, y, psi, v, dist_acc, ang_acc = carry

        ctrl = controls_ref[i].astype(jnp.float32)        # (2, bs, 128)
        accel, steer = ctrl[0], ctrl[1]

        # one_step_forward (kinematic bicycle-ish model)
        vdt = v * DT
        x = x + vdt * jnp.cos(psi)
        y = y + vdt * jnp.sin(psi)
        psi = psi + vdt * jnp.tan(steer) * 0.5
        # NOTE: the reference wraps psi into (-pi, pi] every step; all downstream
        # consumers (cos, sin, mod-2pi angle error) are 2*pi-periodic, so the wrap
        # is redundant and skipped here (differs from the reference only by fp rounding).
        v = 0.99 * v + accel * DT

        # distance-to-target term
        dx = x - tgt_x
        dy = y - tgt_y
        dist_acc = dist_acc + jnp.sqrt(dx * dx + dy * dy)

        # angle-to-target term
        ad1 = _mod_two_pi(psi - tgt_psi)
        ad = jnp.minimum(ad1, TWO_PI - ad1)
        ang_acc = ang_acc + ad * ad

        if use_obstacle_term:
            # obstacle proximity term (only points inside the radius contribute)
            odx = x - obs_x
            ody = y - obs_y
            od2 = odx * odx + ody * ody
            near = od2 < obs_r2
            # keep the where-select form: mask * rsqrt would give 0 * inf = NaN on
            # padded / far lanes and poison the sum.
            obs_num = obs_num + jnp.where(near, lax.rsqrt(od2), 0.0)
            obs_cnt = obs_cnt + near.astype(jnp.float32)
            return (x, y, psi, v, dist_acc, ang_acc, obs_num, obs_cnt)
        return (x, y, psi, v, dist_acc, ang_acc)

    init = (x, y, psi, v, zeros, zeros)
    if use_obstacle_term:
        init = init + (zeros, zeros)
    carry = lax.fori_loop(0, horizon, body, init, unroll=True)

    if use_obstacle_term:
        _, _, _, v, dist_acc, ang_acc, obs_num, obs_cnt = carry
    else:
        _, _, _, v, dist_acc, ang_acc = carry

    # velocity term uses the final state only; tgt_v is only needed here
    tgt_v = inputs_ref[10]
    vel = jnp.abs(v - tgt_v)

    # single cross-lane reduction per block (XLU -- not the binding unit here)
    partials = [(0, jnp.sum(dist_acc)), (1, jnp.sum(ang_acc)), (4, jnp.sum(vel))]
    if use_obstacle_term:
        partials += [(2, jnp.sum(obs_num)), (3, jnp.sum(obs_cnt))]

    row = lax.broadcasted_iota(jnp.int32, (_PARTIAL_SLOTS, LANES), 0)
    tile = jnp.zeros((_PARTIAL_SLOTS, LANES), jnp.float32)
    for slot, val in partials:
        tile = jnp.where(row == slot, val, tile)
    out_ref[0] = tile


def pack_vehicle_loss_inputs(y_hat, inputs, options, *, controls_dtype=jnp.float32):
    """Pad + repack into the lane-major layout the kernel consumes.

    Split out of vehicle_loss() so callers can hoist it out of a per-step jit, or
    skip it entirely when the producer already emits (F, N) / (H, 2, N) layouts --
    the transpose is a full extra HBM pass and dominates on memory-bound v5e.
    controls_dtype=jnp.bfloat16 is an opt-in traffic reduction (re-check tolerances).
    Zero-padded lanes contribute exactly 0 to every loss term (obstacle radius pads to 0)."""
    lo = options.vehicle.loss
    H = options.vehicle.horizon
    V = options.vehicles[0]
    assert V == 1, "cat() in the reference only broadcasts for a single vehicle"
    # TODO(synk): just_last_step=True and triangluar_loss branches not implemented.
    assert (not lo.just_last_step) and (not lo.triangluar_loss)

    N, F = inputs.shape
    assert F == NUM_FEATURES

    # --- batch packing: vehicle index -> (sublane-block, lane) -----------------
    sub = -(-N // LANES)
    sub = -(-sub // 8) * 8                  # fill whole (8, 128) tiles
    bs = min(sub, BLOCK_SUBLANES)
    num_blocks = -(-sub // bs)
    sub = num_blocks * bs
    n_pad = sub * LANES

    inputs_f = jnp.pad(inputs.astype(jnp.float32), ((0, n_pad - N), (0, 0)))
    inputs_t = inputs_f.T.reshape(F, sub, LANES)                       # (F, sub, 128)

    y3 = y_hat.reshape(N, H, V, 2)[:, :, 0, :].astype(controls_dtype)  # (N, H, 2)
    ctrl = jnp.pad(y3, ((0, n_pad - N), (0, 0), (0, 0)))               # (n_pad, H, 2)
    ctrl = jnp.transpose(ctrl, (1, 2, 0)).reshape(H, 2, sub, LANES)    # (H, 2, sub, 128)

    meta = SimpleNamespace(N=N, H=H, bs=bs, num_blocks=num_blocks)
    return inputs_t, ctrl, meta


def _in_spec(shape, index_map, depth):
    """BlockSpec with deeper multi-buffering when supported; falls back to the
    default double buffering on jax versions without BlockSpec.pipeline_mode."""
    if depth is not None and hasattr(pl, "Buffered"):
        try:
            return pl.BlockSpec(shape, index_map, pipeline_mode=pl.Buffered(depth))
        except TypeError:
            pass
    return pl.BlockSpec(shape, index_map)


def vehicle_loss_packed(inputs_t, controls, meta, options):
    lo = options.vehicle.loss
    H, N = meta.H, meta.N
    bs, num_blocks = meta.bs, meta.num_blocks
    F = inputs_t.shape[0]

    use_obstacle_term = (options.obstacles[0] > 0) and (not lo.target_velocity) \
        and (not lo.triangluar_loss)

    kernel = functools.partial(
        _loss_kernel, horizon=H, use_obstacle_term=use_obstacle_term)

    # deeper buffering only pays off once there are several blocks to pipeline
    depth = 3 if num_blocks > 2 else None
    grid_spec = pltpu.PrefetchScalarGridSpec(
        num_scalar_prefetch=0,
        grid=(num_blocks,),
        in_specs=[
            _in_spec((F, bs, LANES), lambda i: (0, i, 0), depth),
            _in_spec((H, 2, bs, LANES), lambda i: (0, 0, i, 0), depth),
        ],
        out_specs=pl.BlockSpec((1, _PARTIAL_SLOTS, LANES), lambda i: (i, 0, 0)),
    )

    partial_tiles = pl.pallas_call(
        kernel,
        out_shape=jax.ShapeDtypeStruct((num_blocks, _PARTIAL_SLOTS, LANES), jnp.float32),
        grid_spec=grid_spec,
        compiler_params=pltpu.CompilerParams(
            dimension_semantics=("parallel",)),   # blocks independent -> both v7x cores
    )(inputs_t, controls)

    # tiny cross-block reduction + cost weighting (kept in JAX so the grid axis
    # stays "parallel" and no shared accumulator is needed in the kernel)
    totals = jnp.sum(partial_tiles[:, :, 0], axis=0)          # (8,)
    dist_sum, ang_sum, obs_sum, obs_cnt, vel_sum = (
        totals[0], totals[1], totals[2], totals[3], totals[4])

    loss = dist_sum * (float(lo.distance_cost) / float(N * H))
    loss = loss + ang_sum * (float(lo.angle_cost) / float(N * H))
    if use_obstacle_term:
        obs_mean = obs_sum / jnp.maximum(obs_cnt, 1.0)
        loss = loss + jnp.where(obs_cnt > 0.0, obs_mean, 0.0) * float(lo.obstacle_cost)
    loss = loss + vel_sum * (float(lo.velocity_cost) / float(N))
    return loss


def vehicle_loss(y_hat, inputs, options, *, controls_dtype=jnp.float32):
    inputs_t, controls, meta = pack_vehicle_loss_inputs(
        y_hat, inputs, options, controls_dtype=controls_dtype)
    return vehicle_loss_packed(inputs_t, controls, meta, options)


def vehicle_loss_reference(y_hat, inputs, options):
    """Plain-JAX transcription of the torch forward (just_last_step=False path)."""
    lo = options.vehicle.loss
    H = options.vehicle.horizon
    V = options.vehicles[0]
    N = inputs.shape[0]
    y_hat = y_hat.reshape(N, H, V, 2)
    target = inputs[:, 4:7][:, None, :]
    position = inputs[:, :4][:, None, :]
    obstacle = inputs[:, 7:]
    preds = [position]
    for i in range(H):
        c = y_hat[:, i, :, :]
        x_t = position[..., 0] + position[..., 3] * jnp.cos(position[..., 2]) * DT
        y_t = position[..., 1] + position[..., 3] * jnp.sin(position[..., 2]) * DT
        psi_t = position[..., 2] + position[..., 3] * DT * jnp.tan(c[..., 1]) / 2.0
        psi_t = jnp.mod(psi_t + PI, 2 * PI) - PI
        v_t = 0.99 * position[..., 3] + c[..., 0] * DT
        position = jnp.stack((x_t, y_t, psi_t, v_t), axis=-1)
        preds.append(position)
    prediction = jnp.stack(preds, axis=0)[1:]                 # (H, N, 1, 4)
    prediction = jnp.transpose(prediction, (1, 0, 2, 3))      # (N, H, 1, 4)

    loss = jnp.mean(jnp.linalg.norm(
        prediction[..., :2] - target[:, None, :, :2], axis=-1)) * lo.distance_cost
    ad1 = jnp.mod(prediction[:, :, :, 2] - target[:, None, :, 2], 2 * PI)
    ad2 = 2 * PI - ad1
    loss += jnp.mean(jnp.minimum(ad1, ad2) ** 2) * lo.angle_cost
    if options.obstacles[0] > 0 and not lo.target_velocity and not lo.triangluar_loss:
        od = jnp.linalg.norm(prediction[..., :2] - obstacle[:, None, None, :2], axis=-1)
        mask = od < obstacle[:, None, 2][:, None, :]
        cnt = jnp.sum(mask.astype(jnp.float32))
        obs_mean = jnp.sum(jnp.where(mask, 1.0 / od, 0.0)) / jnp.maximum(cnt, 1.0)
        loss += jnp.where(cnt > 0, obs_mean, 0.0) * lo.obstacle_cost
    loss += jnp.mean(jnp.abs(prediction[:, -1, :, 3] - inputs[:, -1][:, None])) * lo.velocity_cost
    return loss


if __name__ == "__main__":
    options = make_options(horizon=8)
    N = 8          # batch of vehicles
    H = options.vehicle.horizon
    V = options.vehicles[0]
    F = NUM_FEATURES

    key = jax.random.PRNGKey(0)
    k1, k2, k3 = jax.random.split(key, 3)
    inputs = jax.random.normal(k1, (N, F), dtype=jnp.float32)
    # make obstacle radius positive so the near-obstacle branch is exercised
    inputs = inputs.at[:, 9].set(jnp.abs(jax.random.normal(k3, (N,))) + 0.5)
    y_hat = 0.5 * jax.random.normal(k2, (N, H * V * 2), dtype=jnp.float32)

    loss = jax.block_until_ready(vehicle_loss(y_hat, inputs, options))
    ref = jax.block_until_ready(vehicle_loss_reference(y_hat, inputs, options))
    assert jnp.allclose(loss, ref, rtol=1e-4, atol=1e-4), (loss, ref)

    print("KERNEL_OK")
</pallas_src>

<mosaic_0001>
module attributes {stable_mosaic.version = 11 : i64} {
  func.func @_loss_kernel(%arg0: i32, %arg1: memref<11x8x128xf32, #tpu.memory_space<vmem>>, %arg2: memref<8x2x8x128xf32, #tpu.memory_space<vmem>>, %arg3: memref<1x8x128xf32, #tpu.memory_space<vmem>>) attributes {dimension_semantics = [#tpu.dimension_semantics<parallel>], iteration_bounds = array<i64: 1>, scalar_prefetch = 0 : i64, scratch_operands = 0 : i64, tpu.core_type = #tpu.core_type<tc>, window_params = [{transform_indices = @transform_0, window_bounds = array<i64: 11, 8, 128>}, {transform_indices = @transform_1, window_bounds = array<i64: 8, 2, 8, 128>}, {transform_indices = @transform_2, window_bounds = array<i64: 1, 8, 128>}]} {
    %c0 = arith.constant 0 : index
    %c0_0 = arith.constant 0 : index
    %c0_1 = arith.constant 0 : index
    %0 = vector.load %arg1[%c0, %c0_0, %c0_1] : memref<11x8x128xf32, #tpu.memory_space<vmem>>, vector<1x8x128xf32>
    %1 = vector.shape_cast %0 : vector<1x8x128xf32> to vector<8x128xf32>
    %c1 = arith.constant 1 : index
    %c0_2 = arith.constant 0 : index
    %c0_3 = arith.constant 0 : index
    %2 = vector.load %arg1[%c1, %c0_2, %c0_3] : memref<11x8x128xf32, #tpu.memory_space<vmem>>, vector<1x8x128xf32>
    %3 = vector.shape_cast %2 : vector<1x8x128xf32> to vector<8x128xf32>
    %c2 = arith.constant 2 : index
    %c0_4 = arith.constant 0 : index
    %c0_5 = arith.constant 0 : index
    %4 = vector.load %arg1[%c2, %c0_4, %c0_5] : memref<11x8x128xf32, #tpu.memory_space<vmem>>, vector<1x8x128xf32>
    %5 = vector.shape_cast %4 : vector<1x8x128xf32> to vector<8x128xf32>
    %c3 = arith.constant 3 : index
    %c0_6 = arith.constant 0 : index
    %c0_7 = arith.constant 0 : index
    %6 = vector.load %arg1[%c3, %c0_6, %c0_7] : memref<11x8x128xf32, #tpu.memory_space<vmem>>, vector<1x8x128xf32>
    %7 = vector.shape_cast %6 : vector<1x8x128xf32> to vector<8x128xf32>
    %c4 = arith.constant 4 : index
    %c0_8 = arith.constant 0 : index
    %c0_9 = arith.constant 0 : index
    %8 = vector.load %arg1[%c4, %c0_8, %c0_9] : memref<11x8x128xf32, #tpu.memory_space<vmem>>, vector<1x8x128xf32>
    %9 = vector.shape_cast %8 : vector<1x8x128xf32> to vector<8x128xf32>
    %c5 = arith.constant 5 : index
    %c0_10 = arith.constant 0 : index
    %c0_11 = arith.constant 0 : index
    %10 = vector.load %arg1[%c5, %c0_10, %c0_11] : memref<11x8x128xf32, #tpu.memory_space<vmem>>, vector<1x8x128xf32>
    %11 = vector.shape_cast %10 : vector<1x8x128xf32> to vector<8x128xf32>
    %c6 = arith.constant 6 : index
    %c0_12 = arith.constant 0 : index
    %c0_13 = arith.constant 0 : index
    %12 = vector.load %arg1[%c6, %c0_12, %c0_13] : memref<11x8x128xf32, #tpu.memory_space<vmem>>, vector<1x8x128xf32>
    %13 = vector.shape_cast %12 : vector<1x8x128xf32> to vector<8x128xf32>
    %c7 = arith.constant 7 : index
    %c0_14 = arith.constant 0 : index
    %c0_15 = arith.constant 0 : index
    %14 = vector.load %arg1[%c7, %c0_14, %c0_15] : memref<11x8x128xf32, #tpu.memory_space<vmem>>, vector<1x8x128xf32>
    %15 = vector.shape_cast %14 : vector<1x8x128xf32> to vector<8x128xf32>
    %c8 = arith.constant 8 : index
    %c0_16 = arith.constant 0 : index
    %c0_17 = arith.constant 0 : index
    %16 = vector.load %arg1[%c8, %c0_16, %c0_17] : memref<11x8x128xf32, #tpu.memory_space<vmem>>, vector<1x8x128xf32>
    %17 = vector.shape_cast %16 : vector<1x8x128xf32> to vector<8x128xf32>
    %c9 = arith.constant 9 : index
    %c0_18 = arith.constant 0 : index
    %c0_19 = arith.constant 0 : index
    %18 = vector.load %arg1[%c9, %c0_18, %c0_19] : memref<11x8x128xf32, #tpu.memory_space<vmem>>, vector<1x8x128xf32>
    %19 = vector.shape_cast %18 : vector<1x8x128xf32> to vector<8x128xf32>
    %cst = arith.constant 0.000000e+00 : f32
    %20 = vector.broadcast %cst : f32 to vector<8x128xf32>
    %21 = arith.maximumf %19, %20 : vector<8x128xf32>
    %22 = arith.mulf %21, %21 : vector<8x128xf32>
    %cst_20 = arith.constant 0.000000e+00 : f32
    %23 = vector.broadcast %cst_20 : f32 to vector<8x128xf32>
    %c0_i32 = arith.constant 0 : i32
    %24 = arith.index_cast %c0_i32 : i32 to index
    %c0_21 = arith.constant 0 : index
    %c0_22 = arith.constant 0 : index
    %c0_23 = arith.constant 0 : index
    %25 = vector.load %arg2[%24, %c0_21, %c0_22, %c0_23] : memref<8x2x8x128xf32, #tpu.memory_space<vmem>>, vector<1x2x8x128xf32>
    %26 = vector.shape_cast %25 : vector<1x2x8x128xf32> to vector<2x8x128xf32>
    %27 = vector.extract_strided_slice %26 {offsets = [0, 0, 0], sizes = [1, 8, 128], strides = [1, 1, 1]} : vector<2x8x128xf32> to vector<1x8x128xf32>
    %28 = vector.shape_cast %27 : vector<1x8x128xf32> to vector<8x128xf32>
    %29 = vector.extract_strided_slice %26 {offsets = [1, 0, 0], sizes = [1, 8, 128], strides = [1, 1, 1]} : vector<2x8x128xf32> to vector<1x8x128xf32>
    %30 = vector.shape_cast %29 : vector<1x8x128xf32> to vector<8x128xf32>
    %cst_24 = arith.constant 2.000000e-01 : f32
    %31 = vector.broadcast %cst_24 : f32 to vector<8x128xf32>
    %32 = arith.mulf %7, %31 : vector<8x128xf32>
    %33 = math.cos %5 : vector<8x128xf32>
    %34 = arith.mulf %32, %33 : vector<8x128xf32>
    %35 = arith.addf %1, %34 : vector<8x128xf32>
    %36 = math.sin %5 : vector<8x128xf32>
    %37 = arith.mulf %32, %36 : vector<8x128xf32>
    %38 = arith.addf %3, %37 : vector<8x128xf32>
    %39 = math.tan %30 : vector<8x128xf32>
    %40 = arith.mulf %32, %39 : vector<8x128xf32>
    %cst_25 = arith.constant 5.000000e-01 : f32
    %41 = vector.broadcast %cst_25 : f32 to vector<8x128xf32>
    %42 = arith.mulf %40, %41 : vector<8x128xf32>
    %43 = arith.addf %5, %42 : vector<8x128xf32>
    %cst_26 = arith.constant 9.900000e-01 : f32
    %44 = vector.broadcast %cst_26 : f32 to vector<8x128xf32>
    %45 = arith.mulf %44, %7 : vector<8x128xf32>
    %cst_27 = arith.constant 2.000000e-01 : f32
    %46 = vector.broadcast %cst_27 : f32 to vector<8x128xf32>
    %47 = arith.mulf %28, %46 : vector<8x128xf32>
    %48 = arith.addf %45, %47 : vector<8x128xf32>
    %49 = arith.subf %35, %9 : vector<8x128xf32>
    %50 = arith.subf %38, %11 : vector<8x128xf32>
    %51 = arith.mulf %49, %49 : vector<8x128xf32>
    %52 = arith.mulf %50, %50 : vector<8x128xf32>
    %53 = arith.addf %51, %52 : vector<8x128xf32>
    %54 = math.sqrt %53 : vector<8x128xf32>
    %55 = arith.addf %23, %54 : vector<8x128xf32>
    %56 = arith.subf %43, %13 : vector<8x128xf32>
    %cst_28 = arith.constant 0.159154937 : f32
    %57 = vector.broadcast %cst_28 : f32 to vector<8x128xf32>
    %58 = arith.mulf %56, %57 : vector<8x128xf32>
    %59 = math.floor %58 : vector<8x128xf32>
    %cst_29 = arith.constant 6.28318548 : f32
    %60 = vector.broadcast %cst_29 : f32 to vector<8x128xf32>
    %61 = arith.mulf %59, %60 : vector<8x128xf32>
    %62 = arith.subf %56, %61 : vector<8x128xf32>
    %cst_30 = arith.constant 6.28318548 : f32
    %63 = vector.broadcast %cst_30 : f32 to vector<8x128xf32>
    %64 = arith.subf %63, %62 : vector<8x128xf32>
    %65 = arith.minimumf %62, %64 : vector<8x128xf32>
    %66 = arith.mulf %65, %65 : vector<8x128xf32>
    %67 = arith.addf %23, %66 : vector<8x128xf32>
    %68 = arith.subf %35, %15 : vector<8x128xf32>
    %69 = arith.subf %38, %17 : vector<8x128xf32>
    %70 = arith.mulf %68, %68 : vector<8x128xf32>
    %71 = arith.mulf %69, %69 : vector<8x128xf32>
    %72 = arith.addf %70, %71 : vector<8x128xf32>
    %73 = arith.cmpf olt, %72, %22 : vector<8x128xf32>
    %74 = math.rsqrt %72 : vector<8x128xf32>
    %cst_31 = arith.constant 0.000000e+00 : f32
    %75 = vector.broadcast %cst_31 : f32 to vector<8x128xf32>
    %76 = arith.select %73, %74, %75 : vector<8x128xi1>, vector<8x128xf32>
    %77 = arith.addf %23, %76 : vector<8x128xf32>
    %78 = arith.extui %73 : vector<8x128xi1> to vector<8x128xi32>
    %79 = arith.sitofp %78 : vector<8x128xi32> to vector<8x128xf32>
    %80 = arith.addf %23, %79 : vector<8x128xf32>
    %c1_i32 = arith.constant 1 : i32
    %81 = arith.index_cast %c1_i32 : i32 to index
    %c0_32 = arith.constant 0 : index
    %c0_33 = arith.constant 0 : index
    %c0_34 = arith.constant 0 : index
    %82 = vector.load %arg2[%81, %c0_32, %c0_33, %c0_34] : memref<8x2x8x128xf32, #tpu.memory_space<vmem>>, vector<1x2x8x128xf32>
    %83 = vector.shape_cast %82 : vector<1x2x8x128xf32> to vector<2x8x128xf32>
    %84 = vector.extract_strided_slice %83 {offsets = [0, 0, 0], sizes = [1, 8, 128], strides = [1, 1, 1]} : vector<2x8x128xf32> to vector<1x8x128xf32>
    %85 = vector.shape_cast %84 : vector<1x8x128xf32> to vector<8x128xf32>
    %86 = vector.extract_strided_slice %83 {offsets = [1, 0, 0], sizes = [1, 8, 128], strides = [1, 1, 1]} : vector<2x8x128xf32> to vector<1x8x128xf32>
    %87 = vector.shape_cast %86 : vector<1x8x128xf32> to vector<8x128xf32>
    %cst_35 = arith.constant 2.000000e-01 : f32
    %88 = vector.broadcast %cst_35 : f32 to vector<8x128xf32>
    %89 = arith.mulf %48, %88 : vector<8x128xf32>
    %90 = math.cos %43 : vector<8x128xf32>
    %91 = arith.mulf %89, %90 : vector<8x128xf32>
    %92 = arith.addf %35, %91 : vector<8x128xf32>
    %93 = math.sin %43 : vector<8x128xf32>
    %94 = arith.mulf %89, %93 : vector<8x128xf32>
    %95 = arith.addf %38, %94 : vector<8x128xf32>
    %96 = math.tan %87 : vector<8x128xf32>
    %97 = arith.mulf %89, %96 : vector<8x128xf32>
    %cst_36 = arith.constant 5.000000e-01 : f32
    %98 = vector.broadcast %cst_36 : f32 to vector<8x128xf32>
    %99 = arith.mulf %97, %98 : vector<8x128xf32>
    %100 = arith.addf %43, %99 : vector<8x128xf32>
    %cst_37 = arith.constant 9.900000e-01 : f32
    %101 = vector.broadcast %cst_37 : f32 to vector<8x128xf32>
    %102 = arith.mulf %101, %48 : vector<8x128xf32>
    %cst_38 = arith.constant 2.000000e-01 : f32
    %103 = vector.broadcast %cst_38 : f32 to vector<8x128xf32>
    %104 = arith.mulf %85, %103 : vector<8x128xf32>
    %105 = arith.addf %102, %104 : vector<8x128xf32>
    %106 = arith.subf %92, %9 : vector<8x128xf32>
    %107 = arith.subf %95, %11 : vector<8x128xf32>
    %108 = arith.mulf %106, %106 : vector<8x128xf32>
    %109 = arith.mulf %107, %107 : vector<8x128xf32>
    %110 = arith.addf %108, %109 : vector<8x128xf32>
    %111 = math.sqrt %110 : vector<8x128xf32>
    %112 = arith.addf %55, %111 : vector<8x128xf32>
    %113 = arith.subf %100, %13 : vector<8x128xf32>
    %cst_39 = arith.constant 0.159154937 : f32
    %114 = vector.broadcast %cst_39 : f32 to vector<8x128xf32>
    %115 = arith.mulf %113, %114 : vector<8x128xf32>
    %116 = math.floor %115 : vector<8x128xf32>
    %cst_40 = arith.constant 6.28318548 : f32
    %117 = vector.broadcast %cst_40 : f32 to vector<8x128xf32>
    %118 = arith.mulf %116, %117 : vector<8x128xf32>
    %119 = arith.subf %113, %118 : vector<8x128xf32>
    %cst_41 = arith.constant 6.28318548 : f32
    %120 = vector.broadcast %cst_41 : f32 to vector<8x128xf32>
    %121 = arith.subf %120, %119 : vector<8x128xf32>
    %122 = arith.minimumf %119, %121 : vector<8x128xf32>
    %123 = arith.mulf %122, %122 : vector<8x128xf32>
    %124 = arith.addf %67, %123 : vector<8x128xf32>
    %125 = arith.subf %92, %15 : vector<8x128xf32>
    %126 = arith.subf %95, %17 : vector<8x128xf32>
    %127 = arith.mulf %125, %125 : vector<8x128xf32>
    %128 = arith.mulf %126, %126 : vector<8x128xf32>
    %129 = arith.addf %127, %128 : vector<8x128xf32>
    %130 = arith.cmpf olt, %129, %22 : vector<8x128xf32>
    %131 = math.rsqrt %129 : vector<8x128xf32>
    %cst_42 = arith.constant 0.000000e+00 : f32
    %132 = vector.broadcast %cst_42 : f32 to vector<8x128xf32>
    %133 = arith.select %130, %131, %132 : vector<8x128xi1>, vector<8x128xf32>
    %134 = arith.addf %77, %133 : vector<8x128xf32>
    %135 = arith.extui %130 : vector<8x128xi1> to vector<8x128xi32>
    %136 = arith.sitofp %135 : vector<8x128xi32> to vector<8x128xf32>
    %137 = arith.addf %80, %136 : vector<8x128xf32>
    %c2_i32 = arith.constant 2 : i32
    %138 = arith.index_cast %c2_i32 : i32 to index
    %c0_43 = arith.constant 0 : index
    %c0_44 = arith.constant 0 : index
    %c0_45 = arith.constant 0 : index
    %139 = vector.load %arg2[%138, %c0_43, %c0_44, %c0_45] : memref<8x2x8x128xf32, #tpu.memory_space<vmem>>, vector<1x2x8x128xf32>
    %140 = vector.shape_cast %139 : vector<1x2x8x128xf32> to vector<2x8x128xf32>
    %141 = vector.extract_strided_slice %140 {offsets = [0, 0, 0], sizes = [1, 8, 128], strides = [1, 1, 1]} : vector<2x8x128xf32> to vector<1x8x128xf32>
    %142 = vector.shape_cast %141 : vector<1x8x128xf32> to vector<8x128xf32>
    %143 = vector.extract_strided_slice %140 {offsets = [1, 0, 0], sizes = [1, 8, 128], strides = [1, 1, 1]} : vector<2x8x128xf32> to vector<1x8x128xf32>
    %144 = vector.shape_cast %143 : vector<1x8x128xf32> to vector<8x128xf32>
    %cst_46 = arith.constant 2.000000e-01 : f32
    %145 = vector.broadcast %cst_46 : f32 to vector<8x128xf32>
    %146 = arith.mulf %105, %145 : vector<8x128xf32>
    %147 = math.cos %100 : vector<8x128xf32>
    %148 = arith.mulf %146, %147 : vector<8x128xf32>
    %149 = arith.addf %92, %148 : vector<8x128xf32>
    %150 = math.sin %100 : vector<8x128xf32>
    %151 = arith.mulf %146, %150 : vector<8x128xf32>
    %152 = arith.addf %95, %151 : vector<8x128xf32>
    %153 = math.tan %144 : vector<8x128xf32>
    %154 = arith.mulf %146, %153 : vector<8x128xf32>
    %cst_47 = arith.constant 5.000000e-01 : f32
    %155 = vector.broadcast %cst_47 : f32 to vector<8x128xf32>
    %156 = arith.mulf %154, %155 : vector<8x128xf32>
    %157 = arith.addf %100, %156 : vector<8x128xf32>
    %cst_48 = arith.constant 9.900000e-01 : f32
    %158 = vector.broadcast %cst_48 : f32 to vector<8x128xf32>
    %159 = arith.mulf %158, %105 : vector<8x128xf32>
    %cst_49 = arith.constant 2.000000e-01 : f32
    %160 = vector.broadcast %cst_49 : f32 to vector<8x128xf32>
    %161 = arith.mulf %142, %160 : vector<8x128xf32>
    %162 = arith.addf %159, %161 : vector<8x128xf32>
    %163 = arith.subf %149, %9 : vector<8x128xf32>
    %164 = arith.subf %152, %11 : vector<8x128xf32>
    %165 = arith.mulf %163, %163 : vector<8x128xf32>
    %166 = arith.mulf %164, %164 : vector<8x128xf32>
    %167 = arith.addf %165, %166 : vector<8x128xf32>
    %168 = math.sqrt %167 : vector<8x128xf32>
    %169 = arith.addf %112, %168 : vector<8x128xf32>
    %170 = arith.subf %157, %13 : vector<8x128xf32>
    %cst_50 = arith.constant 0.159154937 : f32
    %171 = vector.broadcast %cst_50 : f32 to vector<8x128xf32>
    %172 = arith.mulf %170, %171 : vector<8x128xf32>
    %173 = math.floor %172 : vector<8x128xf32>
    %cst_51 = arith.constant 6.28318548 : f32
    %174 = vector.broadcast %cst_51 : f32 to vector<8x128xf32>
    %175 = arith.mulf %173, %174 : vector<8x128xf32>
    %176 = arith.subf %170, %175 : vector<8x128xf32>
    %cst_52 = arith.constant 6.28318548 : f32
    %177 = vector.broadcast %cst_52 : f32 to vector<8x128xf32>
    %178 = arith.subf %177, %176 : vector<8x128xf32>
    %179 = arith.minimumf %176, %178 : vector<8x128xf32>
    %180 = arith.mulf %179, %179 : vector<8x128xf32>
    %181 = arith.addf %124, %180 : vector<8x128xf32>
    %182 = arith.subf %149, %15 : vector<8x128xf32>
    %183 = arith.subf %152, %17 : vector<8x128xf32>
    %184 = arith.mulf %182, %182 : vector<8x128xf32>
    %185 = arith.mulf %183, %183 : vector<8x128xf32>
    %186 = arith.addf %184, %185 : vector<8x128xf32>
    %187 = arith.cmpf olt, %186, %22 : vector<8x128xf32>
    %188 = math.rsqrt %186 : vector<8x128xf32>
    %cst_53 = arith.constant 0.000000e+00 : f32
    %189 = vector.broadcast %cst_53 : f32 to vector<8x128xf32>
    %190 = arith.select %187, %188, %189 : vector<8x128xi1>, vector<8x128xf32>
    %191 = arith.addf %134, %190 : vector<8x128xf32>
    %192 = arith.extui %187 : vector<8x128xi1> to vector<8x128xi32>
    %193 = arith.sitofp %192 : vector<8x128xi32> to vector<8x128xf32>
    %194 = arith.addf %137, %193 : vector<8x128xf32>
    %c3_i32 = arith.constant 3 : i32
    %195 = arith.index_cast %c3_i32 : i32 to index
    %c0_54 = arith.constant 0 : index
    %c0_55 = arith.constant 0 : index
    %c0_56 = arith.constant 0 : index
    %196 = vector.load %arg2[%195, %c0_54, %c0_55, %c0_56] : memref<8x2x8x128xf32, #tpu.memory_space<vmem>>, vector<1x2x8x128xf32>
    %197 = vector.shape_cast %196 : vector<1x2x8x128xf32> to vector<2x8x128xf32>
    %198 = vector.extract_strided_slice %197 {offsets = [0, 0, 0], sizes = [1, 8, 128], strides = [1, 1, 1]} : vector<2x8x128xf32> to vector<1x8x128xf32>
    %199 = vector.shape_cast %198 : vector<1x8x128xf32> to vector<8x128xf32>
    %200 = vector.extract_strided_slice %197 {offsets = [1, 0, 0], sizes = [1, 8, 128], strides = [1, 1, 1]} : vector<2x8x128xf32> to vector<1x8x128xf32>
    %201 = vector.shape_cast %200 : vector<1x8x128xf32> to vector<8x128xf32>
    %cst_57 = arith.constant 2.000000e-01 : f32
    %202 = vector.broadcast %cst_57 : f32 to vector<8x128xf32>
    %203 = arith.mulf %162, %202 : vector<8x128xf32>
    %204 = math.cos %157 : vector<8x128xf32>
    %205 = arith.mulf %203, %204 : vector<8x128xf32>
    %206 = arith.addf %149, %205 : vector<8x128xf32>
    %207 = math.sin %157 : vector<8x128xf32>
    %208 = arith.mulf %203, %207 : vector<8x128xf32>
    %209 = arith.addf %152, %208 : vector<8x128xf32>
    %210 = math.tan %201 : vector<8x128xf32>
    %211 = arith.mulf %203, %210 : vector<8x128xf32>
    %cst_58 = arith.constant 5.000000e-01 : f32
    %212 = vector.broadcast %cst_58 : f32 to vector<8x128xf32>
    %213 = arith.mulf %211, %212 : vector<8x128xf32>
    %214 = arith.addf %157, %213 : vector<8x128xf32>
    %cst_59 = arith.constant 9.900000e-01 : f32
    %215 = vector.broadcast %cst_59 : f32 to vector<8x128xf32>
    %216 = arith.mulf %215, %162 : vector<8x128xf32>
    %cst_60 = arith.constant 2.000000e-01 : f32
    %217 = vector.broadcast %cst_60 : f32 to vector<8x128xf32>
    %218 = arith.mulf %199, %217 : vector<8x128xf32>
    %219 = arith.addf %216, %218 : vector<8x128xf32>
    %220 = arith.subf %206, %9 : vector<8x128xf32>
    %221 = arith.subf %209, %11 : vector<8x128xf32>
    %222 = arith.mulf %220, %220 : vector<8x128xf32>
    %223 = arith.mulf %221, %221 : vector<8x128xf32>
    %224 = arith.addf %222, %223 : vector<8x128xf32>
    %225 = math.sqrt %224 : vector<8x128xf32>
    %226 = arith.addf %169, %225 : vector<8x128xf32>
    %227 = arith.subf %214, %13 : vector<8x128xf32>
    %cst_61 = arith.constant 0.159154937 : f32
    %228 = vector.broadcast %cst_61 : f32 to vector<8x128xf32>
    %229 = arith.mulf %227, %228 : vector<8x128xf32>
    %230 = math.floor %229 : vector<8x128xf32>
    %cst_62 = arith.constant 6.28318548 : f32
    %231 = vector.broadcast %cst_62 : f32 to vector<8x128xf32>
    %232 = arith.mulf %230, %231 : vector<8x128xf32>
    %233 = arith.subf %227, %232 : vector<8x128xf32>
    %cst_63 = arith.constant 6.28318548 : f32
    %234 = vector.broadcast %cst_63 : f32 to vector<8x128xf32>
    %235 = arith.subf %234, %233 : vector<8x128xf32>
    %236 = arith.minimumf %233, %235 : vector<8x128xf32>
    %237 = arith.mulf %236, %236 : vector<8x128xf32>
    %238 = arith.addf %181, %237 : vector<8x128xf32>
    %239 = arith.subf %206, %15 : vector<8x128xf32>
    %240 = arith.subf %209, %17 : vector<8x128xf32>
    %241 = arith.mulf %239, %239 : vector<8x128xf32>
    %242 = arith.mulf %240, %240 : vector<8x128xf32>
    %243 = arith.addf %241, %242 : vector<8x128xf32>
    %244 = arith.cmpf olt, %243, %22 : vector<8x128xf32>
    %245 = math.rsqrt %243 : vector<8x128xf32>
    %cst_64 = arith.constant 0.000000e+00 : f32
    %246 = vector.broadcast %cst_64 : f32 to vector<8x128xf32>
    %247 = arith.select %244, %245, %246 : vector<8x128xi1>, vector<8x128xf32>
    %248 = arith.addf %191, %247 : vector<8x128xf32>
    %249 = arith.extui %244 : vector<8x128xi1> to vector<8x128xi32>
    %250 = arith.sitofp %249 : vector<8x128xi32> to vector<8x128xf32>
    %251 = arith.addf %194, %250 : vector<8x128xf32>
    %c4_i32 = arith.constant 4 : i32
    %252 = arith.index_cast %c4_i32 : i32 to index
    %c0_65 = arith.constant 0 : index
    %c0_66 = arith.constant 0 : index
    %c0_67 = arith.constant 0 : index
    %253 = vector.load %arg2[%252, %c0_65, %c0_66, %c0_67] : memref<8x2x8x128xf32, #tpu.memory_space<vmem>>, vector<1x2x8x128xf32>
    %254 = vector.shape_cast %253 : vector<1x2x8x128xf32> to vector<2x8x128xf32>
    %255 = vector.extract_strided_slice %254 {offsets = [0, 0, 0], sizes = [1, 8, 128], strides = [1, 1, 1]} : vector<2x8x128xf32> to vector<1x8x128xf32>
    %256 = vector.shape_cast %255 : vector<1x8x128xf32> to vector<8x128xf32>
    %257 = vector.extract_strided_slice %254 {offsets = [1, 0, 0], sizes = [1, 8, 128], strides = [1, 1, 1]} : vector<2x8x128xf32> to vector<1x8x128xf32>
    %258 = vector.shape_cast %257 : vector<1x8x128xf32> to vector<8x128xf32>
    %cst_68 = arith.constant 2.000000e-01 : f32
    %259 = vector.broadcast %cst_68 : f32 to vector<8x128xf32>
    %260 = arith.mulf %219, %259 : vector<8x128xf32>
    %261 = math.cos %214 : vector<8x128xf32>
    %262 = arith.mulf %260, %261 : vector<8x128xf32>
    %263 = arith.addf %206, %262 : vector<8x128xf32>
    %264 = math.sin %214 : vector<8x128xf32>
    %265 = arith.mulf %260, %264 : vector<8x128xf32>
    %266 = arith.addf %209, %265 : vector<8x128xf32>
    %267 = math.tan %258 : vector<8x128xf32>
    %268 = arith.mulf %260, %267 : vector<8x128xf32>
    %cst_69 = arith.constant 5.000000e-01 : f32
    %269 = vector.broadcast %cst_69 : f32 to vector<8x128xf32>
    %270 = arith.mulf %268, %269 : vector<8x128xf32>
    %271 = arith.addf %214, %270 : vector<8x128xf32>
    %cst_70 = arith.constant 9.900000e-01 : f32
    %272 = vector.broadcast %cst_70 : f32 to vector<8x128xf32>
    %273 = arith.mulf %272, %219 : vector<8x128xf32>
    %cst_71 = arith.constant 2.000000e-01 : f32
    %274 = vector.broadcast %cst_71 : f32 to vector<8x128xf32>
    %275 = arith.mulf %256, %274 : vector<8x128xf32>
    %276 = arith.addf %273, %275 : vector<8x128xf32>
    %277 = arith.subf %263, %9 : vector<8x128xf32>
    %278 = arith.subf %266, %11 : vector<8x128xf32>
    %279 = arith.mulf %277, %277 : vector<8x128xf32>
    %280 = arith.mulf %278, %278 : vector<8x128xf32>
    %281 = arith.addf %279, %280 : vector<8x128xf32>
    %282 = math.sqrt %281 : vector<8x128xf32>
    %283 = arith.addf %226, %282 : vector<8x128xf32>
    %284 = arith.subf %271, %13 : vector<8x128xf32>
    %cst_72 = arith.constant 0.159154937 : f32
    %285 = vector.broadcast %cst_72 : f32 to vector<8x128xf32>
    %286 = arith.mulf %284, %285 : vector<8x128xf32>
    %287 = math.floor %286 : vector<8x128xf32>
    %cst_73 = arith.constant 6.28318548 : f32
    %288 = vector.broadcast %cst_73 : f32 to vector<8x128xf32>
    %289 = arith.mulf %287, %288 : vector<8x128xf32>
    %290 = arith.subf %284, %289 : vector<8x128xf32>
    %cst_74 = arith.constant 6.28318548 : f32
    %291 = vector.broadcast %cst_74 : f32 to vector<8x128xf32>
    %292 = arith.subf %291, %290 : vector<8x128xf32>
    %293 = arith.minimumf %290, %292 : vector<8x128xf32>
    %294 = arith.mulf %293, %293 : vector<8x128xf32>
    %295 = arith.addf %238, %294 : vector<8x128xf32>
    %296 = arith.subf %263, %15 : vector<8x128xf32>
    %297 = arith.subf %266, %17 : vector<8x128xf32>
    %298 = arith.mulf %296, %296 : vector<8x128xf32>
    %299 = arith.mulf %297, %297 : vector<8x128xf32>
    %300 = arith.addf %298, %299 : vector<8x128xf32>
    %301 = arith.cmpf olt, %300, %22 : vector<8x128xf32>
    %302 = math.rsqrt %300 : vector<8x128xf32>
    %cst_75 = arith.constant 0.000000e+00 : f32
    %303 = vector.broadcast %cst_75 : f32 to vector<8x128xf32>
    %304 = arith.select %301, %302, %303 : vector<8x128xi1>, vector<8x128xf32>
    %305 = arith.addf %248, %304 : vector<8x128xf32>
    %306 = arith.extui %301 : vector<8x128xi1> to vector<8x128xi32>
    %307 = arith.sitofp %306 : vector<8x128xi32> to vector<8x128xf32>
    %308 = arith.addf %251, %307 : vector<8x128xf32>
    %c5_i32 = arith.constant 5 : i32
    %309 = arith.index_cast %c5_i32 : i32 to index
    %c0_76 = arith.constant 0 : index
    %c0_77 = arith.constant 0 : index
    %c0_78 = arith.constant 0 : index
    %310 = vector.load %arg2[%309, %c0_76, %c0_77, %c0_78] : memref<8x2x8x128xf32, #tpu.memory_space<vmem>>, vector<1x2x8x128xf32>
    %311 = vector.shape_cast %310 : vector<1x2x8x128xf32> to vector<2x8x128xf32>
    %312 = vector.extract_strided_slice %311 {offsets = [0, 0, 0], sizes = [1, 8, 128], strides = [1, 1, 1]} : vector<2x8x128xf32> to vector<1x8x128xf32>
    %313 = vector.shape_cast %312 : vector<1x8x128xf32> to vector<8x128xf32>
    %314 = vector.extract_strided_slice %311 {offsets = [1, 0, 0], sizes = [1, 8, 128], strides = [1, 1, 1]} : vector<2x8x128xf32> to vector<1x8x128xf32>
    %315 = vector.shape_cast %314 : vector<1x8x128xf32> to vector<8x128xf32>
    %cst_79 = arith.constant 2.000000e-01 : f32
    %316 = vector.broadcast %cst_79 : f32 to vector<8x128xf32>
    %317 = arith.mulf %276, %316 : vector<8x128xf32>
    %318 = math.cos %271 : vector<8x128xf32>
    %319 = arith.mulf %317, %318 : vector<8x128xf32>
    %320 = arith.addf %263, %319 : vector<8x128xf32>
    %321 = math.sin %271 : vector<8x128xf32>
    %322 = arith.mulf %317, %321 : vector<8x128xf32>
    %323 = arith.addf %266, %322 : vector<8x128xf32>
    %324 = math.tan %315 : vector<8x128xf32>
    %325 = arith.mulf %317, %324 : vector<8x128xf32>
    %cst_80 = arith.constant 5.000000e-01 : f32
    %326 = vector.broadcast %cst_80 : f32 to vector<8x128xf32>
    %327 = arith.mulf %325, %326 : vector<8x128xf32>
    %328 = arith.addf %271, %327 : vector<8x128xf32>
    %cst_81 = arith.constant 9.900000e-01 : f32
    %329 = vector.broadcast %cst_81 : f32 to vector<8x128xf32>
    %330 = arith.mulf %329, %276 : vector<8x128xf32>
    %cst_82 = arith.constant 2.000000e-01 : f32
    %331 = vector.broadcast %cst_82 : f32 to vector<8x128xf32>
    %332 = arith.mulf %313, %331 : vector<8x128xf32>
    %333 = arith.addf %330, %332 : vector<8x128xf32>
    %334 = arith.subf %320, %9 : vector<8x128xf32>
    %335 = arith.subf %323, %11 : vector<8x128xf32>
    %336 = arith.mulf %334, %334 : vector<8x128xf32>
    %337 = arith.mulf %335, %335 : vector<8x128xf32>
    %338 = arith.addf %336, %337 : vector<8x128xf32>
    %339 = math.sqrt %338 : vector<8x128xf32>
    %340 = arith.addf %283, %339 : vector<8x128xf32>
    %341 = arith.subf %328, %13 : vector<8x128xf32>
    %cst_83 = arith.constant 0.159154937 : f32
    %342 = vector.broadcast %cst_83 : f32 to vector<8x128xf32>
    %343 = arith.mulf %341, %342 : vector<8x128xf32>
    %344 = math.floor %343 : vector<8x128xf32>
    %cst_84 = arith.constant 6.28318548 : f32
    %345 = vector.broadcast %cst_84 : f32 to vector<8x128xf32>
    %346 = arith.mulf %344, %345 : vector<8x128xf32>
    %347 = arith.subf %341, %346 : vector<8x128xf32>
    %cst_85 = arith.constant 6.28318548 : f32
    %348 = vector.broadcast %cst_85 : f32 to vector<8x128xf32>
    %349 = arith.subf %348, %347 : vector<8x128xf32>
    %350 = arith.minimumf %347, %349 : vector<8x128xf32>
    %351 = arith.mulf %350, %350 : vector<8x128xf32>
    %352 = arith.addf %295, %351 : vector<8x128xf32>
    %353 = arith.subf %320, %15 : vector<8x128xf32>
    %354 = arith.subf %323, %17 : vector<8x128xf32>
    %355 = arith.mulf %353, %353 : vector<8x128xf32>
    %356 = arith.mulf %354, %354 : vector<8x128xf32>
    %357 = arith.addf %355, %356 : vector<8x128xf32>
    %358 = arith.cmpf olt, %357, %22 : vector<8x128xf32>
    %359 = math.rsqrt %357 : vector<8x128xf32>
    %cst_86 = arith.constant 0.000000e+00 : f32
    %360 = vector.broadcast %cst_86 : f32 to vector<8x128xf32>
    %361 = arith.select %358, %359, %360 : vector<8x128xi1>, vector<8x128xf32>
    %362 = arith.addf %305, %361 : vector<8x128xf32>
    %363 = arith.extui %358 : vector<8x128xi1> to vector<8x128xi32>
    %364 = arith.sitofp %363 : vector<8x128xi32> to vector<8x128xf32>
    %365 = arith.addf %308, %364 : vector<8x128xf32>
    %c6_i32 = arith.constant 6 : i32
    %366 = arith.index_cast %c6_i32 : i32 to index
    %c0_87 = arith.constant 0 : index
    %c0_88 = arith.constant 0 : index
    %c0_89 = arith.constant 0 : index
    %367 = vector.load %arg2[%366, %c0_87, %c0_88, %c0_89] : memref<8x2x8x128xf32, #tpu.memory_space<vmem>>, vector<1x2x8x128xf32>
    %368 = vector.shape_cast %367 : vector<1x2x8x128xf32> to vector<2x8x128xf32>
    %369 = vector.extract_strided_slice %368 {offsets = [0, 0, 0], sizes = [1, 8, 128], strides = [1, 1, 1]} : vector<2x8x128xf32> to vector<1x8x128xf32>
    %370 = vector.shape_cast %369 : vector<1x8x128xf32> to vector<8x128xf32>
    %371 = vector.extract_strided_slice %368 {offsets = [1, 0, 0], sizes = [1, 8, 128], strides = [1, 1, 1]} : vector<2x8x128xf32> to vector<1x8x128xf32>
    %372 = vector.shape_cast %371 : vector<1x8x128xf32> to vector<8x128xf32>
    %cst_90 = arith.constant 2.000000e-01 : f32
    %373 = vector.broadcast %cst_90 : f32 to vector<8x128xf32>
    %374 = arith.mulf %333, %373 : vector<8x128xf32>
    %375 = math.cos %328 : vector<8x128xf32>
    %376 = arith.mulf %374, %375 : vector<8x128xf32>
    %377 = arith.addf %320, %376 : vector<8x128xf32>
    %378 = math.sin %328 : vector<8x128xf32>
    %379 = arith.mulf %374, %378 : vector<8x128xf32>
    %380 = arith.addf %323, %379 : vector<8x128xf32>
    %381 = math.tan %372 : vector<8x128xf32>
    %382 = arith.mulf %374, %381 : vector<8x128xf32>
    %cst_91 = arith.constant 5.000000e-01 : f32
    %383 = vector.broadcast %cst_91 : f32 to vector<8x128xf32>
    %384 = arith.mulf %382, %383 : vector<8x128xf32>
    %385 = arith.addf %328, %384 : vector<8x128xf32>
    %cst_92 = arith.constant 9.900000e-01 : f32
    %386 = vector.broadcast %cst_92 : f32 to vector<8x128xf32>
    %387 = arith.mulf %386, %333 : vector<8x128xf32>
    %cst_93 = arith.constant 2.000000e-01 : f32
    %388 = vector.broadcast %cst_93 : f32 to vector<8x128xf32>
    %389 = arith.mulf %370, %388 : vector<8x128xf32>
    %390 = arith.addf %387, %389 : vector<8x128xf32>
    %391 = arith.subf %377, %9 : vector<8x128xf32>
    %392 = arith.subf %380, %11 : vector<8x128xf32>
    %393 = arith.mulf %391, %391 : vector<8x128xf32>
    %394 = arith.mulf %392, %392 : vector<8x128xf32>
    %395 = arith.addf %393, %394 : vector<8x128xf32>
    %396 = math.sqrt %395 : vector<8x128xf32>
    %397 = arith.addf %340, %396 : vector<8x128xf32>
    %398 = arith.subf %385, %13 : vector<8x128xf32>
    %cst_94 = arith.constant 0.159154937 : f32
    %399 = vector.broadcast %cst_94 : f32 to vector<8x128xf32>
    %400 = arith.mulf %398, %399 : vector<8x128xf32>
    %401 = math.floor %400 : vector<8x128xf32>
    %cst_95 = arith.constant 6.28318548 : f32
    %402 = vector.broadcast %cst_95 : f32 to vector<8x128xf32>
    %403 = arith.mulf %401, %402 : vector<8x128xf32>
    %404 = arith.subf %398, %403 : vector<8x128xf32>
    %cst_96 = arith.constant 6.28318548 : f32
    %405 = vector.broadcast %cst_96 : f32 to vector<8x128xf32>
    %406 = arith.subf %405, %404 : vector<8x128xf32>
    %407 = arith.minimumf %404, %406 : vector<8x128xf32>
    %408 = arith.mulf %407, %407 : vector<8x128xf32>
    %409 = arith.addf %352, %408 : vector<8x128xf32>
    %410 = arith.subf %377, %15 : vector<8x128xf32>
    %411 = arith.subf %380, %17 : vector<8x128xf32>
    %412 = arith.mulf %410, %410 : vector<8x128xf32>
    %413 = arith.mulf %411, %411 : vector<8x128xf32>
    %414 = arith.addf %412, %413 : vector<8x128xf32>
    %415 = arith.cmpf olt, %414, %22 : vector<8x128xf32>
    %416 = math.rsqrt %414 : vector<8x128xf32>
    %cst_97 = arith.constant 0.000000e+00 : f32
    %417 = vector.broadcast %cst_97 : f32 to vector<8x128xf32>
    %418 = arith.select %415, %416, %417 : vector<8x128xi1>, vector<8x128xf32>
    %419 = arith.addf %362, %418 : vector<8x128xf32>
    %420 = arith.extui %415 : vector<8x128xi1> to vector<8x128xi32>
    %421 = arith.sitofp %420 : vector<8x128xi32> to vector<8x128xf32>
    %422 = arith.addf %365, %421 : vector<8x128xf32>
    %c7_i32 = arith.constant 7 : i32
    %423 = arith.index_cast %c7_i32 : i32 to index
    %c0_98 = arith.constant 0 : index
    %c0_99 = arith.constant 0 : index
    %c0_100 = arith.constant 0 : index
    %424 = vector.load %arg2[%423, %c0_98, %c0_99, %c0_100] : memref<8x2x8x128xf32, #tpu.memory_space<vmem>>, vector<1x2x8x128xf32>
    %425 = vector.shape_cast %424 : vector<1x2x8x128xf32> to vector<2x8x128xf32>
    %426 = vector.extract_strided_slice %425 {offsets = [0, 0, 0], sizes = [1, 8, 128], strides = [1, 1, 1]} : vector<2x8x128xf32> to vector<1x8x128xf32>
    %427 = vector.shape_cast %426 : vector<1x8x128xf32> to vector<8x128xf32>
    %428 = vector.extract_strided_slice %425 {offsets = [1, 0, 0], sizes = [1, 8, 128], strides = [1, 1, 1]} : vector<2x8x128xf32> to vector<1x8x128xf32>
    %429 = vector.shape_cast %428 : vector<1x8x128xf32> to vector<8x128xf32>
    %cst_101 = arith.constant 2.000000e-01 : f32
    %430 = vector.broadcast %cst_101 : f32 to vector<8x128xf32>
    %431 = arith.mulf %390, %430 : vector<8x128xf32>
    %432 = math.cos %385 : vector<8x128xf32>
    %433 = arith.mulf %431, %432 : vector<8x128xf32>
    %434 = arith.addf %377, %433 : vector<8x128xf32>
    %435 = math.sin %385 : vector<8x128xf32>
    %436 = arith.mulf %431, %435 : vector<8x128xf32>
    %437 = arith.addf %380, %436 : vector<8x128xf32>
    %438 = math.tan %429 : vector<8x128xf32>
    %439 = arith.mulf %431, %438 : vector<8x128xf32>
    %cst_102 = arith.constant 5.000000e-01 : f32
    %440 = vector.broadcast %cst_102 : f32 to vector<8x128xf32>
    %441 = arith.mulf %439, %440 : vector<8x128xf32>
    %442 = arith.addf %385, %441 : vector<8x128xf32>
    %cst_103 = arith.constant 9.900000e-01 : f32
    %443 = vector.broadcast %cst_103 : f32 to vector<8x128xf32>
    %444 = arith.mulf %443, %390 : vector<8x128xf32>
    %cst_104 = arith.constant 2.000000e-01 : f32
    %445 = vector.broadcast %cst_104 : f32 to vector<8x128xf32>
    %446 = arith.mulf %427, %445 : vector<8x128xf32>
    %447 = arith.addf %444, %446 : vector<8x128xf32>
    %448 = arith.subf %434, %9 : vector<8x128xf32>
    %449 = arith.subf %437, %11 : vector<8x128xf32>
    %450 = arith.mulf %448, %448 : vector<8x128xf32>
    %451 = arith.mulf %449, %449 : vector<8x128xf32>
    %452 = arith.addf %450, %451 : vector<8x128xf32>
    %453 = math.sqrt %452 : vector<8x128xf32>
    %454 = arith.addf %397, %453 : vector<8x128xf32>
    %455 = arith.subf %442, %13 : vector<8x128xf32>
    %cst_105 = arith.constant 0.159154937 : f32
    %456 = vector.broadcast %cst_105 : f32 to vector<8x128xf32>
    %457 = arith.mulf %455, %456 : vector<8x128xf32>
    %458 = math.floor %457 : vector<8x128xf32>
    %cst_106 = arith.constant 6.28318548 : f32
    %459 = vector.broadcast %cst_106 : f32 to vector<8x128xf32>
    %460 = arith.mulf %458, %459 : vector<8x128xf32>
    %461 = arith.subf %455, %460 : vector<8x128xf32>
    %cst_107 = arith.constant 6.28318548 : f32
    %462 = vector.broadcast %cst_107 : f32 to vector<8x128xf32>
    %463 = arith.subf %462, %461 : vector<8x128xf32>
    %464 = arith.minimumf %461, %463 : vector<8x128xf32>
    %465 = arith.mulf %464, %464 : vector<8x128xf32>
    %466 = arith.addf %409, %465 : vector<8x128xf32>
    %467 = arith.subf %434, %15 : vector<8x128xf32>
    %468 = arith.subf %437, %17 : vector<8x128xf32>
    %469 = arith.mulf %467, %467 : vector<8x128xf32>
    %470 = arith.mulf %468, %468 : vector<8x128xf32>
    %471 = arith.addf %469, %470 : vector<8x128xf32>
    %472 = arith.cmpf olt, %471, %22 : vector<8x128xf32>
    %473 = math.rsqrt %471 : vector<8x128xf32>
    %cst_108 = arith.constant 0.000000e+00 : f32
    %474 = vector.broadcast %cst_108 : f32 to vector<8x128xf32>
    %475 = arith.select %472, %473, %474 : vector<8x128xi1>, vector<8x128xf32>
    %476 = arith.addf %419, %475 : vector<8x128xf32>
    %477 = arith.extui %472 : vector<8x128xi1> to vector<8x128xi32>
    %478 = arith.sitofp %477 : vector<8x128xi32> to vector<8x128xf32>
    %479 = arith.addf %422, %478 : vector<8x128xf32>
    %c8_i32 = arith.constant 8 : i32
    %c10 = arith.constant 10 : index
    %c0_109 = arith.constant 0 : index
    %c0_110 = arith.constant 0 : index
    %480 = vector.load %arg1[%c10, %c0_109, %c0_110] : memref<11x8x128xf32, #tpu.memory_space<vmem>>, vector<1x8x128xf32>
    %481 = vector.shape_cast %480 : vector<1x8x128xf32> to vector<8x128xf32>
    %482 = arith.subf %447, %481 : vector<8x128xf32>
    %483 = math.absf %482 : vector<8x128xf32>
    %484 = vector.shape_cast %454 : vector<8x128xf32> to vector<1x8x128xf32>
    %cst_111 = arith.constant dense<0.000000e+00> : vector<1xf32>
    %485 = vector.multi_reduction <add>, %484, %cst_111 [1, 2] : vector<1x8x128xf32> to vector<1xf32>
    %486 = vector.shape_cast %485 : vector<1xf32> to vector<1x1x1xf32>
    %487 = vector.extract %486[0, 0, 0] : f32 from vector<1x1x1xf32>
    %488 = vector.shape_cast %466 : vector<8x128xf32> to vector<1x8x128xf32>
    %cst_112 = arith.constant dense<0.000000e+00> : vector<1xf32>
    %489 = vector.multi_reduction <add>, %488, %cst_112 [1, 2] : vector<1x8x128xf32> to vector<1xf32>
    %490 = vector.shape_cast %489 : vector<1xf32> to vector<1x1x1xf32>
    %491 = vector.extract %490[0, 0, 0] : f32 from vector<1x1x1xf32>
    %492 = vector.shape_cast %483 : vector<8x128xf32> to vector<1x8x128xf32>
    %cst_113 = arith.constant dense<0.000000e+00> : vector<1xf32>
    %493 = vector.multi_reduction <add>, %492, %cst_113 [1, 2] : vector<1x8x128xf32> to vector<1xf32>
    %494 = vector.shape_cast %493 : vector<1xf32> to vector<1x1x1xf32>
    %495 = vector.extract %494[0, 0, 0] : f32 from vector<1x1x1xf32>
    %496 = vector.shape_cast %476 : vector<8x128xf32> to vector<1x8x128xf32>
    %cst_114 = arith.constant dense<0.000000e+00> : vector<1xf32>
    %497 = vector.multi_reduction <add>, %496, %cst_114 [1, 2] : vector<1x8x128xf32> to vector<1xf32>
    %498 = vector.shape_cast %497 : vector<1xf32> to vector<1x1x1xf32>
    %499 = vector.extract %498[0, 0, 0] : f32 from vector<1x1x1xf32>
    %500 = vector.shape_cast %479 : vector<8x128xf32> to vector<1x8x128xf32>
    %cst_115 = arith.constant dense<0.000000e+00> : vector<1xf32>
    %501 = vector.multi_reduction <add>, %500, %cst_115 [1, 2] : vector<1x8x128xf32> to vector<1xf32>
    %502 = vector.shape_cast %501 : vector<1xf32> to vector<1x1x1xf32>
    %503 = vector.extract %502[0, 0, 0] : f32 from vector<1x1x1xf32>
    %504 = tpu.iota {dimensions = array<i32: 0>} : vector<8x128xi32>
    %cst_116 = arith.constant 0.000000e+00 : f32
    %505 = vector.broadcast %cst_116 : f32 to vector<8x128xf32>
    %c0_i32_117 = arith.constant 0 : i32
    %506 = vector.broadcast %c0_i32_117 : i32 to vector<8x128xi32>
    %507 = arith.cmpi eq, %504, %506 : vector<8x128xi32>
    %508 = vector.broadcast %487 : f32 to vector<8x128xf32>
    %509 = arith.select %507, %508, %505 : vector<8x128xi1>, vector<8x128xf32>
    %c1_i32_118 = arith.constant 1 : i32
    %510 = vector.broadcast %c1_i32_118 : i32 to vector<8x128xi32>
    %511 = arith.cmpi eq, %504, %510 : vector<8x128xi32>
    %512 = vector.broadcast %491 : f32 to vector<8x128xf32>
    %513 = arith.select %511, %512, %509 : vector<8x128xi1>, vector<8x128xf32>
    %c4_i32_119 = arith.constant 4 : i32
    %514 = vector.broadcast %c4_i32_119 : i32 to vector<8x128xi32>
    %515 = arith.cmpi eq, %504, %514 : vector<8x128xi32>
    %516 = vector.broadcast %495 : f32 to vector<8x128xf32>
    %517 = arith.select %515, %516, %513 : vector<8x128xi1>, vector<8x128xf32>
    %c2_i32_120 = arith.constant 2 : i32
    %518 = vector.broadcast %c2_i32_120 : i32 to vector<8x128xi32>
    %519 = arith.cmpi eq, %504, %518 : vector<8x128xi32>
    %520 = vector.broadcast %499 : f32 to vector<8x128xf32>
    %521 = arith.select %519, %520, %517 : vector<8x128xi1>, vector<8x128xf32>
    %c3_i32_121 = arith.constant 3 : i32
    %522 = vector.broadcast %c3_i32_121 : i32 to vector<8x128xi32>
    %523 = arith.cmpi eq, %504, %522 : vector<8x128xi32>
    %524 = vector.broadcast %503 : f32 to vector<8x128xf32>
    %525 = arith.select %523, %524, %521 : vector<8x128xi1>, vector<8x128xf32>
    %c0_122 = arith.constant 0 : index
    %c0_123 = arith.constant 0 : index
    %c0_124 = arith.constant 0 : index
    %526 = vector.load %arg3[%c0_122, %c0_123, %c0_124] : memref<1x8x128xf32, #tpu.memory_space<vmem>>, vector<1x8x128xf32>
    %527 = vector.shape_cast %526 : vector<1x8x128xf32> to vector<8x128xf32>
    %528 = vector.shape_cast %525 : vector<8x128xf32> to vector<1x8x128xf32>
    tpu.vector_store %arg3[%c0_122, %c0_123, %c0_124], %528 {strides = array<i32>} : memref<1x8x128xf32, #tpu.memory_space<vmem>>, vector<1x8x128xf32>,
    return
  }
  func.func @transform_0(%arg0: i32) -> (i32, i32, i32) {
    %c0_i32 = arith.constant 0 : i32
    %c0_i32_0 = arith.constant 0 : i32
    %c0_i32_1 = arith.constant 0 : i32
    return %c0_i32, %arg0, %c0_i32_0 : i32, i32, i32
  }
  func.func @transform_1(%arg0: i32) -> (i32, i32, i32, i32) {
    %c0_i32 = arith.constant 0 : i32
    %c0_i32_0 = arith.constant 0 : i32
    %c0_i32_1 = arith.constant 0 : i32
    %c0_i32_2 = arith.constant 0 : i32
    return %c0_i32, %c0_i32_0, %arg0, %c0_i32_1 : i32, i32, i32, i32
  }
  func.func @transform_2(%arg0: i32) -> (i32, i32, i32) {
    %c0_i32 = arith.constant 0 : i32
    %c0_i32_0 = arith.constant 0 : i32
    %c0_i32_1 = arith.constant 0 : i32
    return %arg0, %c0_i32, %c0_i32_0 : i32, i32, i32
  }
}

</mosaic_0001>

<bundles_post_ra>
// kernel: tpu_custom_call.1
= control target key start
LH: loop header
LB: loop body
LE: loop exit
PB: predicated region body
PF: predicated region fallthrough
CT: control target
= control target key end

     0   :  { %7 = vsyncpa [#allocation3], 0  ;;  %s7487_s0 = inlined_call_operand.hbm [shape: f32[11,8,128], index: 0, kind: input, shape index: {}]   ;;  %s7488_s1 = inlined_call_operand.hbm [shape: f32[8,2,8,128], index: 1, kind: input, shape index: {}]   ;;  %s7489_s2 = inlined_call_operand.hbm [shape: f32[1,8,128], index: 2, kind: output, shape index: {}]  }
   0x1   :  { %8 = vsyncpa [#allocation6], 0 }
   0x2   :  { %9 = vsyncpa [#allocation4], 0  ;;  %s14_s11 = sshll.u32 %s7487_s0, 4  ;;  %s4794_s12 = smov [#allocation2]   ;;  %s15_s11 = int_to_ptr.hbm [resolvable:$true] %s14_s11 }
   0x3   :  { %s16_s13 = sshll.u32 %s4794_s12, 4  ;;  %s27_s16 = sshll.u32 %s7488_s1, 4  ;;  %s17_s13 = int_to_ptr.vmem [resolvable:$true] %s16_s13  ;;  %s28_s16 = int_to_ptr.hbm [resolvable:$true] %s27_s16 }
   0x4   :  { %s4795_s17 = smov 128   ;;  %s4796_s18 = smov 8  }
   0x5   :  { %22 = dma.hbm_to_vmem [thread:$0]  %s15_s11, 1408, %s17_s13, [#allocation3], %s4795_s17, %s4795_s17, %s4796_s18  }
   0x6   :  { %s4797_s19 = smov [#allocation5]  }
   0x7   :  { %s29_s20 = sshll.u32 %s4797_s19, 4  ;;  %s30_s20 = int_to_ptr.vmem [resolvable:$true] %s29_s20 }
   0x8   :  { %35 = dma.hbm_to_vmem [thread:$0]  %s28_s16, 2048, %s30_s20, [#allocation6], %s4795_s17, %s4795_s17, %s4796_s18  }
   0x9   :  { %4788 = dma.done.wait [#allocation3], 1408  }
   0xa   :  { %4789 = vsyncadd [#allocation3], 4294965888 }
   0xb   :  { %4790 = dma.done.wait [#allocation6], 2048  }
   0xc   :  { %4791 = vsyncadd [#allocation6], 4294965248  ;;  %v4828_v0 = vld [vmem:[#allocation2 + $0x18] sm:$0xff]  ;;  %v615_v2 = vld [vmem:[#allocation5 + $0x10] sm:$0xff]  ;;  %v7491_v51 = vmov 683565275  }
   0xd   :  { %v65_v1 = vld [vmem:[#allocation5] sm:$0xff]  ;;  %v563_v3 = vmul.f32 0.99, %v4828_v0  ;;  %v1114_v6 = vmul.f32 0.2, %v615_v2  ;;  %v4836_v11 = vld [vmem:[#allocation2 + $0x10] sm:$0xff] }
   0xe   :  { %v564_v4 = vmul.f32 0.2, %v65_v1  ;;  %v1165_v7 = vld [vmem:[#allocation5 + $0x20] sm:$0xff]  ;;  %v1715_v12 = vld [vmem:[#allocation5 + $0x30] sm:$0xff]  ;;  %v4838_v13 = vld [vmem:[#allocation5 + $0x8] sm:$0xff]  ;;  %v71_v15 = vand.u32 2139095040, %v4836_v11 }
   0xf   :  { %v1664_v10 = vmul.f32 0.2, %v1165_v7  ;;  %v68_v14 = vand.u32 2147483647, %v4836_v11  ;;  %v384_v17 = vand.u32 2139095040, %v4838_v13  ;;  %v2265_v22 = vld [vmem:[#allocation5 + $0x40] sm:$0xff] }
  0x10   :  { %v4831_v5 = vadd.f32 %v564_v4, %v563_v3  ;;  %v72_v18 = vshrl.u32 %v71_v15, 23  ;;  %v2214_v21 = vmul.f32 0.2, %v1715_v12  ;;  %v381_v23 = vand.u32 2147483647, %v4838_v13  ;;  %v2815_v28 = vld [vmem:[#allocation5 + $0x50] sm:$0xff] }
  0x11   :  { %v75_v19 = vand.u32 8388607, %v68_v14  ;;  %v385_v24 = vshrl.u32 %v384_v17, 23  ;;  %v2764_v30 = vmul.f32 0.2, %v2265_v22  ;;  %v3365_v31 = vld [vmem:[#allocation5 + $0x60] sm:$0xff] }
  0x12   :  { %v1113_v8 = vmul.f32 0.99, %v4831_v5  ;;  %v4549_v25 = vadd.s32 4294967169, %v72_v18  ;;  %v3915_v34 = vld [vmem:[#allocation5 + $0x70] sm:$0xff]  ;;  %v4856_v36 = vand.u32 8388607, %v381_v23 }
  0x13   :  { %v76_v26 = vor.u32 8388608, %v75_v19  ;;  %v4555_v29 = vadd.s32 4294967169, %v385_v24  ;;  %v3314_v38 = vmul.f32 0.2, %v2815_v28  ;;  %v3864_v40 = vmul.f32 0.2, %v3365_v31 }
  0x14   :  { %v4834_v9 = vadd.f32 %v1114_v6, %v1113_v8  ;;  %v78_v32 = vadd.s32 1, %v4549_v25  ;;  %v4414_v42 = vmul.f32 0.2, %v3915_v34  ;;  %v389_v49 = vor.u32 8388608, %v4856_v36  ;;  %s4538_s23 = sshll.u32 %s7489_s2, 4  ;;  %s4806_s25 = smov [#allocation7]   ;;  %s4539_s23 = int_to_ptr.hbm [resolvable:$true] %s4538_s23 }
  0x15   :  { %v4852_v35 = vshll.u32 %v76_v26, 8  ;;  %v391_v37 = vadd.s32 1, %v4555_v29  ;;  %v7500_v53 = vmov 2475754826   ;;  %v7498_v55 = vmov 2131351028  }
  0x16   :  { %v1663_v16 = vmul.f32 0.99, %v4834_v9  ;;  %vm79_vm0 = vcmp.gt.s32.totalorder %v78_v32, 0  ;;  %v7494_v58 = vmov 2102212464   ;;  %s4536_s26 = sshll.u32 %s4806_s25, 4  ;;  %s4537_s26 = int_to_ptr.vmem [resolvable:$true] %s4536_s26 }
  0x17   :  { %v80_v41 = vsel %vm79_vm0, %v78_v32, 0  ;;  %vm392_vm1 = vcmp.gt.s32.totalorder %v391_v37, 0  ;;  %v4862_v47 = vand.u32 65535, %v4852_v35  ;;  %v4865_v48 = vshrl.u32 %v4852_v35, 16 }
  0x18   :  { %v4846_v20 = vadd.f32 %v1664_v10, %v1663_v16  ;;  %v81_v43 = vshrl.u32 %v80_v41, 5  ;;  %v82_v44 = vand.u32 31, %v80_v41  ;;  %v393_v45 = vsel %vm392_vm1, %v391_v37, 0 }
  0x19   :  { %v7512_v60 = vmov 920167782   ;;  %v4874_v62 = vand.u32 31, %v393_v45  ;;  %v7510_v7 = vmov 1326507024  }
  0x1a   :  { %v2213_v27 = vmul.f32 0.99, %v4846_v20  ;;  %v83_v50 = vsub.s32 32, %v82_v44  ;;  %v85_v52 = vshll.u32 %v7491_v51, %v82_v44  ;;  %v88_v54 = vshll.u32 %v7500_v53, %v82_v44 }
  0x1b   :  { %v91_v56 = vshll.u32 %v7498_v55, %v82_v44  ;;  %v94_v59 = vshll.u32 %v7494_v58, %v82_v44  ;;  %v97_v61 = vshll.u32 %v7512_v60, %v82_v44  ;;  %vm100_vm2 = vcmp.lt.s32.totalorder %v81_v43, 1 }
  0x1c   :  { %v4850_v33 = vadd.f32 %v2214_v21, %v2213_v27  ;;  %v86_v63 = vshrl.u32 %v7500_v53, %v83_v50  ;;  %v89_v1 = vshrl.u32 %v7498_v55, %v83_v50  ;;  %v92_v2 = vshrl.u32 %v7494_v58, %v83_v50 }
  0x1d   :  { %v84_v4 = vshrl.u32 %v7491_v51, %v83_v50  ;;  %v95_v6 = vshrl.u32 %v7512_v60, %v83_v50  ;;  %v98_v8 = vshrl.u32 %v7510_v7, %v83_v50  ;;  %vm102_vm3 = vcmp.lt.s32.totalorder %v81_v43, 3 }
  0x1e   :  { %v2763_v39 = vmul.f32 0.99, %v4850_v33  ;;  %v87_v10 = vor.u32 %v86_v63, %v85_v52  ;;  %v90_v12 = vor.u32 %v89_v1, %v88_v54  ;;  %v93_v15 = vor.u32 %v92_v2, %v91_v56 }
  0x1f   :  { %v96_v17 = vor.u32 %v95_v6, %v94_v59  ;;  %v99_v18 = vor.u32 %v98_v8, %v97_v61  ;;  %vm103_vm4 = vcmp.lt.s32.totalorder %v81_v43, 4  ;;  %vm101_vm5 = vcmp.lt.s32.totalorder %v81_v43, 2 }
  0x20   :  { %v4859_v46 = vadd.f32 %v2764_v30, %v2763_v39  ;;  %v105_v19 = vsel %vm103_vm4, %v93_v15, 2102212464  ;;  %v108_v21 = vsel %vm100_vm2, %v87_v10, %v90_v12  ;;  %v112_v22 = vsel %vm100_vm2, %v90_v12, %v93_v15  ;;  %v4465_v39 = vld [vmem:[#allocation2 + $0x50] sm:$0xff] }
  0x21   :  { %v104_v25 = vsel %vm100_vm2, %v84_v4, %v87_v10  ;;  %v109_v26 = vsel %vm103_vm4, %v96_v17, 920167782  ;;  %v113_v27 = vsel %vm103_vm4, %v99_v18, 1326507024  ;;  %v106_v28 = vsel %vm102_vm3, %v90_v12, %v105_v19 }
  0x22   :  { %v3313_v57 = vmul.f32 0.99, %v4859_v46  ;;  %v110_v29 = vsel %vm102_vm3, %v93_v15, %v109_v26  ;;  %v114_v30 = vsel %vm102_vm3, %v96_v17, %v113_v27  ;;  %v4891_v31 = vsub.s32 32, %v4874_v62 }
  0x23   :  { %v111_v34 = vsel %vm101_vm5, %v108_v21, %v110_v29  ;;  %v115_v37 = vsel %vm101_vm5, %v112_v22, %v114_v30  ;;  %v4899_v54 = vsel %vm101_vm5, %v104_v25, %v106_v28  ;;  %v398_v56 = vshll.u32 %v7491_v51, %v4874_v62 }
  0x24   :  { %v4879_v3 = vadd.f32 %v3314_v38, %v3313_v57  ;;  %v4896_v38 = vshrl.u32 %v393_v45, 5  ;;  %v120_v41 = vshrl.u32 %v115_v37, 16  ;;  %v141_v44 = vand.u32 65535, %v111_v34 }
  0x25   :  { %v142_v50 = vshrl.u32 %v111_v34, 16  ;;  %v399_v57 = vshrl.u32 %v7500_v53, %v4891_v31  ;;  %v7502_v22 = vmov 0  }
  0x26   :  { %v3863_v16 = vmul.f32 0.99, %v4879_v3  ;;  %v122_v45 = vmul.u32 %v120_v41, %v4862_v47  ;;  %v124_v63 = vmul.u32 %v120_v41, %v4865_v48  ;;  %v145_v2 = vmul.u32 %v141_v44, %v4865_v48 }
  0x27   :  { %v144_v43 = vmul.u32 %v142_v50, %v4862_v47  ;;  %v146_v15 = vmul.u32 %v142_v50, %v4865_v48  ;;  %v4914_v26 = vor.u32 %v399_v57, %v398_v56  ;;  %v407_v50 = vshll.u32 %v7494_v58, %v4874_v62 }
  0x28   :  { %v4887_v24 = vadd.f32 %v3864_v40, %v3863_v16  ;;  %v119_v40 = vand.u32 65535, %v115_v37  ;;  %v125_v4 = vshll.u32 %v122_v45, 16  ;;  %v126_v6 = vshrl.u32 %v122_v45, 16 }
  0x29   :  { %v147_v16 = vshll.u32 %v144_v43, 16  ;;  %v148_v17 = vshrl.u32 %v144_v43, 16  ;;  %v149_v19 = vshll.u32 %v145_v2, 16  ;;  %v150_v21 = vshrl.u32 %v145_v2, 16 }
  0x2a   :  { %7522 = vst [vmem:[#allocation11_spill] sm:$0xff] %v4887_v24  ;;  %v4413_v32 = vmul.f32 0.99, %v4887_v24  ;;  %v121_v59 = vmul.u32 %v119_v40, %v4862_v47  ;;  %v123_v61 = vmul.u32 %v119_v40, %v4865_v48  ;;  %v401_v48 = vshll.u32 %v7500_v53, %v4874_v62 }
  0x2b   :  { %v404_v40 = vshll.u32 %v7498_v55, %v4874_v62  ;;  %v411_v45 = vshrl.u32 %v7510_v7, %v4891_v31  ;;  %vm413_vm10 = vcmp.lt.s32.totalorder %v4896_v38, 1  ;;  %vm415_vm11 = vcmp.lt.s32.totalorder %v4896_v38, 3 }
  0x2c   :  { %v4415_v52 = vadd.f32 %v4414_v42, %v4413_v32  ;;  %v143_v42 = vmul.u32 %v141_v44, %v4862_v47  ;;  %v127_v8 = vshll.u32 %v123_v61, 16  ;;  %v128_v10 = vshrl.u32 %v123_v61, 16 }
  0x2d   :  { %vm129_vm6 = vc.u32 %v121_v59, %v125_v4  ;;  %v131_v18 = vadd.s32 %v125_v4, %v121_v59  ;;  %v405_v44 = vshrl.u32 %v7494_v58, %v4891_v31  ;;  %v410_v59 = vshll.u32 %v7512_v60, %v4874_v62 }
  0x2e   :  { %v4466_v1 = vsub.f32 %v4415_v52, %v4465_v39  ;;  %v130_v25 = vsel %vm129_vm6, 1, %v7502_v22  ;;  %vm151_vm7 = vc.u32 %v143_v42, %v147_v16  ;;  %v153_v47 = vadd.s32 %v147_v16, %v143_v42  ;;  %v4938_v42 = vld [vmem:[#allocation5 + $0x18] sm:$0xff] }
  0x2f   :  { %v132_v27 = vadd.s32 %v130_v25, %v124_v63  ;;  %vm133_vm8 = vc.u32 %v131_v18, %v127_v8  ;;  %v152_v28 = vsel %vm151_vm7, 1, %v7502_v22  ;;  %v402_v39 = vshrl.u32 %v7498_v55, %v4891_v31 }
  0x30   :  { %v4467_v12 = vand.u32 2147483647, %v4466_v1  ;;  %v134_v29 = vsel %vm133_vm8, 1, %v7502_v22  ;;  %v154_v30 = vadd.s32 %v152_v28, %v146_v15  ;;  %vm155_vm9 = vc.u32 %v153_v47, %v149_v19 }
  0x31   :  { %v4920_v32 = vadd.s32 %v153_v47, %v149_v19  ;;  %v136_v34 = vadd.s32 %v134_v29, %v132_v27  ;;  %v156_v37 = vsel %vm155_vm9, 1, %v7502_v22  ;;  %v408_v52 = vshrl.u32 %v7512_v60, %v4891_v31 }
  0x32   :  { %4486 = vadd.xlane.f32.xlu1 %v4467_v12  ;;  %v158_v41 = vadd.s32 %v156_v37, %v154_v30  ;;  %v403_v57 = vor.u32 %v402_v39, %v401_v48  ;;  %v406_v63 = vor.u32 %v405_v44, %v404_v40  ;;  %v412_v2 = vor.u32 %v411_v45, %v410_v59 }
  0x33   :  { %v137_v56 = vadd.s32 %v136_v34, %v126_v6  ;;  %v409_v1 = vor.u32 %v408_v52, %v407_v50  ;;  %v4945_v4 = vshll.u32 %v389_v49, 8  ;;  %vm414_vm12 = vcmp.lt.s32.totalorder %v4896_v38, 2 }
  0x34   :  { %v159_v61 = vadd.s32 %v158_v41, %v148_v17  ;;  %vm416_vm13 = vcmp.lt.s32.totalorder %v4896_v38, 4  ;;  %v421_v6 = vsel %vm413_vm10, %v4914_v26, %v403_v57  ;;  %v161_v8 = vmul.u32 %v4852_v35, %v4899_v54 }
  0x35   :  { %v4940_v43 = vadd.s32 %v137_v56, %v128_v10  ;;  %v422_v36 = vsel %vm416_vm13, %v409_v1, 920167782  ;;  %v934_v49 = vand.u32 2139095040, %v4938_v42  ;;  %v425_v15 = vsel %vm413_vm10, %v403_v57, %v406_v63 }
  0x36   :  { %v160_v62 = vadd.s32 %v159_v61, %v150_v21  ;;  %v423_v12 = vsel %vm415_vm11, %v406_v63, %v422_v36  ;;  %v426_v35 = vsel %vm416_vm13, %v412_v2, 1326507024  ;;  %v430_v54 = vand.u32 65535, %v4945_v4 }
  0x37   :  { %vm163_vm14 = vc.u32 %v4940_v43, %v4920_v32  ;;  %v424_v16 = vsel %vm414_vm12, %v421_v6, %v423_v12  ;;  %v431_v17 = vshrl.u32 %v4945_v4, 16  ;;  %v427_v19 = vsel %vm415_vm11, %v409_v1, %v426_v35 }
  0x38   :  { %v164_v10 = vadd.s32 1, %v160_v62  ;;  %v454_v21 = vand.u32 65535, %v424_v16  ;;  %v428_v47 = vsel %vm414_vm12, %v425_v15, %v427_v19  ;;  %v455_v27 = vshrl.u32 %v424_v16, 16 }
  0x39   :  { %v935_v28 = vshrl.u32 %v934_v49, 23  ;;  %v432_v48 = vand.u32 65535, %v428_v47  ;;  %v433_v29 = vshrl.u32 %v428_v47, 16  ;;  %v397_v37 = vshrl.u32 %v7491_v51, %v4891_v31 }
  0x3a   :  { %v165_v18 = vsel %vm163_vm14, %v164_v10, %v160_v62  ;;  %v458_v30 = vmul.u32 %v454_v21, %v431_v17  ;;  %v456_v39 = vmul.u32 %v454_v21, %v430_v54  ;;  %v457_v40 = vmul.u32 %v455_v27, %v430_v54 }
  0x3b   :  { %v166_v25 = vadd.s32 %v165_v18, %v161_v8  ;;  %v418_v41 = vsel %vm416_vm13, %v406_v63, 2102212464  ;;  %v434_v44 = vmul.u32 %v432_v48, %v430_v54  ;;  %v435_v50 = vmul.u32 %v433_v29, %v430_v54 }
  0x3c   :  { %v436_v52 = vmul.u32 %v432_v48, %v431_v17  ;;  %v459_v59 = vmul.u32 %v455_v27, %v431_v17  ;;  %v460_v45 = vshll.u32 %v457_v40, 16  ;;  %v4565_v61 = vadd.s32 4294967169, %v935_v28 }
  0x3d   :  { %v167_v34 = vadd.s32 536870912, %v166_v25  ;;  %v437_v1 = vmul.u32 %v433_v29, %v431_v17  ;;  %v438_v2 = vshll.u32 %v435_v50, 16  ;;  %v462_v6 = vshll.u32 %v458_v30, 16 }
  0x3e   :  { %v440_v62 = vshll.u32 %v436_v52, 16  ;;  %v417_v31 = vsel %vm413_vm10, %v397_v37, %v4914_v26  ;;  %v419_v63 = vsel %vm415_vm11, %v403_v57, %v418_v41  ;;  %vm464_vm15 = vc.u32 %v456_v39, %v460_v45 }
  0x3f   :  { %v4977_v56 = vshrl.u32 %v167_v34, 30  ;;  %vm442_vm0 = vc.u32 %v434_v44, %v438_v2  ;;  %v444_v36 = vadd.s32 %v438_v2, %v434_v44  ;;  %v465_v49 = vsel %vm464_vm15, 1, %v7502_v22 }
  0x40   :  { %v466_v10 = vadd.s32 %v460_v45, %v456_v39  ;;  %v443_v15 = vsel %vm442_vm0, 1, %v7502_v22  ;;  %v461_v16 = vshrl.u32 %v457_v40, 16  ;;  %v467_v35 = vadd.s32 %v465_v49, %v459_v59 }
  0x41   :  { %v169_v8 = vshll.u32 %v4977_v56, 30  ;;  %v439_v54 = vshrl.u32 %v435_v50, 16  ;;  %v445_v17 = vadd.s32 %v443_v15, %v437_v1  ;;  %vm446_vm1 = vc.u32 %v444_v36, %v440_v62 }
  0x42   :  { %vm468_vm2 = vc.u32 %v466_v10, %v462_v6  ;;  %v447_v18 = vsel %vm446_vm1, 1, %v7502_v22  ;;  %v441_v19 = vshrl.u32 %v436_v52, 16  ;;  %v463_v47 = vshrl.u32 %v458_v30, 16 }
  0x43   :  { %v170_v12 = vsub.s32 %v166_v25, %v169_v8  ;;  %v469_v57 = vsel %vm468_vm2, 1, %v7502_v22  ;;  %v449_v21 = vadd.s32 %v447_v18, %v445_v17  ;;  %v941_v25 = vadd.s32 1, %v4565_v61 }
  0x44   :  { %v471_v27 = vadd.s32 %v469_v57, %v467_v35  ;;  %v420_v37 = vsel %vm414_vm12, %v417_v31, %v419_v63  ;;  %v4991_v39 = vadd.s32 %v466_v10, %v462_v6  ;;  %v162_v30 = vadd.s32 %v4920_v32, %v4940_v43 }
  0x45   :  { %vm171_vm3 = vcmp.lt.s32.totalorder %v170_v12, 0  ;;  %v172_v26 = vsub.s32 0, %v170_v12  ;;  %v450_v29 = vadd.s32 %v449_v21, %v439_v54  ;;  %vm942_vm4 = vcmp.gt.s32.totalorder %v941_v25, 0 }
  0x46   :  { %v472_v34 = vadd.s32 %v471_v27, %v461_v16  ;;  %v943_v50 = vsel %vm942_vm4, %v941_v25, 0  ;;  %v474_v52 = vmul.u32 %v4945_v4, %v420_v37  ;;  %v931_v59 = vand.u32 2147483647, %v4938_v42 }
  0x47   :  { %v173_v28 = vsel %vm171_vm3, %v172_v26, %v170_v12  ;;  %v4993_v41 = vadd.s32 %v450_v29, %v441_v19  ;;  %v945_v61 = vand.u32 31, %v943_v50  ;;  %v5007_v54 = vshrl.u32 %v943_v50, 5 }
  0x48   :  { %v174_v48 = vclz %v173_v28  ;;  %v473_v44 = vadd.s32 %v472_v34, %v463_v47  ;;  %v938_v32 = vand.u32 8388607, %v931_v59  ;;  %vm5024_vm7 = vcmp.le.f32.partialorder %v68_v14, 0.7853982 }
  0x49   :  { %vm476_vm6 = vc.u32 %v4993_v41, %v4991_v39  ;;  %v5003_v43 = vsub.s32 32, %v945_v61  ;;  %v951_v57 = vshll.u32 %v7500_v53, %v945_v61  ;;  %v960_v19 = vshll.u32 %v7512_v60, %v945_v61 }
  0x4a   :  { %v4550_v40 = vadd.s32 4294967294, %v174_v48  ;;  %v477_v38 = vadd.s32 1, %v473_v44  ;;  %v939_v35 = vor.u32 8388608, %v938_v32  ;;  %v954_v47 = vshll.u32 %v7498_v55, %v945_v61 }
  0x4b   :  { %v958_v17 = vshrl.u32 %v7512_v60, %v5003_v43  ;;  %v952_v21 = vshrl.u32 %v7498_v55, %v5003_v43  ;;  %v955_v27 = vshrl.u32 %v7494_v58, %v5003_v43  ;;  %v961_v28 = vshrl.u32 %v7510_v7, %v5003_v43 }
  0x4c   :  { %vm4551_vm5 = vcmp.lt.s32.totalorder %v4550_v40, 0  ;;  %v478_v6 = vsel %vm476_vm6, %v477_v38, %v473_v44  ;;  %vm70_vm8 = vcmp.lt.s32.totalorder %v4836_v11, 0  ;;  %v192_v34 = vsub.s32 4, %v4977_v56 }
  0x4d   :  { %v177_v45 = vsel %vm4551_vm5, 0, %v4550_v40  ;;  %v479_v63 = vadd.s32 %v478_v6, %v474_v52  ;;  %v948_v37 = vshll.u32 %v7491_v51, %v945_v61  ;;  %v949_v40 = vshrl.u32 %v7500_v53, %v5003_v43 }
  0x4e   :  { %v178_v1 = vsub.s32 32, %v177_v45  ;;  %v179_v2 = vshll.u32 %v170_v12, %v177_v45  ;;  %v182_v62 = vsub.s32 4294967266, %v177_v45  ;;  %v957_v12 = vshll.u32 %v7494_v58, %v945_v61 }
  0x4f   :  { %v480_v49 = vadd.s32 536870912, %v479_v63  ;;  %v962_v52 = vor.u32 %v961_v28, %v960_v19  ;;  %v5033_v14 = vor.u32 %v952_v21, %v951_v57  ;;  %v5035_v45 = vor.u32 %v955_v27, %v954_v47 }
  0x50   :  { %v180_v8 = vshrl.u32 %v162_v30, %v178_v1  ;;  %v183_v31 = vadd.s32 127, %v182_v62  ;;  %v959_v44 = vor.u32 %v958_v17, %v957_v12  ;;  %vm966_vm10 = vcmp.lt.s32.totalorder %v5007_v54, 4 }
  0x51   :  { %v5005_v16 = vshrl.u32 %v480_v49, 30  ;;  %v5038_v38 = vshll.u32 %v939_v35, 8  ;;  %vm963_vm11 = vcmp.lt.s32.totalorder %v5007_v54, 1  ;;  %vm965_vm12 = vcmp.lt.s32.totalorder %v5007_v54, 3 }
  0x52   :  { %v181_v4 = vor.u32 %v180_v8, %v179_v2  ;;  %v184_v36 = vshll.u32 %v183_v31, 23  ;;  %v193_v2 = vsel %vm70_vm8, %v192_v34, %v4977_v56  ;;  %v5052_v8 = vor.u32 %v949_v40, %v948_v37 }
  0x53   :  { %v482_v18 = vshll.u32 %v5005_v16, 30  ;;  %v976_v32 = vsel %vm966_vm10, %v962_v52, 1326507024  ;;  %vm964_vm13 = vcmp.lt.s32.totalorder %v5007_v54, 2  ;;  %v975_v56 = vsel %vm963_vm11, %v5033_v14, %v5035_v45 }
  0x54   :  { %v185_v10 = vor.u32 4788187, %v184_v36  ;;  %v188_v15 = vcvt.s32.f32 %v181_v4  ;;  %v977_v36 = vsel %vm965_vm12, %v959_v44, %v976_v32  ;;  %v195_v49 = vsel %vm5024_vm7, 0, %v193_v2 }
  0x55   :  { %v483_v29 = vsub.s32 %v479_v63, %v482_v18  ;;  %v972_v63 = vsel %vm966_vm10, %v959_v44, 920167782  ;;  %v5070_v35 = vand.u32 65535, %v5038_v38  ;;  %v475_v12 = vadd.s32 %v4991_v39, %v4993_v41 }
  0x56   :  { %v186_v26 = vand.u32 2147483647, %v185_v10  ;;  %v971_v17 = vsel %vm963_vm11, %v5052_v8, %v5033_v14  ;;  %v978_v21 = vsel %vm964_vm13, %v975_v56, %v977_v36  ;;  %v5084_v39 = vshrl.u32 %v5038_v38, 16 }
  0x57   :  { %vm484_vm9 = vcmp.lt.s32.totalorder %v483_v29, 0  ;;  %v485_v30 = vsub.s32 0, %v483_v29  ;;  %v982_v34 = vand.u32 65535, %v978_v21  ;;  %v983_v44 = vshrl.u32 %v978_v21, 16 }
  0x58   :  { %v189_v48 = vmul.f32 %v188_v15, %v186_v26  ;;  %v973_v26 = vsel %vm965_vm12, %v5035_v45, %v972_v63  ;;  %v5090_v52 = vand.u32 3, %v195_v49  ;;  %vm383_vm15 = vcmp.lt.s32.totalorder %v4838_v13, 0 }
  0x59   :  { %v486_v61 = vsel %vm484_vm9, %v485_v30, %v483_v29  ;;  %vm5095_vm0 = vcmp.le.f32.partialorder %v381_v23, 0.7853982  ;;  %v984_v32 = vmul.u32 %v982_v34, %v5070_v35  ;;  %v5103_v56 = vmul.u32 %v982_v34, %v5084_v39 }
  0x5a   :  { %v190_v50 = vxor.u32 2147483648, %v189_v48  ;;  %v487_v6 = vclz %v486_v61  ;;  %v505_v23 = vsub.s32 4, %v5005_v16  ;;  %vm214_vm1 = vcmp.eq.s32.totalorder %v5090_v52, 0 }
  0x5b   :  { %vm217_vm3 = vcmp.eq.s32.totalorder %v5090_v52, 2  ;;  %vm213_vm4 = vcmp.lt.s32.totalorder %v5090_v52, 2  ;;  %vm211_vm9 = vweird.f32 %v4836_v11 }
  0x5c   :  { %v191_v1 = vsel %vm70_vm8, %v190_v50, %v189_v48  ;;  %v4556_v4 = vadd.s32 4294967294, %v487_v6  ;;  %v5088_v48 = vsel %vm964_vm13, %v971_v17, %v973_v26 }
  0x5d   :  { %v5050_v62 = vsel %vm5024_vm7, %v4836_v11, %v191_v1  ;;  %v1005_v6 = vshrl.u32 %v5088_v48, 16  ;;  %v1004_v26 = vand.u32 65535, %v5088_v48  ;;  %v506_v48 = vsel %vm383_vm15, %v505_v23, %v5005_v16 }
  0x5e   :  { %v196_v31 = vmul.f32 %v5050_v62, %v5050_v62  ;;  %vm4557_vm14 = vcmp.lt.s32.totalorder %v4556_v4, 0  ;;  %v991_v23 = vshrl.u32 %v5103_v56, 16 }
  0x5f   :  { %v490_v19 = vsel %vm4557_vm14, 0, %v4556_v4  ;;  %v985_v4 = vmul.u32 %v983_v44, %v5070_v35  ;;  %v1006_v16 = vmul.u32 %v1004_v26, %v5070_v35 }
  0x60   :  { %v197_v10 = vmul.f32 -0.001358992, %v196_v31  ;;  %v204_v15 = vmul.f32 -0.00019511016, %v196_v31  ;;  %v491_v47 = vsub.s32 32, %v490_v19  ;;  %v492_v27 = vshll.u32 %v483_v29, %v490_v19 }
  0x61   :  { %v495_v28 = vsub.s32 4294967266, %v490_v19  ;;  %v368_v29 = vadd.s32 3, %v195_v49  ;;  %v988_v17 = vshll.u32 %v985_v4, 16  ;;  %v990_v19 = vshll.u32 %v5103_v56, 16 }
  0x62   :  { %v198_v18 = vadd.f32 0.041655596, %v197_v10  ;;  %v205_v57 = vadd.f32 0.008332121, %v204_v15  ;;  %v493_v37 = vshrl.u32 %v475_v12, %v491_v47  ;;  %v987_v12 = vmul.u32 %v983_v44, %v5084_v39 }
  0x63   :  { %v496_v40 = vadd.s32 127, %v495_v28  ;;  %vm992_vm2 = vc.u32 %v984_v32, %v988_v17  ;;  %v994_v21 = vadd.s32 %v988_v17, %v984_v32  ;;  %v5115_v47 = vmul.u32 %v1005_v6, %v5070_v35 }
  0x64   :  { %v199_v41 = vmul.f32 %v198_v18, %v196_v31  ;;  %v206_v25 = vmul.f32 %v205_v57, %v196_v31  ;;  %v494_v61 = vor.u32 %v493_v37, %v492_v27  ;;  %v5109_v18 = vand.u32 3, %v368_v29 }
  0x65   :  { %v497_v2 = vshll.u32 %v496_v40, 23  ;;  %vm996_vm7 = vc.u32 %v994_v21, %v990_v19  ;;  %v1010_v44 = vshll.u32 %v5115_v47, 16  ;;  %v508_v29 = vsel %vm5095_vm0, 0, %v506_v48 }
  0x66   :  { %v200_v50 = vadd.f32 -0.4999988, %v199_v41  ;;  %v207_v30 = vadd.f32 -0.16666654, %v206_v25  ;;  %v501_v10 = vcvt.s32.f32 %v494_v61  ;;  %v993_v41 = vsel %vm992_vm2, 1, %v7502_v22 }
  0x67   :  { %v498_v49 = vor.u32 4788187, %v497_v2  ;;  %v995_v34 = vadd.s32 %v993_v41, %v987_v12  ;;  %vm371_vm5 = vcmp.eq.s32.totalorder %v5109_v18, 0  ;;  %vm374_vm6 = vcmp.eq.s32.totalorder %v5109_v18, 2  ;;  %v5140_v2 = vld [vmem:[#allocation5 + $0x28] sm:$0xff] }
  0x68   :  { %v208_v63 = vmul.f32 %v207_v30, %v196_v31  ;;  %v201_v36 = vmul.f32 %v200_v50, %v196_v31  ;;  %v947_v31 = vshrl.u32 %v7491_v51, %v5003_v43  ;;  %v5124_v43 = vmul.u32 %v1004_v26, %v5084_v39 }
  0x69   :  { %v499_v57 = vand.u32 2147483647, %v498_v49  ;;  %v997_v40 = vsel %vm996_vm7, 1, %v7502_v22  ;;  %vm370_vm8 = vcmp.lt.s32.totalorder %v5109_v18, 2  ;;  %v989_v61 = vshrl.u32 %v985_v4, 16 }
  0x6a   :  { %v209_v15 = vadd.f32 1.0, %v208_v63  ;;  %v202_v27 = vadd.f32 1.0, %v201_v36  ;;  %v999_v35 = vadd.s32 %v997_v40, %v995_v34  ;;  %v1012_v32 = vshll.u32 %v5124_v43, 16 }
  0x6b   :  { %v502_v28 = vmul.f32 %v501_v10, %v499_v57  ;;  %v967_v49 = vsel %vm963_vm11, %v947_v31, %v5052_v8  ;;  %v1009_v10 = vmul.u32 %v1005_v6, %v5084_v39  ;;  %v1016_v1 = vadd.s32 %v1010_v44, %v1006_v16 }
  0x6c   :  { %v210_v25 = vmul.f32 %v209_v15, %v5050_v62  ;;  %v968_v62 = vsel %vm966_vm10, %v5035_v45, 2102212464  ;;  %v218_v50 = vxor.u32 2147483648, %v202_v27  ;;  %vm1014_vm10 = vc.u32 %v1006_v16, %v1010_v44 }
  0x6d   :  { %v503_v37 = vxor.u32 2147483648, %v502_v28  ;;  %v969_v4 = vsel %vm965_vm12, %v5033_v14, %v968_v62  ;;  %v1484_v15 = vand.u32 2139095040, %v5140_v2  ;;  %v1011_v57 = vshrl.u32 %v5115_v47, 16 }
  0x6e   :  { %v215_v63 = vxor.u32 2147483648, %v210_v25  ;;  %v219_v12 = vsel %vm217_vm3, %v218_v50, %v210_v25  ;;  %v1000_v19 = vadd.s32 %v999_v35, %v989_v61  ;;  %v1015_v14 = vsel %vm1014_vm10, 1, %v7502_v22 }
  0x6f   :  { %v504_v30 = vsel %vm383_vm15, %v503_v37, %v502_v28  ;;  %vm1018_vm11 = vc.u32 %v1016_v1, %v1012_v32  ;;  %v1017_v56 = vadd.s32 %v1015_v14, %v1009_v10  ;;  %v376_v28 = vsel %vm374_vm6, %v218_v50, %v210_v25  ;;  %v46_v14 = vld [vmem:[#allocation2 + $0x8] sm:$0xff] }
  0x70   :  { %v507_v45 = vsel %vm5095_vm0, %v4838_v13, %v504_v30  ;;  %v216_v8 = vsel %vm214_vm1, %v202_v27, %v215_v63  ;;  %v1019_v31 = vsel %vm1018_vm11, 1, %v7502_v22  ;;  %v373_v21 = vsel %vm371_vm5, %v202_v27, %v215_v63 }
  0x71   :  { %v509_v36 = vmul.f32 %v507_v45, %v507_v45  ;;  %v7490_v47 = vand.u32 2147483647, %v5140_v2  ;;  %v1485_v41 = vshrl.u32 %v1484_v15, 23  ;;  %v1013_v37 = vshrl.u32 %v5124_v43, 16 }
  0x72   :  { %v1021_v62 = vadd.s32 %v1019_v31, %v1017_v56  ;;  %v220_v40 = vsel %vm213_vm4, %v216_v8, %v219_v12  ;;  %v970_v16 = vsel %vm964_vm13, %v967_v49, %v969_v4  ;;  %v5173_v44 = vadd.s32 %v1000_v19, %v991_v23  ;;  %v44_v19 = vld [vmem:[#allocation2] sm:$0xff] }
  0x73   :  { %v510_v17 = vmul.f32 -0.001358992, %v509_v36  ;;  %v517_v26 = vmul.f32 -0.00019511016, %v509_v36  ;;  %v4575_v27 = vadd.s32 4294967169, %v1485_v41  ;;  %v5175_v25 = vadd.s32 %v1016_v1, %v1012_v32 }
  0x74   :  { %v1022_v50 = vadd.s32 %v1021_v62, %v1011_v57  ;;  %v377_v63 = vsel %vm370_vm8, %v373_v21, %v376_v28  ;;  %v525_v35 = vand.u32 3, %v508_v29  ;;  %v1488_v43 = vand.u32 8388607, %v7490_v47  ;;  %v52_v21 = vld [vmem:[#allocation2 + $0x20] sm:$0xff]  ;;  %v54_v28 = vld [vmem:[#allocation2 + $0x28] sm:$0xff] }
  0x75   :  { %v511_v39 = vadd.f32 0.041655596, %v510_v17  ;;  %v518_v6 = vadd.f32 0.008332121, %v517_v26  ;;  %v1491_v52 = vadd.s32 1, %v4575_v27  ;;  %v221_v23 = vsel %vm211_vm9, nan, %v220_v40 }
  0x76   :  { %v5182_v10 = vmul.f32 0.2, %v4828_v0  ;;  %v1023_v4 = vadd.s32 %v1022_v50, %v1013_v37  ;;  %v526_v32 = vadd.s32 3, %v508_v29  ;;  %v1024_v1 = vmul.u32 %v5038_v38, %v970_v16 }
  0x77   :  { %v512_v48 = vmul.f32 %v511_v39, %v509_v36  ;;  %v519_v34 = vmul.f32 %v518_v6, %v509_v36  ;;  %vm1492_vm12 = vcmp.gt.s32.totalorder %v1491_v52, 0  ;;  %v378_v18 = vsel %vm211_vm9, nan, %v377_v63 }
  0x78   :  { %vm1026_vm13 = vc.u32 %v5173_v44, %v5175_v25  ;;  %vm532_vm14 = vcmp.eq.s32.totalorder %v525_v35, 2  ;;  %v1027_v0 = vadd.s32 1, %v1023_v4  ;;  %v1493_v17 = vsel %vm1492_vm12, %v1491_v52, 0 }
  0x79   :  { %v513_v30 = vadd.f32 -0.4999988, %v512_v48  ;;  %v520_v61 = vadd.f32 -0.16666654, %v519_v34  ;;  %vm529_vm15 = vcmp.eq.s32.totalorder %v525_v35, 0  ;;  %v222_v38 = vmul.f32 %v221_v23, %v5182_v10 }
  0x7a   :  { %v379_v11 = vmul.f32 %v378_v18, %v5182_v10  ;;  %v1028_v57 = vsel %vm1026_vm13, %v1027_v0, %v1023_v4  ;;  %v1495_v8 = vand.u32 31, %v1493_v17  ;;  %v5198_v39 = vand.u32 3, %v526_v32 }
  0x7b   :  { %v514_v54 = vmul.f32 %v513_v30, %v509_v36  ;;  %v521_v49 = vmul.f32 %v520_v61, %v509_v36  ;;  %v1489_v36 = vor.u32 8388608, %v1488_v43  ;;  %vm528_vm0 = vcmp.lt.s32.totalorder %v525_v35, 2 }
  0x7c   :  { %v1029_v56 = vadd.s32 %v1028_v57, %v1024_v1  ;;  %v5209_v48 = vsub.s32 32, %v1495_v8  ;;  %v5211_v34 = vadd.f32 %v222_v38, %v44_v19  ;;  %v5213_v37 = vadd.f32 %v379_v11, %v46_v14 }
  0x7d   :  { %v5189_v15 = vadd.f32 1.0, %v514_v54  ;;  %v522_v12 = vadd.f32 1.0, %v521_v49  ;;  %v5205_v31 = vshll.u32 %v1489_v36, 8  ;;  %vm537_vm1 = vcmp.eq.s32.totalorder %v5198_v39, 0 }
  0x7e   :  { %vm540_vm2 = vcmp.eq.s32.totalorder %v5198_v39, 2  ;;  %v566_v40 = vsub.f32 %v5211_v34, %v52_v21  ;;  %v567_v16 = vsub.f32 %v5213_v37, %v54_v28  ;;  %v1030_v27 = vadd.s32 536870912, %v1029_v56 }
  0x7f   :  { %v5193_v26 = vmul.f32 %v522_v12, %v507_v45  ;;  %v533_v29 = vxor.u32 2147483648, %v5189_v15  ;;  %v5220_v30 = vand.u32 65535, %v5205_v31  ;;  %v1501_v61 = vshll.u32 %v7500_v53, %v1495_v8 }
  0x80   :  { %v1502_v50 = vshrl.u32 %v7498_v55, %v5209_v48  ;;  %v1504_v63 = vshll.u32 %v7498_v55, %v1495_v8  ;;  %v1505_v35 = vshrl.u32 %v7494_v58, %v5209_v48  ;;  %vm536_vm3 = vcmp.lt.s32.totalorder %v5198_v39, 2 }
  0x81   :  { %v530_v6 = vxor.u32 2147483648, %v5193_v26  ;;  %v534_v45 = vsel %vm532_vm14, %v533_v29, %v5193_v26  ;;  %v5229_v43 = vshrl.u32 %v1030_v27, 30  ;;  %v5231_v52 = vshrl.u32 %v1493_v17, 5 }
  0x82   :  { %v1498_v54 = vshll.u32 %v7491_v51, %v1495_v8  ;;  %v1507_v49 = vshll.u32 %v7494_v58, %v1495_v8  ;;  %v1499_v4 = vshrl.u32 %v7500_v53, %v5209_v48  ;;  %v1508_v23 = vshrl.u32 %v7512_v60, %v5209_v48 }
  0x83   :  { %v531_v41 = vsel %vm529_vm15, %v5189_v15, %v530_v6  ;;  %v1510_v32 = vshll.u32 %v7512_v60, %v1495_v8  ;;  %v1511_v1 = vshrl.u32 %v7510_v7, %v5209_v48  ;;  %v568_v18 = vmul.f32 %v566_v40, %v566_v40 }
  0x84   :  { %v535_v62 = vsel %vm528_vm0, %v531_v41, %v534_v45  ;;  %v569_v12 = vmul.f32 %v567_v16, %v567_v16  ;;  %v1032_v0 = vshll.u32 %v5229_v43, 30  ;;  %v5243_v17 = vor.u32 %v1502_v50, %v1501_v61 }
  0x85   :  { %4652 = vrcp.f32 %v535_v62  ;;  %vm549_vm4 = vweird.f32 %v535_v62  ;;  %v5245_v38 = vor.u32 %v1505_v35, %v1504_v63  ;;  %v1509_v11 = vor.u32 %v1508_v23, %v1507_v49 }
  0x86   :  { %v1512_v57 = vor.u32 %v1511_v1, %v1510_v32  ;;  %v1033_v14 = vsub.s32 %v1029_v56, %v1032_v0  ;;  %vm1513_vm5 = vcmp.lt.s32.totalorder %v5231_v52, 1  ;;  %vm1516_vm6 = vcmp.lt.s32.totalorder %v5231_v52, 4 }
  0x87   :  { %v553_v8 = vand.u32 2147483647, %v535_v62  ;;  %v555_v45 = vand.u32 2147483648, %v535_v62  ;;  %v5249_v21 = vor.u32 %v1499_v4, %v1498_v54  ;;  %vm1515_vm7 = vcmp.lt.s32.totalorder %v5231_v52, 3 }
  0x88   :  { %vm1034_vm9 = vcmp.lt.s32.totalorder %v1033_v14, 0  ;;  %v1035_v41 = vsub.s32 0, %v1033_v14  ;;  %vm1514_vm10 = vcmp.lt.s32.totalorder %v5231_v52, 2  ;;  %v1522_v40 = vsel %vm1516_vm6, %v1509_v11, 920167782 }
  0x89   :  { %v1525_v56 = vsel %vm1513_vm5, %v5243_v17, %v5245_v38  ;;  %v1526_v16 = vsel %vm1516_vm6, %v1512_v57, 1326507024  ;;  %v539_v27 = vsel %vm537_vm1, %v5189_v15, %v530_v6  ;;  %v542_v61 = vsel %vm540_vm2, %v533_v29, %v5193_v26 }
  0x8a   :  { %v1036_v63 = vsel %vm1034_vm9, %v1035_v41, %v1033_v14  ;;  %vm554_vm12 = vcmp.eq.f32.partialorder %v553_v8, 8.507059e+37  ;;  %v556_v54 = vor.u32 1.1754944e-38, %v555_v45  ;;  %v1527_v4 = vsel %vm1515_vm7, %v1509_v11, %v1526_v16 }
  0x8b   :  { %v4653_v36 = vpop.eup %4652  ;;  %v1037_v49 = vclz %v1036_v63  ;;  %v1521_v15 = vsel %vm1513_vm5, %v5249_v21, %v5243_v17  ;;  %v1523_v26 = vsel %vm1515_vm7, %v5245_v38, %v1522_v40  ;;  %v1528_v29 = vsel %vm1514_vm10, %v1525_v56, %v1527_v4 }
  0x8c   :  { %v545_v19 = vmul.f32 %v4653_v36, %v535_v62  ;;  %vm550_vm8 = vweird.f32 %v4653_v36  ;;  %v543_v62 = vsel %vm536_vm3, %v539_v27, %v542_v61  ;;  %v1533_v32 = vshrl.u32 %v1528_v29, 16 }
  0x8d   :  { %vm5270_vm11 = vmor %vm549_vm4, %vm550_vm8  ;;  %v4566_v23 = vadd.s32 4294967294, %v1037_v49  ;;  %vm524_vm13 = vweird.f32 %v4838_v13  ;;  %v5291_v0 = vshrl.u32 %v5205_v31, 16  ;;  %v1532_v11 = vand.u32 65535, %v1528_v29 }
  0x8e   :  { %v546_v28 = vsub.f32 1.0, %v545_v19  ;;  %v1025_v19 = vadd.s32 %v5175_v25, %v5173_v44  ;;  %v5297_v39 = vsel %vm1514_vm10, %v1521_v15, %v1523_v26  ;;  %v5299_v45 = vadd.f32 %v569_v12, %v568_v18 }
  0x8f   :  { %vm4567_vm14 = vcmp.lt.s32.totalorder %v4566_v23, 0  ;;  %v1534_v16 = vmul.u32 %v1532_v11, %v5220_v30  ;;  %v5306_v44 = vmul.u32 %v1532_v11, %v5291_v0  ;;  %v1555_v25 = vshrl.u32 %v5297_v39, 16 }
  0x90   :  { %v547_v50 = vmul.f32 %v4653_v36, %v546_v28  ;;  %v1040_v13 = vsel %vm4567_vm14, 0, %v4566_v23  ;;  %v5302_v28 = vmul.u32 %v1533_v32, %v5220_v30  ;;  %4654 = vrsqrt.f32 %v5299_v45 }
  0x91   :  { %v1042_v41 = vshll.u32 %v1033_v14, %v1040_v13  ;;  %v1045_v40 = vsub.s32 4294967266, %v1040_v13  ;;  %v1055_v12 = vsub.s32 4, %v5229_v43  ;;  %v1554_v4 = vand.u32 65535, %v5297_v39 }
  0x92   :  { %v548_v6 = vadd.f32 %v4653_v36, %v547_v50  ;;  %v1538_v50 = vshll.u32 %v5302_v28, 16  ;;  %vm933_vm0 = vcmp.lt.s32.totalorder %v4938_v42, 0  ;;  %v1497_v23 = vshrl.u32 %v7491_v51, %v5209_v48 }
  0x93   :  { %v1046_v18 = vadd.s32 127, %v1045_v40  ;;  %v1556_v48 = vmul.u32 %v1554_v4, %v5220_v30  ;;  %vm932_vm2 = vcmp.le.f32.partialorder %v931_v59, 0.7853982 }
  0x94   :  { %v552_v1 = vsel %vm5270_vm11, %v4653_v36, %v548_v6  ;;  %v1041_v36 = vsub.s32 32, %v1040_v13  ;;  %vm1542_vm15 = vc.u32 %v1534_v16, %v1538_v50  ;;  %v1544_v49 = vadd.s32 %v1538_v50, %v1534_v16 }
  0x95   :  { %v557_v57 = vsel %vm554_vm12, %v556_v54, %v552_v1  ;;  %v1047_v35 = vshll.u32 %v1046_v18, 23  ;;  %v1540_v54 = vshll.u32 %v5306_v44, 16  ;;  %v5316_v6 = vmul.u32 %v1555_v25, %v5220_v30 }
  0x96   :  { %v558_v8 = vmul.f32 %v557_v57, %v543_v62  ;;  %v1043_v61 = vshrl.u32 %v1025_v19, %v1041_v36  ;;  %v1537_v62 = vmul.u32 %v1533_v32, %v5291_v0  ;;  %v1543_v1 = vsel %vm1542_vm15, 1, %v7502_v22  ;;  %v5327_v39 = vpop.eup %4654 }
  0x97   :  { %v1048_v26 = vor.u32 4788187, %v1047_v35  ;;  %vm1546_vm1 = vc.u32 %v1544_v49, %v1540_v54  ;;  %v1518_v32 = vsel %vm1516_vm6, %v5245_v38, 2102212464  ;;  %v1560_v13 = vshll.u32 %v5316_v6, 16 }
  0x98   :  { %v559_v56 = vsel %vm524_vm13, nan, %v558_v8  ;;  %v1044_v63 = vor.u32 %v1043_v61, %v1042_v41  ;;  %v1056_v8 = vsel %vm933_vm0, %v1055_v12, %v5229_v43  ;;  %v1547_v16 = vsel %vm1546_vm1, 1, %v7502_v22 }
  0x99   :  { %v560_v27 = vmul.f32 %v559_v56, %v5182_v10  ;;  %v4700_v10 = vld [vmem:[#allocation2 + $0x10] sm:$0xff]  ;;  %v1049_v19 = vand.u32 2147483647, %v1048_v26  ;;  %v1545_v56 = vadd.s32 %v1543_v1, %v1537_v62  ;;  %v5343_v43 = vmul.u32 %v1554_v4, %v5291_v0 }
  0x9a   :  { %v1051_v29 = vcvt.s32.f32 %v1044_v63  ;;  %v5347_v38 = vmul.f32 %v5327_v39, %v5299_v45  ;;  %v1517_v61 = vsel %vm1513_vm5, %v1497_v23, %v5249_v21  ;;  %v5352_v12 = vsel %vm932_vm2, 0, %v1056_v8 }
  0x9b   :  { %v561_v14 = vmul.f32 0.5, %v560_v27  ;;  %v1519_v59 = vsel %vm1515_vm7, %v5243_v17, %v1518_v32  ;;  %vm1564_vm3 = vc.u32 %v1556_v48, %v1560_v13  ;;  %v1539_v63 = vshrl.u32 %v5302_v28, 16 }
  0x9c   :  { %v1052_v40 = vmul.f32 %v1051_v29, %v1049_v19  ;;  %v1549_v35 = vadd.s32 %v1547_v16, %v1545_v56  ;;  %v1559_v21 = vmul.u32 %v1555_v25, %v5291_v0  ;;  %v1562_v49 = vshll.u32 %v5343_v43, 16 }
  0x9d   :  { %v5318_v15 = vadd.f32 %v4700_v10, %v561_v14  ;;  %v5365_v4 = vadd.s32 %v1560_v13, %v1556_v48  ;;  %v5369_v17 = vsel %vm1514_vm10, %v1517_v61, %v1519_v59  ;;  %v1541_v10 = vshrl.u32 %v5306_v44, 16 }
  0x9e   :  { %v1053_v27 = vxor.u32 2147483648, %v1052_v40  ;;  %v1565_v26 = vsel %vm1564_vm3, 1, %v7502_v22  ;;  %v5380_v0 = vand.u32 3, %v5352_v12  ;;  %v1550_v62 = vadd.s32 %v1549_v35, %v1539_v63 }
  0x9f   :  { %7529 = vst [vmem:[#allocation12_spill] sm:$0xff] %v5318_v15  ;;  %v618_v11 = vand.u32 2147483647, %v5318_v15  ;;  %v621_v57 = vand.u32 2139095040, %v5318_v15  ;;  %v1561_v52 = vshrl.u32 %v5316_v6, 16  ;;  %v1563_v23 = vshrl.u32 %v5343_v43, 16 }
  0xa0   :  { %v1054_v14 = vsel %vm933_vm0, %v1053_v27, %v1052_v40  ;;  %vm1568_vm5 = vc.u32 %v5365_v4, %v1562_v49  ;;  %vm1082_vm10 = vcmp.eq.s32.totalorder %v5380_v0, 2  ;;  %vm1078_vm15 = vcmp.lt.s32.totalorder %v5380_v0, 2 }
  0xa1   :  { %v622_v36 = vshrl.u32 %v621_v57, 23  ;;  %v625_v41 = vand.u32 8388607, %v618_v11  ;;  %v5361_v54 = vsel %vm932_vm2, %v4938_v42, %v1054_v14  ;;  %v1567_v57 = vadd.s32 %v1565_v26, %v1559_v21 }
  0xa2   :  { %v5377_v42 = vmul.f32 %v5361_v54, %v5361_v54  ;;  %v1569_v27 = vsel %vm1568_vm5, 1, %v7502_v22  ;;  %vm1079_vm0 = vcmp.eq.s32.totalorder %v5380_v0, 0 }
  0xa3   :  { %v4559_v30 = vadd.s32 4294967169, %v622_v36  ;;  %v626_v18 = vor.u32 8388608, %v625_v41 }
  0xa4   :  { %v1060_v44 = vmul.f32 -0.001358992, %v5377_v42  ;;  %v1067_v40 = vmul.f32 -0.00019511016, %v5377_v42 }
  0xa5   :  { %v628_v50 = vadd.s32 1, %v4559_v30  ;;  %v5373_v29 = vshll.u32 %v626_v18, 8 }
  0xa6   :  { %v1061_v63 = vadd.f32 0.041655596, %v1060_v44  ;;  %v1068_v26 = vadd.f32 0.008332121, %v1067_v40 }
  0xa7   :  { %vm629_vm4 = vcmp.gt.s32.totalorder %v628_v50, 0  ;;  %v667_v41 = vand.u32 65535, %v5373_v29  ;;  %v668_v47 = vshrl.u32 %v5373_v29, 16 }
  0xa8   :  { %v630_v28 = vsel %vm629_vm4, %v628_v50, 0  ;;  %v1069_v40 = vmul.f32 %v1068_v26, %v5377_v42 }
  0xa9   :  { %v632_v25 = vand.u32 31, %v630_v28  ;;  %v5384_v1 = vshrl.u32 %v630_v28, 5 }
  0xab   :  { %v633_v19 = vsub.s32 32, %v632_v25  ;;  %v635_v8 = vshll.u32 %v7491_v51, %v632_v25  ;;  %v638_v32 = vshll.u32 %v7500_v53, %v632_v25  ;;  %v641_v48 = vshll.u32 %v7498_v55, %v632_v25 }
  0xac   :  { %v644_v13 = vshll.u32 %v7494_v58, %v632_v25  ;;  %v647_v36 = vshll.u32 %v7512_v60, %v632_v25  ;;  %vm650_vm6 = vcmp.lt.s32.totalorder %v5384_v1, 1  ;;  %vm653_vm7 = vcmp.lt.s32.totalorder %v5384_v1, 4 }
  0xad   :  { %v636_v56 = vshrl.u32 %v7500_v53, %v633_v19  ;;  %v639_v16 = vshrl.u32 %v7498_v55, %v633_v19  ;;  %v642_v30 = vshrl.u32 %v7494_v58, %v633_v19  ;;  %v645_v61 = vshrl.u32 %v7512_v60, %v633_v19 }
  0xae   :  { %v648_v18 = vshrl.u32 %v7510_v7, %v633_v19  ;;  %vm652_vm8 = vcmp.lt.s32.totalorder %v5384_v1, 3  ;;  %vm651_vm9 = vcmp.lt.s32.totalorder %v5384_v1, 2  ;;  %v1076_v1 = vadd.s32 3, %v5352_v12 }
  0xaf   :  { %v637_v59 = vor.u32 %v636_v56, %v635_v8  ;;  %v640_v50 = vor.u32 %v639_v16, %v638_v32  ;;  %v643_v14 = vor.u32 %v642_v30, %v641_v48  ;;  %v646_v35 = vor.u32 %v645_v61, %v644_v13 }
  0xb0   :  { %v649_v21 = vor.u32 %v648_v18, %v647_v36  ;;  %v634_v8 = vshrl.u32 %v7491_v51, %v633_v19  ;;  %v1062_v48 = vmul.f32 %v1061_v63, %v5377_v42  ;;  %v1571_v56 = vadd.s32 %v1569_v27, %v1567_v57 }
  0xb1   :  { %v658_v28 = vsel %vm650_vm6, %v637_v59, %v640_v50  ;;  %v662_v25 = vsel %vm650_vm6, %v640_v50, %v643_v14  ;;  %v659_v44 = vsel %vm653_vm7, %v646_v35, 920167782  ;;  %v655_v19 = vsel %vm653_vm7, %v643_v14, 2102212464 }
  0xb2   :  { %v663_v32 = vsel %vm653_vm7, %v649_v21, 1326507024  ;;  %v660_v13 = vsel %vm652_vm8, %v643_v14, %v659_v44  ;;  %v1063_v61 = vadd.f32 -0.4999988, %v1062_v48  ;;  %v5433_v57 = vadd.s32 %v1550_v62, %v1541_v10 }
  0xb3   :  { %v664_v36 = vsel %vm652_vm8, %v646_v35, %v663_v32  ;;  %v661_v16 = vsel %vm651_vm9, %v658_v28, %v660_v13  ;;  %v654_v35 = vsel %vm650_vm6, %v634_v8, %v637_v59  ;;  %v5438_v27 = vadd.s32 %v5365_v4, %v1562_v49 }
  0xb4   :  { %v665_v30 = vsel %vm651_vm9, %v662_v25, %v664_v36  ;;  %v691_v21 = vand.u32 65535, %v661_v16  ;;  %v692_v44 = vshrl.u32 %v661_v16, 16  ;;  %v1064_v26 = vmul.f32 %v1063_v61, %v5377_v42 }
  0xb5   :  { %v669_v18 = vand.u32 65535, %v665_v30  ;;  %v670_v63 = vshrl.u32 %v665_v30, 16  ;;  %v1070_v32 = vadd.f32 -0.16666654, %v1069_v40  ;;  %v656_v48 = vsel %vm652_vm8, %v640_v50, %v655_v19 }
  0xb6   :  { %v693_v13 = vmul.u32 %v691_v21, %v667_v41  ;;  %v694_v59 = vmul.u32 %v692_v44, %v667_v41  ;;  %v695_v8 = vmul.u32 %v691_v21, %v668_v47  ;;  %v1572_v10 = vadd.s32 %v1571_v56, %v1561_v52 }
  0xb7   :  { %v671_v14 = vmul.u32 %v669_v18, %v667_v41  ;;  %v672_v28 = vmul.u32 %v670_v63, %v667_v41  ;;  %v673_v25 = vmul.u32 %v669_v18, %v668_v47  ;;  %v674_v36 = vmul.u32 %v670_v63, %v668_v47 }
  0xb8   :  { %v696_v61 = vmul.u32 %v692_v44, %v668_v47  ;;  %v697_v49 = vshll.u32 %v694_v59, 16  ;;  %v699_v4 = vshll.u32 %v695_v8, 16  ;;  %v5444_v18 = vadd.f32 1.0, %v1064_v26 }
  0xb9   :  { %v675_v16 = vshll.u32 %v672_v28, 16  ;;  %v677_v30 = vshll.u32 %v673_v25, 16  ;;  %v676_v62 = vshrl.u32 %v672_v28, 16  ;;  %v1071_v40 = vmul.f32 %v1070_v32, %v5377_v42 }
  0xba   :  { %v678_v50 = vshrl.u32 %v673_v25, 16  ;;  %vm701_vm12 = vc.u32 %v693_v13, %v697_v49  ;;  %v703_v19 = vadd.s32 %v697_v49, %v693_v13  ;;  %v698_v56 = vshrl.u32 %v694_v59, 16 }
  0xbb   :  { %vm679_vm11 = vc.u32 %v671_v14, %v675_v16  ;;  %v681_v51 = vadd.s32 %v675_v16, %v671_v14  ;;  %v702_v6 = vsel %vm701_vm12, 1, %v7502_v22  ;;  %v1072_v52 = vadd.f32 1.0, %v1071_v40 }
  0xbc   :  { %v680_v41 = vsel %vm679_vm11, 1, %v7502_v22  ;;  %v704_v21 = vadd.s32 %v702_v6, %v696_v61  ;;  %vm705_vm14 = vc.u32 %v703_v19, %v699_v4  ;;  %v1083_v14 = vxor.u32 2147483648, %v5444_v18 }
  0xbd   :  { %v682_v63 = vadd.s32 %v680_v41, %v674_v36  ;;  %vm683_vm13 = vc.u32 %v681_v51, %v677_v30  ;;  %v706_v26 = vsel %vm705_vm14, 1, %v7502_v22  ;;  %v1073_v42 = vmul.f32 %v1072_v52, %v5361_v54  ;;  %v5465_v30 = vld [vmem:[#allocation5 + $0x38] sm:$0xff] }
  0xbe   :  { %v684_v47 = vsel %vm683_vm13, 1, %v7502_v22  ;;  %v700_v28 = vshrl.u32 %v695_v8, 16  ;;  %v708_v25 = vadd.s32 %v706_v26, %v704_v21  ;;  %v5455_v32 = vadd.s32 %v703_v19, %v699_v4 }
  0xbf   :  { %v686_v44 = vadd.s32 %v684_v47, %v682_v63  ;;  %v1080_v13 = vxor.u32 2147483648, %v1073_v42  ;;  %v1084_v59 = vsel %vm1082_vm10, %v1083_v14, %v1073_v42  ;;  %v573_v36 = vmul.f32 %v5327_v39, %v5347_v38 }
  0xc0   :  { %v657_v54 = vsel %vm651_vm9, %v654_v35, %v656_v48  ;;  %v709_v16 = vadd.s32 %v708_v25, %v698_v56  ;;  %v1573_v8 = vadd.s32 %v1572_v10, %v1563_v23  ;;  %v1574_v49 = vmul.u32 %v5205_v31, %v5369_v17 }
  0xc1   :  { %v687_v51 = vadd.s32 %v686_v44, %v676_v62  ;;  %v1081_v62 = vsel %vm1079_vm0, %v5444_v18, %v1080_v13  ;;  %vm1576_vm1 = vc.u32 %v5433_v57, %v5438_v27  ;;  %v711_v23 = vmul.u32 %v5373_v29, %v657_v54 }
  0xc2   :  { %v710_v38 = vadd.s32 %v709_v16, %v700_v28  ;;  %v1085_v35 = vsel %vm1078_vm15, %v1081_v62, %v1084_v59  ;;  %v1577_v43 = vadd.s32 1, %v1573_v8  ;;  %v2034_v48 = vand.u32 2139095040, %v5465_v30 }
  0xc3   :  { %v5467_v61 = vadd.s32 %v687_v51, %v678_v50  ;;  %4656 = vrcp.f32 %v1085_v35  ;;  %v574_v4 = vmul.f32 0.5, %v573_v36  ;;  %v1077_v50 = vand.u32 3, %v1076_v1 }
  0xc4   :  { %v714_v10 = vadd.s32 1, %v710_v38  ;;  %v1578_v31 = vsel %vm1576_vm1, %v1577_v43, %v1573_v8  ;;  %v2035_v19 = vshrl.u32 %v2034_v48, 23  ;;  %v1105_v47 = vand.u32 2147483648, %v1085_v35 }
  0xc5   :  { %vm713_vm2 = vc.u32 %v5467_v61, %v5455_v32  ;;  %v1579_v17 = vadd.s32 %v1578_v31, %v1574_v49  ;;  %v575_v29 = vsub.f32 1.5, %v574_v4  ;;  %vm1087_vm3 = vcmp.eq.s32.totalorder %v1077_v50, 0 }
  0xc6   :  { %v715_v40 = vsel %vm713_vm2, %v714_v10, %v710_v38  ;;  %vm1090_vm4 = vcmp.eq.s32.totalorder %v1077_v50, 2  ;;  %v4585_v44 = vadd.s32 4294967169, %v2035_v19  ;;  %vm1099_vm5 = vweird.f32 %v1085_v35 }
  0xc7   :  { %v716_v41 = vadd.s32 %v715_v40, %v711_v23  ;;  %v1580_v12 = vadd.s32 536870912, %v1579_v17  ;;  %v1103_v28 = vand.u32 2147483647, %v1085_v35  ;;  %vm1086_vm7 = vcmp.lt.s32.totalorder %v1077_v50, 2 }
  0xc8   :  { %v1089_v59 = vsel %vm1087_vm3, %v5444_v18, %v1080_v13  ;;  %v1092_v36 = vsel %vm1090_vm4, %v1083_v14, %v1073_v42  ;;  %v1106_v16 = vor.u32 1.1754944e-38, %v1105_v47  ;;  %v2041_v38 = vadd.s32 1, %v4585_v44  ;;  %v4701_v13 = vld [vmem:[#allocation5 + $0x18] sm:$0xff] }
  0xc9   :  { %v4657_v0 = vpop.eup %4656  ;;  %v717_v63 = vadd.s32 536870912, %v716_v41  ;;  %v5481_v6 = vshrl.u32 %v1580_v12, 30  ;;  %v576_v1 = vmul.f32 %v5327_v39, %v575_v29  ;;  %vm1104_vm10 = vcmp.eq.f32.partialorder %v1103_v28, 8.507059e+37 }
  0xca   :  { %v1095_v52 = vmul.f32 %v4657_v0, %v1085_v35  ;;  %vm1100_vm6 = vweird.f32 %v4657_v0  ;;  %v1093_v18 = vsel %vm1086_vm7, %v1089_v59, %v1092_v36  ;;  %v5500_v14 = vmul.f32 0.2, %v4831_v5 }
  0xcb   :  { %v5483_v56 = vshrl.u32 %v717_v63, 30  ;;  %v1582_v21 = vshll.u32 %v5481_v6, 30  ;;  %vm5490_vm8 = vmor %vm1099_vm5, %vm1100_vm6  ;;  %vm1074_vm12 = vweird.f32 %v4701_v13  ;;  %v7493_v39 = vand.u32 2147483647, %v5465_v30 }
  0xcc   :  { %v1096_v26 = vsub.f32 1.0, %v1095_v52  ;;  %vm2042_vm13 = vcmp.gt.s32.totalorder %v2041_v38, 0  ;;  %vm578_vm14 = vcmp.eq.f32.partialorder %v5299_v45, inf  ;;  %vm580_vm0 = vcmp.eq.f32.partialorder %v5299_v45, 0.0 }
  0xcd   :  { %v719_v25 = vshll.u32 %v5483_v56, 30  ;;  %v5487_v51 = vsub.s32 %v1579_v17, %v1582_v21  ;;  %v577_v17 = vmul.f32 %v576_v1, %v5299_v45  ;;  %v2043_v12 = vsel %vm2042_vm13, %v2041_v38, 0 }
  0xce   :  { %v1097_v54 = vmul.f32 %v4657_v0, %v1096_v26  ;;  %v742_v19 = vsub.s32 4, %v5483_v56  ;;  %v2038_v63 = vand.u32 8388607, %v7493_v39  ;;  %v581_v52 = vand.u32 2147483648, %v5299_v45 }
  0xcf   :  { %v720_v8 = vsub.s32 %v716_v41, %v719_v25  ;;  %vm1584_vm9 = vcmp.lt.s32.totalorder %v5487_v51, 0  ;;  %v1585_v49 = vsub.s32 0, %v5487_v51  ;;  %v579_v29 = vsel %vm578_vm14, %v5299_v45, %v577_v17 }
  0xd0   :  { %v1098_v35 = vadd.f32 %v4657_v0, %v1097_v54  ;;  %v712_v47 = vadd.s32 %v5455_v32, %v5467_v61  ;;  %vm620_vm2 = vcmp.lt.s32.totalorder %v5318_v15, 0  ;;  %v5517_v26 = vand.u32 31, %v2043_v12 }
  0xd1   :  { %vm721_vm11 = vcmp.lt.s32.totalorder %v720_v8, 0  ;;  %v722_v43 = vsub.s32 0, %v720_v8  ;;  %v1586_v42 = vsel %vm1584_vm9, %v1585_v49, %v5487_v51  ;;  %vm5521_vm3 = vcmp.le.f32.partialorder %v618_v11, 0.7853982 }
  0xd2   :  { %v1102_v23 = vsel %vm5490_vm8, %v4657_v0, %v1098_v35  ;;  %v1587_v48 = vclz %v1586_v42  ;;  %v743_v32 = vsel %vm620_vm2, %v742_v19, %v5483_v56  ;;  %v1575_v61 = vadd.s32 %v5438_v27, %v5433_v57 }
  0xd3   :  { %v723_v10 = vsel %vm721_vm11, %v722_v43, %v720_v8  ;;  %v1107_v31 = vsel %vm1104_vm10, %v1106_v16, %v1102_v23  ;;  %v2039_v16 = vor.u32 8388608, %v2038_v63  ;;  %v5533_v35 = vshrl.u32 %v2043_v12, 5 }
  0xd4   :  { %v724_v4 = vclz %v723_v10  ;;  %v1108_v40 = vmul.f32 %v1107_v31, %v1093_v18  ;;  %v4576_v50 = vadd.s32 4294967294, %v1587_v48  ;;  %v5536_v11 = vsub.s32 32, %v5517_v26 }
  0xd5   :  { %v2051_v43 = vshll.u32 %v7500_v53, %v5517_v26  ;;  %v745_v42 = vsel %vm5521_vm3, 0, %v743_v32  ;;  %v2054_v48 = vshll.u32 %v7498_v55, %v5517_v26  ;;  %v5559_v63 = vsel %vm580_vm0, %v581_v52, %v579_v29 }
  0xd6   :  { %v4560_v5 = vadd.s32 4294967294, %v724_v4  ;;  %v1109_v41 = vsel %vm1074_vm12, nan, %v1108_v40  ;;  %vm4577_vm15 = vcmp.lt.s32.totalorder %v4576_v50, 0  ;;  %vm2063_vm4 = vcmp.lt.s32.totalorder %v5533_v35, 1 }
  0xd7   :  { %v1110_v0 = vmul.f32 %v1109_v41, %v5500_v14  ;;  %v1590_v36 = vsel %vm4577_vm15, 0, %v4576_v50  ;;  %v2052_v50 = vshrl.u32 %v7498_v55, %v5536_v11  ;;  %vm1483_vm6 = vcmp.lt.s32.totalorder %v5140_v2, 0 }
  0xd8   :  { %vm4561_vm1 = vcmp.lt.s32.totalorder %v4560_v5, 0  ;;  %v1591_v38 = vsub.s32 32, %v1590_v36  ;;  %v1595_v1 = vsub.s32 4294967266, %v1590_v36  ;;  %v1592_v13 = vshll.u32 %v5487_v51, %v1590_v36 }
  0xd9   :  { %v727_v21 = vsel %vm4561_vm1, 0, %v4560_v5  ;;  %v1111_v44 = vmul.f32 0.5, %v1110_v0  ;;  %v2055_v5 = vshrl.u32 %v7494_v58, %v5536_v11  ;;  %v2057_v51 = vshll.u32 %v7494_v58, %v5517_v26 }
  0xda   :  { %v728_v28 = vsub.s32 32, %v727_v21  ;;  %v729_v25 = vshll.u32 %v720_v8, %v727_v21  ;;  %v732_v59 = vsub.s32 4294967266, %v727_v21  ;;  %v1596_v23 = vadd.s32 127, %v1595_v1 }
  0xdb   :  { %v5531_v8 = vadd.f32 %v1111_v44, %v5318_v15  ;;  %v1593_v4 = vshrl.u32 %v1575_v61, %v1591_v38  ;;  %v2058_v0 = vshrl.u32 %v7512_v60, %v5536_v11  ;;  %v5563_v21 = vshll.u32 %v7512_v60, %v5517_v26 }
  0xdc   :  { %v730_v62 = vshrl.u32 %v712_v47, %v728_v28  ;;  %v733_v49 = vadd.s32 127, %v732_v59  ;;  %v1597_v19 = vshll.u32 %v1596_v23, 23  ;;  %v918_v47 = vadd.s32 3, %v745_v42 }
  0xdd   :  { %7534 = vst [vmem:[#allocation13_spill] sm:$0xff] %v5531_v8  ;;  %v1168_v57 = vand.u32 2147483647, %v5531_v8  ;;  %v1171_v27 = vand.u32 2139095040, %v5531_v8  ;;  %v5567_v44 = vshrl.u32 %v7510_v7, %v5536_v11  ;;  %v1594_v59 = vor.u32 %v1593_v4, %v1592_v13 }
  0xde   :  { %v731_v56 = vor.u32 %v730_v62, %v729_v25  ;;  %v734_v18 = vshll.u32 %v733_v49, 23  ;;  %v5569_v36 = vshll.u32 %v2039_v16, 8  ;;  %v5571_v61 = vor.u32 %v2052_v50, %v2051_v43 }
  0xdf   :  { %v1172_v17 = vshrl.u32 %v1171_v27, 23  ;;  %v1175_v40 = vand.u32 8388607, %v1168_v57  ;;  %v5573_v45 = vor.u32 %v2055_v5, %v2054_v48  ;;  %v1598_v52 = vor.u32 4788187, %v1597_v19 }
  0xe0   :  { %v735_v10 = vor.u32 4788187, %v734_v18  ;;  %v738_v31 = vcvt.s32.f32 %v731_v56  ;;  %v5576_v62 = vor.u32 %v2058_v0, %v2057_v51  ;;  %v5578_v49 = vand.u32 3, %v745_v42 }
  0xe1   :  { %v4569_v12 = vadd.s32 4294967169, %v1172_v17  ;;  %v1176_v32 = vor.u32 8388608, %v1175_v40  ;;  %v5580_v38 = vand.u32 3, %v918_v47  ;;  %v2062_v16 = vor.u32 %v5567_v44, %v5563_v21 }
  0xe2   :  { %v736_v41 = vand.u32 2147483647, %v735_v10  ;;  %v1601_v27 = vcvt.s32.f32 %v1594_v59  ;;  %v1605_v23 = vsub.s32 4, %v5481_v6  ;;  %v5601_v48 = vsel %vm2063_vm4, %v5571_v61, %v5573_v45 }
  0xe3   :  { %v1178_v25 = vadd.s32 1, %v4569_v12  ;;  %v5594_v13 = vshll.u32 %v1176_v32, 8  ;;  %v7535_v17 = vmov 683565275   ;;  %v1599_v40 = vand.u32 2147483647, %v1598_v52 }
  0xe4   :  { %v739_v28 = vmul.f32 %v738_v31, %v736_v41  ;;  %vm2066_vm8 = vcmp.lt.s32.totalorder %v5533_v35, 4  ;;  %vm767_vm10 = vcmp.eq.s32.totalorder %v5578_v49, 2  ;;  %vm924_vm11 = vcmp.eq.s32.totalorder %v5580_v38, 2 }
  0xe5   :  { %vm1179_vm5 = vcmp.gt.s32.totalorder %v1178_v25, 0  ;;  %vm764_vm14 = vcmp.eq.s32.totalorder %v5578_v49, 0  ;;  %vm921_vm15 = vcmp.eq.s32.totalorder %v5580_v38, 0  ;;  %vm763_vm0 = vcmp.lt.s32.totalorder %v5578_v49, 2 }
  0xe6   :  { %v740_v29 = vxor.u32 2147483648, %v739_v28  ;;  %v1180_v1 = vsel %vm1179_vm5, %v1178_v25, 0  ;;  %vm920_vm1 = vcmp.lt.s32.totalorder %v5580_v38, 2  ;;  %vm2065_vm5 = vcmp.lt.s32.totalorder %v5533_v35, 3 }
  0xe7   :  { %v5586_v56 = vshrl.u32 %v1180_v1, 5  ;;  %v1182_v18 = vand.u32 31, %v1180_v1 }
  0xe8   :  { %v741_v43 = vsel %vm620_vm2, %v740_v29, %v739_v28  ;;  %vm761_vm2 = vweird.f32 %v5318_v15 }
  0xe9   :  { %v5592_v42 = vsel %vm5521_vm3, %v5318_v15, %v741_v43  ;;  %v1183_v31 = vsub.s32 32, %v1182_v18  ;;  %v1185_v4 = vshll.u32 %v7535_v17, %v1182_v18  ;;  %v1188_v54 = vshll.u32 %v7500_v53, %v1182_v18 }
  0xea   :  { %v746_v10 = vmul.f32 %v5592_v42, %v5592_v42  ;;  %v1191_v50 = vshll.u32 %v7498_v55, %v1182_v18  ;;  %v1194_v5 = vshll.u32 %v7494_v58, %v1182_v18  ;;  %v1197_v51 = vshll.u32 %v7512_v60, %v1182_v18 }
  0xeb   :  { %v1186_v19 = vshrl.u32 %v7500_v53, %v1183_v31  ;;  %vm1200_vm7 = vcmp.lt.s32.totalorder %v5586_v56, 1  ;;  %v1189_v0 = vshrl.u32 %v7498_v55, %v1183_v31  ;;  %v1192_v47 = vshrl.u32 %v7494_v58, %v1183_v31 }
  0xec   :  { %v747_v41 = vmul.f32 -0.001358992, %v746_v10  ;;  %v754_v12 = vmul.f32 -0.00019511016, %v746_v10  ;;  %v1195_v28 = vshrl.u32 %v7512_v60, %v1183_v31  ;;  %v1198_v25 = vshrl.u32 %v7510_v7, %v1183_v31 }
  0xed   :  { %v1187_v29 = vor.u32 %v1186_v19, %v1185_v4  ;;  %vm1201_vm9 = vcmp.lt.s32.totalorder %v5586_v56, 2  ;;  %v5620_v52 = vor.u32 %v1189_v0, %v1188_v54  ;;  %v1193_v1 = vor.u32 %v1192_v47, %v1191_v50 }
  0xee   :  { %v748_v59 = vadd.f32 0.041655596, %v747_v41  ;;  %v755_v32 = vadd.f32 0.008332121, %v754_v12  ;;  %v1196_v43 = vor.u32 %v1195_v28, %v1194_v5  ;;  %v1199_v18 = vor.u32 %v1198_v25, %v1197_v51 }
  0xef   :  { %vm1202_vm12 = vcmp.lt.s32.totalorder %v5586_v56, 3  ;;  %vm1203_vm13 = vcmp.lt.s32.totalorder %v5586_v56, 4  ;;  %v1208_v4 = vsel %vm1200_vm7, %v1187_v29, %v5620_v52  ;;  %v1602_v50 = vmul.f32 %v1601_v27, %v1599_v40 }
  0xf0   :  { %v749_v39 = vmul.f32 %v748_v59, %v746_v10  ;;  %v756_v58 = vmul.f32 %v755_v32, %v746_v10  ;;  %v1209_v54 = vsel %vm1203_vm13, %v1196_v43, 920167782  ;;  %v5634_v5 = vsel %vm1483_vm6, %v1605_v23, %v5481_v6 }
  0xf1   :  { %v1210_v12 = vsel %vm1202_vm12, %v1193_v1, %v1209_v54  ;;  %v1217_v19 = vand.u32 65535, %v5594_v13  ;;  %v1184_v27 = vshrl.u32 %v7535_v17, %v1183_v31  ;;  %v1213_v6 = vsel %vm1203_vm13, %v1199_v18, 1326507024 }
  0xf2   :  { %v750_v51 = vadd.f32 -0.4999988, %v749_v39  ;;  %v757_v41 = vadd.f32 -0.16666654, %v756_v58  ;;  %v1211_v40 = vsel %vm1201_vm9, %v1208_v4, %v1210_v12  ;;  %v1212_v58 = vsel %vm1200_vm7, %v5620_v52, %v1193_v1 }
  0xf3   :  { %v1214_v0 = vsel %vm1202_vm12, %v1196_v43, %v1213_v6  ;;  %v1218_v47 = vshrl.u32 %v5594_v13, 16  ;;  %v1241_v28 = vand.u32 65535, %v1211_v40  ;;  %v1242_v25 = vshrl.u32 %v1211_v40, 16 }
  0xf4   :  { %v751_v39 = vmul.f32 %v750_v51, %v746_v10  ;;  %v758_v23 = vmul.f32 %v757_v41, %v746_v10  ;;  %v1215_v31 = vsel %vm1201_vm9, %v1212_v58, %v1214_v0  ;;  %v7536_v59 = vand.u32 2147483647, %v5140_v2 }
  0xf5   :  { %v1603_v4 = vxor.u32 2147483648, %v1602_v50  ;;  %v1219_v10 = vand.u32 65535, %v1215_v31  ;;  %v1220_v51 = vshrl.u32 %v1215_v31, 16  ;;  %v5663_v43 = vsel %vm1200_vm7, %v1184_v27, %v1187_v29 }
  0xf6   :  { %vm5657_vm3 = vcmp.le.f32.partialorder %v7536_v59, 0.7853982  ;;  %v752_v18 = vadd.f32 1.0, %v751_v39  ;;  %v759_v54 = vadd.f32 1.0, %v758_v23  ;;  %v1205_v41 = vsel %vm1203_vm13, %v1193_v1, 2102212464 }
  0xf7   :  { %v5667_v12 = vmul.u32 %v1242_v25, %v1217_v19  ;;  %v2076_v40 = vsel %vm2066_vm8, %v2062_v16, 1326507024  ;;  %v1221_v39 = vmul.u32 %v1219_v10, %v1217_v19  ;;  %v1222_v23 = vmul.u32 %v1220_v51, %v1217_v19 }
  0xf8   :  { %v760_v58 = vmul.f32 %v759_v54, %v5592_v42  ;;  %v768_v6 = vxor.u32 2147483648, %v752_v18  ;;  %v1223_v0 = vmul.u32 %v1219_v10, %v1218_v47  ;;  %v1243_v31 = vmul.u32 %v1241_v28, %v1217_v19 }
  0xf9   :  { %v5675_v29 = vmul.u32 %v1241_v28, %v1218_v47  ;;  %v1604_v1 = vsel %vm1483_vm6, %v1603_v4, %v1602_v50  ;;  %v1225_v16 = vshll.u32 %v1222_v23, 16  ;;  %v1224_v42 = vmul.u32 %v1220_v51, %v1218_v47 }
  0xfa   :  { %v765_v27 = vxor.u32 2147483648, %v760_v58  ;;  %v769_v21 = vsel %vm767_vm10, %v768_v6, %v760_v58  ;;  %v926_v44 = vsel %vm924_vm11, %v768_v6, %v760_v58  ;;  %v1227_v59 = vshll.u32 %v1223_v0, 16 }
  0xfb   :  { %v1246_v54 = vmul.u32 %v1242_v25, %v1218_v47  ;;  %v1247_v19 = vshll.u32 %v5667_v12, 16  ;;  %vm1229_vm6 = vc.u32 %v1221_v39, %v1225_v16  ;;  %v1231_v50 = vadd.s32 %v1225_v16, %v1221_v39 }
  0xfc   :  { %v766_v28 = vsel %vm764_vm14, %v752_v18, %v765_v27  ;;  %v923_v2 = vsel %vm921_vm15, %v752_v18, %v765_v27  ;;  %v1226_v58 = vshrl.u32 %v1222_v23, 16  ;;  %v1230_v51 = vsel %vm1229_vm6, 1, %v7502_v22 }
  0xfd   :  { %v770_v4 = vsel %vm763_vm0, %v766_v28, %v769_v21  ;;  %v927_v10 = vsel %vm920_vm1, %v923_v2, %v926_v44  ;;  %v1228_v6 = vshrl.u32 %v1223_v0, 16  ;;  %v1249_v18 = vshll.u32 %v5675_v29, 16  ;;  %v5703_v21 = vld [vmem:[#allocation5 + $0x28] sm:$0xff]  ;;  %v5725_v2 = vld [vmem:[#allocation2 + $0x28] sm:$0xff] }
  0xfe   :  { %v771_v47 = vsel %vm761_vm2, nan, %v770_v4  ;;  %v928_v25 = vsel %vm761_vm2, nan, %v927_v10  ;;  %vm2064_vm7 = vcmp.lt.s32.totalorder %v5533_v35, 2  ;;  %v1232_v38 = vadd.s32 %v1230_v51, %v1224_v42  ;;  %v5721_v28 = vld [vmem:[#allocation2 + $0x20] sm:$0xff] }
  0xff   :  { %v772_v49 = vmul.f32 %v771_v47, %v5500_v14  ;;  %v929_v39 = vmul.f32 %v928_v25, %v5500_v14  ;;  %vm1233_vm10 = vc.u32 %v1231_v50, %v1227_v59  ;;  %vm1251_vm11 = vc.u32 %v1243_v31, %v1247_v19 }
 0x100   :  { %v1234_v23 = vsel %vm1233_vm10, 1, %v7502_v22  ;;  %v1253_v27 = vadd.s32 %v1247_v19, %v1243_v31  ;;  %v5708_v0 = vsel %vm5657_vm3, %v5703_v21, %v1604_v1  ;;  %v1252_v42 = vsel %vm1251_vm11, 1, %v7502_v22 }
 0x101   :  { %v5711_v44 = vadd.f32 %v772_v49, %v5211_v34  ;;  %v5714_v16 = vadd.f32 %v929_v39, %v5213_v37  ;;  %v1236_v14 = vadd.s32 %v1234_v23, %v1232_v38  ;;  %v1206_v31 = vsel %vm1202_vm12, %v5620_v52, %v1205_v41 }
 0x102   :  { %v1248_v59 = vshrl.u32 %v5667_v12, 16  ;;  %v1254_v19 = vadd.s32 %v1252_v42, %v1246_v54  ;;  %vm1255_vm13 = vc.u32 %v1253_v27, %v1249_v18  ;;  %v1250_v51 = vshrl.u32 %v5675_v29, 16 }
 0x103   :  { %7539 = vst [vmem:[#allocation14_spill] sm:$0xff] %v5714_v16  ;;  %v1116_v1 = vsub.f32 %v5711_v44, %v5721_v28  ;;  %v1117_v50 = vsub.f32 %v5714_v16, %v5725_v2  ;;  %v1237_v4 = vadd.s32 %v1236_v14, %v1226_v58  ;;  %v1256_v10 = vsel %vm1255_vm13, 1, %v7502_v22 }
 0x104   :  { %v1258_v52 = vadd.s32 %v1256_v10, %v1254_v19  ;;  %v1609_v41 = vmul.f32 %v5708_v0, %v5708_v0  ;;  %v2077_v12 = vsel %vm2065_vm5, %v5576_v62, %v2076_v40  ;;  %v5738_v49 = vadd.s32 %v1253_v27, %v1249_v18 }
 0x105   :  { %v1118_v54 = vmul.f32 %v1116_v1, %v1116_v1  ;;  %v1119_v47 = vmul.f32 %v1117_v50, %v1117_v50  ;;  %v5736_v25 = vadd.s32 %v1237_v4, %v1228_v6  ;;  %v1207_v58 = vsel %vm1201_vm9, %v5663_v43, %v1206_v31 }
 0x106   :  { %v1259_v39 = vadd.s32 %v1258_v52, %v1248_v59  ;;  %v1610_v29 = vmul.f32 -0.001358992, %v1609_v41  ;;  %v1617_v38 = vmul.f32 -0.00019511016, %v1609_v41  ;;  %v2048_v14 = vshll.u32 %v7535_v17, %v5517_v26 }
 0x107   :  { %v5743_v23 = vadd.f32 %v1119_v47, %v1118_v54  ;;  %v2049_v40 = vshrl.u32 %v7500_v53, %v5536_v11  ;;  %v5750_v6 = vand.u32 65535, %v5569_v36  ;;  %v1608_v56 = vsel %vm5657_vm3, 0, %v5634_v5 }
 0x108   :  { %v1260_v18 = vadd.s32 %v1259_v39, %v1250_v51  ;;  %v1611_v43 = vadd.f32 0.041655596, %v1610_v29  ;;  %v1618_v27 = vadd.f32 0.008332121, %v1617_v38  ;;  %v1261_v42 = vmul.u32 %v5594_v13, %v1207_v58 }
 0x109   :  { %4658 = vrsqrt.f32 %v5743_v23  ;;  %vm1263_vm9 = vc.u32 %v5736_v25, %v5738_v49  ;;  %v2078_v26 = vsel %vm2064_vm7, %v5601_v48, %v2077_v12  ;;  %v2047_v32 = vshrl.u32 %v7535_v17, %v5536_v11 }
 0x10a   :  { %v1264_v31 = vadd.s32 1, %v1260_v18  ;;  %v1612_v59 = vmul.f32 %v1611_v43, %v1609_v41  ;;  %v1619_v19 = vmul.f32 %v1618_v27, %v1609_v41  ;;  %v1625_v5 = vand.u32 3, %v1608_v56 }
 0x10b   :  { %v2050_v1 = vor.u32 %v2049_v40, %v2048_v14  ;;  %v2068_v50 = vsel %vm2066_vm8, %v5573_v45, 2102212464  ;;  %v2072_v13 = vsel %vm2066_vm8, %v5576_v62, 920167782  ;;  %v2083_v48 = vshrl.u32 %v2078_v26, 16 }
 0x10c   :  { %v1265_v4 = vsel %vm1263_vm9, %v1264_v31, %v1260_v18  ;;  %v1613_v10 = vadd.f32 -0.4999988, %v1612_v59  ;;  %v1620_v51 = vadd.f32 -0.16666654, %v1619_v19  ;;  %v5771_v52 = vmul.f32 0.2, %v4834_v9 }
 0x10d   :  { %v1266_v12 = vadd.s32 %v1265_v4, %v1261_v42  ;;  %v5774_v11 = vshrl.u32 %v5569_v36, 16  ;;  %v2082_v54 = vand.u32 65535, %v2078_v26  ;;  %v2067_v39 = vsel %vm2063_vm4, %v2047_v32, %v2050_v1 }
 0x10e   :  { %v1614_v47 = vmul.f32 %v1613_v10, %v1609_v41  ;;  %v1621_v58 = vmul.f32 %v1620_v51, %v1609_v41  ;;  %v5779_v29 = vmul.u32 %v2083_v48, %v5750_v6  ;;  %v2069_v9 = vsel %vm2065_vm5, %v5571_v61, %v2068_v50 }
 0x10f   :  { %v4659_v62 = vpop.eup %4658  ;;  %v1267_v38 = vadd.s32 536870912, %v1266_v12  ;;  %v2071_v14 = vsel %vm2063_vm4, %v2050_v1, %v5571_v61  ;;  %v2073_v41 = vsel %vm2065_vm5, %v5573_v45, %v2072_v13  ;;  %vm1632_vm8 = vcmp.eq.s32.totalorder %v1625_v5, 2 }
 0x110   :  { %v1122_v40 = vmul.f32 %v4659_v62, %v5743_v23  ;;  %v5791_v18 = vadd.f32 1.0, %v1614_v47  ;;  %v1622_v43 = vadd.f32 1.0, %v1621_v58  ;;  %v2084_v42 = vmul.u32 %v2082_v54, %v5750_v6 }
 0x111   :  { %v5793_v27 = vshrl.u32 %v1267_v38, 30  ;;  %v5797_v26 = vmul.u32 %v2082_v54, %v5774_v11  ;;  %v2088_v31 = vshll.u32 %v5779_v29, 16  ;;  %v1626_v19 = vadd.s32 3, %v1608_v56 }
 0x112   :  { %v1123_v61 = vmul.f32 %v4659_v62, %v1122_v40  ;;  %v1623_v59 = vmul.f32 %v1622_v43, %v5708_v0  ;;  %v1633_v45 = vxor.u32 2147483648, %v5791_v18  ;;  %vm1629_vm4 = vcmp.eq.s32.totalorder %v1625_v5, 0 }
 0x113   :  { %v1269_v32 = vshll.u32 %v5793_v27, 30  ;;  %v5805_v1 = vsel %vm2064_vm7, %v2067_v39, %v2069_v9  ;;  %v2074_v50 = vsel %vm2064_vm7, %v2071_v14, %v2073_v41  ;;  %vm1628_vm12 = vcmp.lt.s32.totalorder %v1625_v5, 2 }
 0x114   :  { %v1124_v13 = vmul.f32 0.5, %v1123_v61  ;;  %v1630_v4 = vxor.u32 2147483648, %v1623_v59  ;;  %v1634_v10 = vsel %vm1632_vm8, %v1633_v45, %v1623_v59  ;;  %v2090_v0 = vshll.u32 %v5797_v26, 16 }
 0x115   :  { %v5810_v51 = vsub.s32 %v1266_v12, %v1269_v32  ;;  %vm2092_vm14 = vc.u32 %v2084_v42, %v2088_v31  ;;  %v2094_v56 = vadd.s32 %v2088_v31, %v2084_v42  ;;  %v5813_v47 = vand.u32 3, %v1626_v19 }
 0x116   :  { %v1125_v54 = vsub.f32 1.5, %v1124_v13  ;;  %v1631_v58 = vsel %vm1629_vm4, %v5791_v18, %v1630_v4  ;;  %v2087_v39 = vmul.u32 %v2083_v48, %v5774_v11  ;;  %v2105_v5 = vshrl.u32 %v2074_v50, 16 }
 0x117   :  { %vm1271_vm15 = vcmp.lt.s32.totalorder %v5810_v51, 0  ;;  %v1272_v35 = vsub.s32 0, %v5810_v51  ;;  %v1635_v38 = vsel %vm1628_vm12, %v1631_v58, %v1634_v10  ;;  %vm1128_vm0 = vcmp.eq.f32.partialorder %v5743_v23, inf }
 0x118   :  { %v1126_v9 = vmul.f32 %v4659_v62, %v1125_v54  ;;  %4660 = vrcp.f32 %v1635_v38  ;;  %v2093_v12 = vsel %vm2092_vm14, 1, %v7502_v22  ;;  %v1131_v14 = vand.u32 2147483648, %v5743_v23 }
 0x119   :  { %v1273_v41 = vsel %vm1271_vm15, %v1272_v35, %v5810_v51  ;;  %vm2096_vm1 = vc.u32 %v2094_v56, %v2090_v0  ;;  %v2104_v40 = vand.u32 65535, %v2074_v50  ;;  %vm1130_vm2 = vcmp.eq.f32.partialorder %v5743_v23, 0.0 }
 0x11a   :  { %v1127_v48 = vmul.f32 %v1126_v9, %v5743_v23  ;;  %v1262_v43 = vadd.s32 %v5738_v49, %v5736_v25  ;;  %v1274_v42 = vclz %v1273_v41  ;;  %vm1637_vm3 = vcmp.eq.s32.totalorder %v5813_v47, 0 }
 0x11b   :  { %vm1640_vm5 = vcmp.eq.s32.totalorder %v5813_v47, 2  ;;  %v2095_v62 = vadd.s32 %v2093_v12, %v2087_v39  ;;  %v2107_v31 = vmul.u32 %v2105_v5, %v5750_v6  ;;  %vm1636_vm6 = vcmp.lt.s32.totalorder %v5813_v47, 2 }
 0x11c   :  { %v1129_v61 = vsel %vm1128_vm0, %v5743_v23, %v1127_v48  ;;  %v4570_v19 = vadd.s32 4294967294, %v1274_v42  ;;  %v2091_v32 = vshrl.u32 %v5797_v26, 16  ;;  %v2097_v50 = vsel %vm2096_vm1, 1, %v7502_v22 }
 0x11d   :  { %v1132_v13 = vsel %vm1130_vm2, %v1131_v14, %v1129_v61  ;;  %v2089_v25 = vshrl.u32 %v5779_v29, 16  ;;  %v2106_v49 = vmul.u32 %v2104_v40, %v5750_v6  ;;  %v2108_v10 = vmul.u32 %v2104_v40, %v5774_v11 }
 0x11e   :  { %v4661_v0 = vpop.eup %4660  ;;  %v5838_v56 = vadd.f32 %v1132_v13, %v5559_v63  ;;  %vm4571_vm7 = vcmp.lt.s32.totalorder %v4570_v19, 0  ;;  %v1642_v23 = vsel %vm1640_vm5, %v1633_v45, %v1623_v59  ;;  %v1653_v54 = vand.u32 2147483647, %v1635_v38 }
 0x11f   :  { %v1277_v58 = vsel %vm4571_vm7, 0, %v4570_v19  ;;  %v1645_v39 = vmul.f32 %v4661_v0, %v1635_v38  ;;  %v2099_v35 = vadd.s32 %v2097_v50, %v2095_v62  ;;  %v2110_v26 = vshll.u32 %v2107_v31, 16  ;;  %v5851_v19 = vld [vmem:[#allocation5 + $0x48] sm:$0xff] }
 0x120   :  { %v1278_v9 = vsub.s32 32, %v1277_v58  ;;  %v1279_v12 = vshll.u32 %v5810_v51, %v1277_v58  ;;  %v1282_v14 = vsub.s32 4294967266, %v1277_v58  ;;  %v1639_v6 = vsel %vm1637_vm3, %v5791_v18, %v1630_v4 }
 0x121   :  { %vm1624_vm10 = vweird.f32 %v5703_v21  ;;  %vm1649_vm11 = vweird.f32 %v1635_v38  ;;  %v1655_v63 = vand.u32 2147483648, %v1635_v38  ;;  %v2109_v29 = vmul.u32 %v2105_v5, %v5774_v11 }
 0x122   :  { %v2112_v59 = vshll.u32 %v2108_v10, 16  ;;  %v1280_v45 = vshrl.u32 %v1262_v43, %v1278_v9  ;;  %v1283_v41 = vadd.s32 127, %v1282_v14  ;;  %v1646_v40 = vsub.f32 1.0, %v1645_v39 }
 0x123   :  { %vm1650_vm13 = vweird.f32 %v4661_v0  ;;  %vm5846_vm9 = vcmp.eq.f32.partialorder %v1653_v54, 8.507059e+37  ;;  %v2100_v51 = vadd.s32 %v2099_v35, %v2089_v25  ;;  %vm2114_vm8 = vc.u32 %v2106_v49, %v2110_v26 }
 0x124   :  { %v2116_v42 = vadd.s32 %v2110_v26, %v2106_v49  ;;  %v1281_v62 = vor.u32 %v1280_v45, %v1279_v12  ;;  %v1284_v18 = vshll.u32 %v1283_v41, 23  ;;  %v1647_v4 = vmul.f32 %v4661_v0, %v1646_v40  ;;  %vm5854_vm4 = vmor %vm1649_vm11, %vm1650_vm13 }
 0x125   :  { %v2115_v61 = vsel %vm2114_vm8, 1, %v7502_v22  ;;  %v1656_v5 = vor.u32 1.1754944e-38, %v1655_v63  ;;  %v2111_v43 = vshrl.u32 %v2107_v31, 16  ;;  %v1643_v58 = vsel %vm1636_vm6, %v1639_v6, %v1642_v23 }
 0x126   :  { %v2117_v50 = vadd.s32 %v2115_v61, %v2109_v29  ;;  %vm2118_vm12 = vc.u32 %v2116_v42, %v2112_v59  ;;  %v1285_v13 = vor.u32 4788187, %v1284_v18  ;;  %v1288_v25 = vcvt.s32.f32 %v1281_v62 }
 0x127   :  { %v1648_v54 = vadd.f32 %v4661_v0, %v1647_v4  ;;  %v2119_v49 = vsel %vm2118_vm12, 1, %v7502_v22  ;;  %v2113_v39 = vshrl.u32 %v2108_v10, 16  ;;  %v2584_v38 = vand.u32 2139095040, %v5851_v19 }
 0x128   :  { %v2121_v35 = vadd.s32 %v2119_v49, %v2117_v50  ;;  %v1286_v26 = vand.u32 2147483647, %v1285_v13  ;;  %v5864_v12 = vadd.s32 %v2100_v51, %v2091_v32  ;;  %v5866_v31 = vadd.s32 %v2116_v42, %v2112_v59 }
 0x129   :  { %v1652_v9 = vsel %vm5854_vm4, %v4661_v0, %v1648_v54  ;;  %v1292_v14 = vsub.s32 4, %v5793_v27  ;;  %v2585_v47 = vshrl.u32 %v2584_v38, 23  ;;  %vm5873_vm14 = vcmp.le.f32.partialorder %v1168_v57, 0.7853982 }
 0x12a   :  { %v1657_v63 = vsel %vm5846_vm9, %v1656_v5, %v1652_v9  ;;  %v2122_v29 = vadd.s32 %v2121_v35, %v2111_v43  ;;  %v1289_v23 = vmul.f32 %v1288_v25, %v1286_v26  ;;  %vm1170_vm15 = vcmp.lt.s32.totalorder %v5531_v8, 0 }
 0x12b   :  { %v1658_v10 = vmul.f32 %v1657_v63, %v1643_v58  ;;  %v4595_v0 = vadd.s32 4294967169, %v2585_v47  ;;  %v2124_v41 = vmul.u32 %v5569_v36, %v5805_v1  ;;  %vm2126_vm0 = vc.u32 %v5864_v12, %v5866_v31 }
 0x12c   :  { %v2123_v32 = vadd.s32 %v2122_v29, %v2113_v39  ;;  %v1290_v59 = vxor.u32 2147483648, %v1289_v23  ;;  %v1293_v40 = vsel %vm1170_vm15, %v1292_v14, %v5793_v27  ;;  %v7496_v35 = vand.u32 2147483647, %v5851_v19 }
 0x12d   :  { %v1659_v45 = vsel %vm1624_vm10, nan, %v1658_v10  ;;  %v2591_v42 = vadd.s32 1, %v4595_v0  ;;  %v1295_v4 = vsel %vm5873_vm14, 0, %v1293_v40  ;;  %vm1311_vm3 = vweird.f32 %v5531_v8 }
 0x12e   :  { %v1660_v57 = vmul.f32 %v1659_v45, %v5771_v52  ;;  %v2127_v48 = vadd.s32 1, %v2123_v32  ;;  %v1291_v51 = vsel %vm1170_vm15, %v1290_v59, %v1289_v23  ;;  %v1468_v43 = vadd.s32 3, %v1295_v4 }
 0x12f   :  { %v1294_v62 = vsel %vm5873_vm14, %v5531_v8, %v1291_v51  ;;  %vm2592_vm1 = vcmp.gt.s32.totalorder %v2591_v42, 0  ;;  %v1312_v49 = vand.u32 3, %v1295_v4 }
 0x130   :  { %v1661_v18 = vmul.f32 0.5, %v1660_v57  ;;  %v2128_v21 = vsel %vm2126_vm0, %v2127_v48, %v2123_v32  ;;  %v1296_v36 = vmul.f32 %v1294_v62, %v1294_v62  ;;  %v5899_v38 = vsel %vm2592_vm1, %v2591_v42, 0 }
 0x131   :  { %v2129_v1 = vadd.s32 %v2128_v21, %v2124_v41  ;;  %v1469_v29 = vand.u32 3, %v1468_v43  ;;  %vm1313_vm2 = vcmp.lt.s32.totalorder %v1312_v49, 2  ;;  %vm1314_vm5 = vcmp.eq.s32.totalorder %v1312_v49, 0 }
 0x132   :  { %v5892_v61 = vadd.f32 %v1661_v18, %v5531_v8  ;;  %v1297_v27 = vmul.f32 -0.001358992, %v1296_v36  ;;  %v1304_v11 = vmul.f32 -0.00019511016, %v1296_v36  ;;  %v5907_v32 = vand.u32 8388607, %v7496_v35 }
 0x133   :  { %v2130_v5 = vadd.s32 536870912, %v2129_v1  ;;  %v5910_v0 = vand.u32 31, %v5899_v38  ;;  %vm1317_vm6 = vcmp.eq.s32.totalorder %v1312_v49, 2  ;;  %vm1471_vm7 = vcmp.eq.s32.totalorder %v1469_v29, 0 }
 0x134   :  { %7546 = vst [vmem:[#allocation15_spill] sm:$0xff] %v5892_v61  ;;  %v7497_v50 = vand.u32 2147483647, %v5892_v61  ;;  %v1721_v13 = vand.u32 2139095040, %v5892_v61  ;;  %v1298_v25 = vadd.f32 0.041655596, %v1297_v27  ;;  %v5916_v18 = vadd.s32 %v5866_v31, %v5864_v12 }
 0x135   :  { %v1305_v54 = vadd.f32 0.008332121, %v1304_v11  ;;  %v5896_v58 = vshrl.u32 %v2130_v5, 30  ;;  %vm1474_vm10 = vcmp.eq.s32.totalorder %v1469_v29, 2  ;;  %vm1470_vm13 = vcmp.lt.s32.totalorder %v1469_v29, 2 }
 0x136   :  { %v1722_v39 = vshrl.u32 %v1721_v13, 23  ;;  %v1299_v26 = vmul.f32 %v1298_v25, %v1296_v36  ;;  %v1725_v14 = vand.u32 8388607, %v7497_v50  ;;  %v5920_v4 = vsub.s32 32, %v5910_v0 }
 0x137   :  { %v1306_v9 = vmul.f32 %v1305_v54, %v1296_v36  ;;  %v2132_v63 = vshll.u32 %v5896_v58, 30 }
 0x138   :  { %v4579_v47 = vadd.s32 4294967169, %v1722_v39  ;;  %v1300_v23 = vadd.f32 -0.4999988, %v1299_v26  ;;  %v1726_v41 = vor.u32 8388608, %v1725_v14  ;;  %v7547_v26 = vmov 2102212464  }
 0x139   :  { %v1307_v10 = vadd.f32 -0.16666654, %v1306_v9  ;;  %v5912_v40 = vsub.s32 %v2129_v1, %v2132_v63 }
 0x13a   :  { %v1728_v6 = vadd.s32 1, %v4579_v47  ;;  %v1301_v59 = vmul.f32 %v1300_v23, %v1296_v36  ;;  %v5922_v27 = vshll.u32 %v1726_v41, 8 }
 0x13b   :  { %v1308_v45 = vmul.f32 %v1307_v10, %v1296_v36  ;;  %vm2134_vm9 = vcmp.lt.s32.totalorder %v5912_v40, 0  ;;  %v2135_v13 = vsub.s32 0, %v5912_v40 }
 0x13c   :  { %vm1729_vm11 = vcmp.gt.s32.totalorder %v1728_v6, 0  ;;  %v1302_v57 = vadd.f32 1.0, %v1301_v59 }
 0x13d   :  { %v1309_v48 = vadd.f32 1.0, %v1308_v45  ;;  %v1730_v51 = vsel %vm1729_vm11, %v1728_v6, 0  ;;  %v2136_v41 = vsel %vm2134_vm9, %v2135_v13, %v5912_v40  ;;  %v1767_v13 = vand.u32 65535, %v5922_v27 }
 0x13e   :  { %v1732_v42 = vand.u32 31, %v1730_v51  ;;  %v1318_v1 = vxor.u32 2147483648, %v1302_v57  ;;  %v5937_v23 = vshrl.u32 %v1730_v51, 5 }
 0x13f   :  { %v1310_v36 = vmul.f32 %v1309_v48, %v1294_v62 }
 0x140   :  { %v1733_v11 = vsub.s32 32, %v1732_v42  ;;  %v1735_v5 = vshll.u32 %v7535_v17, %v1732_v42  ;;  %v1738_v43 = vshll.u32 %v7500_v53, %v1732_v42  ;;  %v1741_v54 = vshll.u32 %v7498_v55, %v1732_v42 }
 0x141   :  { %v1315_v12 = vxor.u32 2147483648, %v1310_v36  ;;  %v1319_v31 = vsel %vm1317_vm6, %v1318_v1, %v1310_v36  ;;  %v1476_v25 = vsel %vm1474_vm10, %v1318_v1, %v1310_v36  ;;  %v1744_v14 = vshll.u32 %v7547_v26, %v1732_v42 }
 0x142   :  { %v1736_v62 = vshrl.u32 %v7500_v53, %v1733_v11  ;;  %v1739_v39 = vshrl.u32 %v7498_v55, %v1733_v11  ;;  %v1742_v9 = vshrl.u32 %v7547_v26, %v1733_v11  ;;  %v1745_v10 = vshrl.u32 %v7512_v60, %v1733_v11 }
 0x143   :  { %v1316_v63 = vsel %vm1314_vm5, %v1302_v57, %v1315_v12  ;;  %v1473_v47 = vsel %vm1471_vm7, %v1302_v57, %v1315_v12  ;;  %v1747_v45 = vshll.u32 %v7512_v60, %v1732_v42  ;;  %v1748_v42 = vshrl.u32 %v7510_v7, %v1733_v11 }
 0x144   :  { %v1320_v6 = vsel %vm1313_vm2, %v1316_v63, %v1319_v31  ;;  %v1477_v59 = vsel %vm1470_vm13, %v1473_v47, %v1476_v25  ;;  %v1737_v51 = vor.u32 %v1736_v62, %v1735_v5  ;;  %v1740_v36 = vor.u32 %v1739_v39, %v1738_v43 }
 0x145   :  { %v1321_v48 = vsel %vm1311_vm3, nan, %v1320_v6  ;;  %v1478_v57 = vsel %vm1311_vm3, nan, %v1477_v59  ;;  %v1743_v29 = vor.u32 %v1742_v9, %v1741_v54  ;;  %v1746_v12 = vor.u32 %v1745_v10, %v1744_v14 }
 0x146   :  { %v1322_v1 = vmul.f32 %v1321_v48, %v5771_v52  ;;  %v1479_v49 = vmul.f32 %v1478_v57, %v5771_v52  ;;  %vm1750_vm8 = vcmp.lt.s32.totalorder %v5937_v23, 1  ;;  %vm1752_vm4 = vcmp.lt.s32.totalorder %v5937_v23, 3 }
 0x147   :  { %vm1751_vm12 = vcmp.lt.s32.totalorder %v5937_v23, 2  ;;  %vm1753_vm14 = vcmp.lt.s32.totalorder %v5937_v23, 4  ;;  %v1749_v52 = vor.u32 %v1748_v42, %v1747_v45  ;;  %v1758_v43 = vsel %vm1750_vm8, %v1737_v51, %v1740_v36 }
 0x148   :  { %v5957_v31 = vadd.f32 %v1322_v1, %v5711_v44  ;;  %v5960_v5 = vadd.f32 %v1479_v49, %v5714_v16  ;;  %v1759_v25 = vsel %vm1753_vm14, %v1746_v12, 920167782  ;;  %v2137_v54 = vclz %v2136_v41 }
 0x149   :  { %v1760_v9 = vsel %vm1752_vm4, %v1743_v29, %v1759_v25  ;;  %v1768_v14 = vshrl.u32 %v5922_v27, 16  ;;  %v1734_v63 = vshrl.u32 %v7535_v17, %v1733_v11  ;;  %v1762_v10 = vsel %vm1750_vm8, %v1740_v36, %v1743_v29 }
 0x14a   :  { %7548 = vst [vmem:[#allocation16_spill] sm:$0xff] %v5957_v31  ;;  %v1666_v62 = vsub.f32 %v5957_v31, %v5721_v28  ;;  %v1667_v39 = vsub.f32 %v5960_v5, %v5725_v2  ;;  %v1761_v47 = vsel %vm1751_vm12, %v1758_v43, %v1760_v9  ;;  %v1763_v6 = vsel %vm1753_vm14, %v1749_v52, 1326507024 }
 0x14b   :  { %7549 = vst [vmem:[#allocation17_spill] sm:$0xff] %v5960_v5  ;;  %v1764_v2 = vsel %vm1752_vm4, %v1746_v12, %v1763_v6  ;;  %v1791_v45 = vand.u32 65535, %v1761_v47  ;;  %v1792_v48 = vshrl.u32 %v1761_v47, 16  ;;  %v4586_v11 = vadd.s32 4294967294, %v2137_v54 }
 0x14c   :  { %v1668_v28 = vmul.f32 %v1666_v62, %v1666_v62  ;;  %v1669_v59 = vmul.f32 %v1667_v39, %v1667_v39  ;;  %v1765_v41 = vsel %vm1751_vm12, %v1762_v10, %v1764_v2  ;;  %v5987_v57 = vshrl.u32 %v5899_v38, 5 }
 0x14d   :  { %v1769_v49 = vand.u32 65535, %v1765_v41  ;;  %v1770_v42 = vshrl.u32 %v1765_v41, 16  ;;  %v2601_v52 = vshll.u32 %v7500_v53, %v5910_v0  ;;  %v1755_v43 = vsel %vm1753_vm14, %v1743_v29, 2102212464 }
 0x14e   :  { %v5989_v1 = vadd.f32 %v1669_v59, %v1668_v28  ;;  %v1794_v12 = vmul.u32 %v1792_v48, %v1767_v13  ;;  %v1795_v25 = vmul.u32 %v1791_v45, %v1768_v14  ;;  %v2602_v62 = vshrl.u32 %v7498_v55, %v5920_v4 }
 0x14f   :  { %v1754_v38 = vsel %vm1750_vm8, %v1734_v63, %v1737_v51  ;;  %v1793_v54 = vmul.u32 %v1791_v45, %v1767_v13  ;;  %v2604_v39 = vshll.u32 %v7498_v55, %v5910_v0  ;;  %v1771_v9 = vmul.u32 %v1769_v49, %v1767_v13 }
 0x150   :  { %4662 = vrsqrt.f32 %v5989_v1  ;;  %v1772_v47 = vmul.u32 %v1770_v42, %v1767_v13  ;;  %v1773_v10 = vmul.u32 %v1769_v49, %v1768_v14  ;;  %vm4587_vm15 = vcmp.lt.s32.totalorder %v4586_v11, 0 }
 0x151   :  { %v1756_v29 = vsel %vm1752_vm4, %v1740_v36, %v1755_v43  ;;  %v1796_v6 = vmul.u32 %v1792_v48, %v1768_v14  ;;  %v1797_v28 = vshll.u32 %v1794_v12, 16  ;;  %v1799_v59 = vshll.u32 %v1795_v25, 16 }
 0x152   :  { %v1774_v2 = vmul.u32 %v1770_v42, %v1768_v14  ;;  %v1775_v41 = vshll.u32 %v1772_v47, 16  ;;  %v1777_v35 = vshll.u32 %v1773_v10, 16  ;;  %v1798_v50 = vshrl.u32 %v1794_v12, 16 }
 0x153   :  { %v1800_v21 = vshrl.u32 %v1795_v25, 16  ;;  %vm1801_vm0 = vc.u32 %v1793_v54, %v1797_v28  ;;  %v1803_v51 = vadd.s32 %v1797_v28, %v1793_v54  ;;  %v2140_v63 = vsel %vm4587_vm15, 0, %v4586_v11 }
 0x154   :  { %vm1779_vm1 = vc.u32 %v1771_v9, %v1775_v41  ;;  %v1781_v45 = vadd.s32 %v1775_v41, %v1771_v9  ;;  %v1802_v13 = vsel %vm1801_vm0, 1, %v7502_v22  ;;  %v2141_v49 = vsub.s32 32, %v2140_v63 }
 0x155   :  { %v1776_v53 = vshrl.u32 %v1772_v47, 16  ;;  %v1780_v36 = vsel %vm1779_vm1, 1, %v7502_v22  ;;  %v1804_v48 = vadd.s32 %v1802_v13, %v1796_v6  ;;  %vm1805_vm2 = vc.u32 %v1803_v51, %v1799_v59 }
 0x156   :  { %v4663_v55 = vpop.eup %4662  ;;  %v1782_v42 = vadd.s32 %v1780_v36, %v1774_v2  ;;  %vm1783_vm3 = vc.u32 %v1781_v45, %v1777_v35  ;;  %v1806_v43 = vsel %vm1805_vm2, 1, %v7502_v22  ;;  %v2142_v25 = vshll.u32 %v5912_v40, %v2140_v63 }
 0x157   :  { %v1672_v14 = vmul.f32 %v4663_v55, %v5989_v1  ;;  %v1784_v12 = vsel %vm1783_vm3, 1, %v7502_v22  ;;  %v1808_v11 = vadd.s32 %v1806_v43, %v1804_v48  ;;  %v2143_v54 = vshrl.u32 %v5916_v18, %v2141_v49  ;;  %v6017_v22 = vld [vmem:[#allocation5 + $0x38] sm:$0xff] }
 0x158   :  { %v1778_v28 = vshrl.u32 %v1773_v10, 16  ;;  %v1786_v47 = vadd.s32 %v1784_v12, %v1782_v42  ;;  %v2145_v41 = vsub.s32 4294967266, %v2140_v63  ;;  %v1757_v6 = vsel %vm1751_vm12, %v1754_v38, %v1756_v29 }
 0x159   :  { %v1673_v9 = vmul.f32 %v4663_v55, %v1672_v14  ;;  %v6013_v13 = vadd.s32 %v1803_v51, %v1799_v59  ;;  %v1809_v2 = vadd.s32 %v1808_v11, %v1798_v50  ;;  %v2605_v35 = vshrl.u32 %v7547_v26, %v5920_v4 }
 0x15a   :  { %v1787_v36 = vadd.s32 %v1786_v47, %v1776_v53  ;;  %v2144_v48 = vor.u32 %v2143_v54, %v2142_v25  ;;  %v2146_v43 = vadd.s32 127, %v2145_v41  ;;  %vm2033_vm5 = vcmp.lt.s32.totalorder %v6017_v22, 0 }
 0x15b   :  { %v1674_v45 = vmul.f32 0.5, %v1673_v9  ;;  %v1810_v40 = vadd.s32 %v1809_v2, %v1800_v21  ;;  %v2598_v18 = vshll.u32 %v7535_v17, %v5910_v0  ;;  %v6022_v23 = vor.u32 %v2602_v62, %v2601_v52 }
 0x15c   :  { %v2607_v50 = vshll.u32 %v7547_v26, %v5910_v0  ;;  %v6026_v10 = vadd.s32 %v1787_v36, %v1778_v28  ;;  %v1811_v53 = vmul.u32 %v5922_v27, %v1757_v6  ;;  %v7550_v29 = vand.u32 2147483647, %v5465_v30 }
 0x15d   :  { %v1675_v38 = vsub.f32 1.5, %v1674_v45  ;;  %v2147_v59 = vshll.u32 %v2146_v43, 23  ;;  %v1814_v51 = vadd.s32 1, %v1810_v40  ;;  %v6035_v63 = vor.u32 %v2605_v35, %v2604_v39 }
 0x15e   :  { %vm6031_vm6 = vcmp.le.f32.partialorder %v7550_v29, 0.7853982  ;;  %v2610_v52 = vshll.u32 %v7512_v60, %v5910_v0  ;;  %v2611_v62 = vshrl.u32 %v7510_v7, %v5920_v4  ;;  %vm1813_vm7 = vc.u32 %v6026_v10, %v6013_v13 }
 0x15f   :  { %v1676_v49 = vmul.f32 %v4663_v55, %v1675_v38  ;;  %v2148_v27 = vor.u32 4788187, %v2147_v59  ;;  %v2151_v30 = vcvt.s32.f32 %v2144_v48  ;;  %vm1678_vm10 = vcmp.eq.f32.partialorder %v5989_v1, inf }
 0x160   :  { %v1681_v14 = vand.u32 2147483648, %v5989_v1  ;;  %v1815_v42 = vsel %vm1813_vm7, %v1814_v51, %v1810_v40  ;;  %v2608_v39 = vshrl.u32 %v7512_v60, %v5920_v4  ;;  %vm1680_vm11 = vcmp.eq.f32.partialorder %v5989_v1, 0.0 }
 0x161   :  { %v1677_v12 = vmul.f32 %v1676_v49, %v5989_v1  ;;  %v1816_v0 = vadd.s32 %v1815_v42, %v1811_v53  ;;  %v2149_v11 = vand.u32 2147483647, %v2148_v27  ;;  %v2155_v55 = vsub.s32 4, %v5896_v58 }
 0x162   :  { %v7553_v25 = vmov 2475754826   ;;  %v2612_v9 = vor.u32 %v2611_v62, %v2610_v52  ;;  %vm2613_vm13 = vcmp.lt.s32.totalorder %v5987_v57, 1  ;;  %vm2616_vm9 = vcmp.lt.s32.totalorder %v5987_v57, 4 }
 0x163   :  { %v2599_v54 = vshrl.u32 %v7553_v25, %v5920_v4  ;;  %v1679_v28 = vsel %vm1678_vm10, %v5989_v1, %v1677_v12  ;;  %v1817_v47 = vadd.s32 536870912, %v1816_v0  ;;  %v2152_v41 = vmul.f32 %v2151_v30, %v2149_v11 }
 0x164   :  { %v1682_v6 = vsel %vm1680_vm11, %v1681_v14, %v1679_v28  ;;  %v2609_v2 = vor.u32 %v2608_v39, %v2607_v50  ;;  %vm2614_vm8 = vcmp.lt.s32.totalorder %v5987_v57, 2  ;;  %vm2615_vm4 = vcmp.lt.s32.totalorder %v5987_v57, 3 }
 0x165   :  { %v6058_v35 = vadd.f32 %v1682_v6, %v5838_v56  ;;  %v6060_v45 = vshrl.u32 %v1817_v47, 30  ;;  %v2153_v36 = vxor.u32 2147483648, %v2152_v41  ;;  %v2625_v1 = vsel %vm2613_vm13, %v6022_v23, %v6035_v63 }
 0x166   :  { %v2626_v48 = vsel %vm2616_vm9, %v2612_v9, 1326507024  ;;  %v7554_v43 = vor.u32 8388608, %v5907_v32  ;;  %v2156_v38 = vsel %vm2033_vm5, %v2155_v55, %v5896_v58  ;;  %v6085_v32 = vor.u32 %v2599_v54, %v2598_v18 }
 0x167   :  { %v1819_v50 = vshll.u32 %v6060_v45, 30  ;;  %v2154_v56 = vsel %vm2033_vm5, %v2153_v36, %v2152_v41  ;;  %v2627_v53 = vsel %vm2615_vm4, %v2609_v2, %v2626_v48  ;;  %v2622_v58 = vsel %vm2616_vm9, %v2609_v2, 920167782 }
 0x168   :  { %v6070_v40 = vshll.u32 %v7554_v43, 8  ;;  %v6083_v29 = vsel %vm6031_vm6, %v6017_v22, %v2154_v56  ;;  %v2628_v59 = vsel %vm2614_vm8, %v2625_v1, %v2627_v53  ;;  %v2158_v49 = vsel %vm6031_vm6, 0, %v2156_v38 }
 0x169   :  { %v1820_v52 = vsub.s32 %v1816_v0, %v1819_v50  ;;  %v2159_v62 = vmul.f32 %v6083_v29, %v6083_v29  ;;  %v2633_v27 = vshrl.u32 %v2628_v59, 16  ;;  %v2621_v42 = vsel %vm2613_vm13, %v6085_v32, %v6022_v23 }
 0x16a   :  { %v2630_v51 = vand.u32 65535, %v6070_v40  ;;  %v2623_v39 = vsel %vm2615_vm4, %v6035_v63, %v2622_v58  ;;  %v2632_v12 = vand.u32 65535, %v2628_v59  ;;  %v2631_v54 = vshrl.u32 %v6070_v40, 16 }
 0x16b   :  { %vm1821_vm12 = vcmp.lt.s32.totalorder %v1820_v52, 0  ;;  %v1822_v30 = vsub.s32 0, %v1820_v52  ;;  %v2160_v18 = vmul.f32 -0.001358992, %v2159_v62  ;;  %v2167_v14 = vmul.f32 -0.00019511016, %v2159_v62 }
 0x16c   :  { %v6103_v0 = vmul.u32 %v2633_v27, %v2630_v51  ;;  %v6106_v28 = vand.u32 3, %v2158_v49  ;;  %v2624_v6 = vsel %vm2614_vm8, %v2621_v42, %v2623_v39  ;;  %v2634_v36 = vmul.u32 %v2632_v12, %v2630_v51 }
 0x16d   :  { %v1823_v11 = vsel %vm1821_vm12, %v1822_v30, %v1820_v52  ;;  %v2161_v21 = vadd.f32 0.041655596, %v2160_v18  ;;  %v2168_v55 = vadd.f32 0.008332121, %v2167_v14  ;;  %v2597_v50 = vshrl.u32 %v7535_v17, %v5920_v4 }
 0x16e   :  { %v1824_v9 = vclz %v1823_v11  ;;  %v2638_v1 = vshll.u32 %v6103_v0, 16  ;;  %v6113_v56 = vmul.u32 %v2632_v12, %v2631_v54  ;;  %v1812_v38 = vadd.s32 %v6013_v13, %v6026_v10 }
 0x16f   :  { %v2162_v47 = vmul.f32 %v2161_v21, %v2159_v62  ;;  %v2169_v41 = vmul.f32 %v2168_v55, %v2159_v62  ;;  %vm2179_vm15 = vcmp.eq.s32.totalorder %v6106_v28, 0  ;;  %vm2182_vm0 = vcmp.eq.s32.totalorder %v6106_v28, 2 }
 0x170   :  { %v4580_v2 = vadd.s32 4294967294, %v1824_v9  ;;  %v2655_v53 = vshrl.u32 %v2624_v6, 16  ;;  %vm1720_vm1 = vcmp.lt.s32.totalorder %v5892_v61, 0  ;;  %vm2178_vm2 = vcmp.lt.s32.totalorder %v6106_v28, 2 }
 0x171   :  { %v2163_v48 = vadd.f32 -0.4999988, %v2162_v47  ;;  %v2170_v43 = vadd.f32 -0.16666654, %v2169_v41  ;;  %v2654_v18 = vand.u32 65535, %v2624_v6  ;;  %vm2642_vm3 = vc.u32 %v2634_v36, %v2638_v1 }
 0x172   :  { %vm4581_vm14 = vcmp.lt.s32.totalorder %v4580_v2, 0  ;;  %v1842_v13 = vsub.s32 4, %v6060_v45  ;;  %v2618_v10 = vsel %vm2616_vm9, %v6035_v63, 2102212464  ;;  %v2637_v39 = vmul.u32 %v2633_v27, %v2631_v54 }
 0x173   :  { %v1827_v59 = vsel %vm4581_vm14, 0, %v4580_v2  ;;  %v2164_v58 = vmul.f32 %v2163_v48, %v2159_v62  ;;  %v2171_v30 = vmul.f32 %v2170_v43, %v2159_v62  ;;  %v2640_v12 = vshll.u32 %v6113_v56, 16 }
 0x174   :  { %v1828_v4 = vsub.s32 32, %v1827_v59  ;;  %v1829_v14 = vshll.u32 %v1820_v52, %v1827_v59  ;;  %v1832_v42 = vsub.s32 4294967266, %v1827_v59  ;;  %v6128_v62 = vmul.u32 %v2655_v53, %v2630_v51 }
 0x175   :  { %v6126_v55 = vadd.f32 1.0, %v2164_v58  ;;  %v2172_v9 = vadd.f32 1.0, %v2171_v30  ;;  %v2176_v47 = vadd.s32 3, %v2158_v49  ;;  %v7555_v52 = vmov 0  }
 0x176   :  { %v1830_v11 = vshrl.u32 %v1812_v38, %v1828_v4  ;;  %v1833_v21 = vadd.s32 127, %v1832_v42  ;;  %v2643_v41 = vsel %vm2642_vm3, 1, %v7555_v52  ;;  %v2644_v6 = vadd.s32 %v2638_v1, %v2634_v36 }
 0x177   :  { %v2183_v43 = vxor.u32 2147483648, %v6126_v55  ;;  %v2656_v59 = vmul.u32 %v2654_v18, %v2630_v51  ;;  %v6133_v63 = vmul.f32 %v2172_v9, %v6083_v29  ;;  %v2645_v27 = vadd.s32 %v2643_v41, %v2637_v39 }
 0x178   :  { %v1831_v2 = vor.u32 %v1830_v11, %v1829_v14  ;;  %v1834_v48 = vshll.u32 %v1833_v21, 23  ;;  %vm2646_vm5 = vc.u32 %v2644_v6, %v2640_v12  ;;  %v6135_v38 = vmul.u32 %v2654_v18, %v2631_v54 }
 0x179   :  { %v2647_v30 = vsel %vm2646_vm5, 1, %v7555_v52  ;;  %v2660_v49 = vshll.u32 %v6128_v62, 16  ;;  %v2180_v36 = vxor.u32 2147483648, %v6133_v63  ;;  %v2184_v1 = vsel %vm2182_vm0, %v2183_v43, %v6133_v63 }
 0x17a   :  { %v1835_v58 = vor.u32 4788187, %v1834_v48  ;;  %v1838_v4 = vcvt.s32.f32 %v1831_v2  ;;  %v2617_v29 = vsel %vm2613_vm13, %v2597_v50, %v6085_v32  ;;  %v2619_v51 = vsel %vm2615_vm4, %v6022_v23, %v2618_v10 }
 0x17b   :  { %v1843_v14 = vsel %vm1720_vm1, %v1842_v13, %v6060_v45  ;;  %v6152_v42 = vand.u32 3, %v2176_v47  ;;  %v2659_v39 = vmul.u32 %v2655_v53, %v2631_v54  ;;  %v2181_v12 = vsel %vm2179_vm15, %v6126_v55, %v2180_v36  ;;  %v6164_v54 = vld [vmem:[#allocation5 + $0x58] sm:$0xff] }
 0x17c   :  { %v1836_v18 = vand.u32 2147483647, %v1835_v58  ;;  %v2639_v11 = vshrl.u32 %v6103_v0, 16  ;;  %v2649_v21 = vadd.s32 %v2647_v30, %v2645_v27  ;;  %vm2664_vm6 = vc.u32 %v2656_v59, %v2660_v49 }
 0x17d   :  { %v2185_v23 = vsel %vm2178_vm2, %v2181_v12, %v2184_v1  ;;  %v2662_v50 = vshll.u32 %v6135_v38, 16  ;;  %v2665_v10 = vsel %vm2664_vm6, 1, %v7555_v52  ;;  %v7556_v45 = vand.u32 2147483647, %v5892_v61 }
 0x17e   :  { %v1839_v32 = vmul.f32 %v1838_v4, %v1836_v18  ;;  %4664 = vrcp.f32 %v2185_v23  ;;  %v2620_v0 = vsel %vm2614_vm8, %v2617_v29, %v2619_v51  ;;  %v2666_v13 = vadd.s32 %v2660_v49, %v2656_v59 }
 0x17f   :  { %vm1719_vm7 = vcmp.le.f32.partialorder %v7556_v45, 0.7853982  ;;  %v2667_v9 = vadd.s32 %v2665_v10, %v2659_v39  ;;  %vm2190_vm10 = vcmp.eq.s32.totalorder %v6152_v42, 2  ;;  %v2641_v28 = vshrl.u32 %v6113_v56, 16 }
 0x180   :  { %v1840_v53 = vxor.u32 2147483648, %v1839_v32  ;;  %v1845_v47 = vsel %vm1719_vm7, 0, %v1843_v14  ;;  %v2650_v41 = vadd.s32 %v2649_v21, %v2639_v11  ;;  %vm2186_vm11 = vcmp.lt.s32.totalorder %v6152_v42, 2 }
 0x181   :  { %vm2668_vm13 = vc.u32 %v2666_v13, %v2662_v50  ;;  %v3134_v2 = vand.u32 2139095040, %v6164_v54  ;;  %vm2187_vm9 = vcmp.eq.s32.totalorder %v6152_v42, 0  ;;  %v2661_v57 = vshrl.u32 %v6128_v62, 16 }
 0x182   :  { %v1841_v6 = vsel %vm1720_vm1, %v1840_v53, %v1839_v32  ;;  %v2669_v59 = vsel %vm2668_vm13, 1, %v7555_v52  ;;  %v2018_v58 = vadd.s32 3, %v1845_v47  ;;  %v2192_v56 = vsel %vm2190_vm10, %v2183_v43, %v6133_v63 }
 0x183   :  { %v1844_v48 = vsel %vm1719_vm7, %v5892_v61, %v1841_v6  ;;  %v2671_v4 = vadd.s32 %v2669_v59, %v2667_v9  ;;  %vm2199_vm8 = vweird.f32 %v2185_v23  ;;  %v6179_v49 = vadd.s32 %v2650_v41, %v2641_v28 }
 0x184   :  { %v1846_v27 = vmul.f32 %v1844_v48, %v1844_v48  ;;  %v4665_v30 = vpop.eup %4664  ;;  %v2663_v1 = vshrl.u32 %v6135_v38, 16  ;;  %v3135_v29 = vshrl.u32 %v3134_v2, 23  ;;  %v6182_v39 = vadd.s32 %v2666_v13, %v2662_v50 }
 0x185   :  { %v2195_v14 = vmul.f32 %v4665_v30, %v2185_v23  ;;  %v2203_v62 = vand.u32 2147483647, %v2185_v23  ;;  %v2205_v12 = vand.u32 2147483648, %v2185_v23  ;;  %v2672_v11 = vadd.s32 %v2671_v4, %v2661_v57 }
 0x186   :  { %v1847_v51 = vmul.f32 -0.001358992, %v1846_v27  ;;  %v1854_v18 = vmul.f32 -0.00019511016, %v1846_v27  ;;  %v4605_v21 = vadd.s32 4294967169, %v3135_v29  ;;  %vm2200_vm4 = vweird.f32 %v4665_v30 }
 0x187   :  { %v2196_v43 = vsub.f32 1.0, %v2195_v14  ;;  %v2189_v63 = vsel %vm2187_vm9, %v6126_v55, %v2180_v36  ;;  %v2673_v45 = vadd.s32 %v2672_v11, %v2663_v1  ;;  %v2674_v38 = vmul.u32 %v6070_v40, %v2620_v0  ;;  %vm6191_vm14 = vmor %vm2199_vm8, %vm2200_vm4 }
 0x188   :  { %v1848_v32 = vadd.f32 0.041655596, %v1847_v51  ;;  %v1855_v10 = vadd.f32 0.008332121, %v1854_v18  ;;  %v3141_v53 = vadd.s32 1, %v4605_v21  ;;  %vm2676_vm12 = vc.u32 %v6179_v49, %v6182_v39 }
 0x189   :  { %v2197_v50 = vmul.f32 %v4665_v30, %v2196_v43  ;;  %vm6195_vm15 = vcmp.eq.f32.partialorder %v2203_v62, 8.507059e+37  ;;  %v2206_v55 = vor.u32 1.1754944e-38, %v2205_v12  ;;  %v2677_v36 = vadd.s32 1, %v2673_v45 }
 0x18a   :  { %v1849_v9 = vmul.f32 %v1848_v32, %v1846_v27  ;;  %v1856_v28 = vmul.f32 %v1855_v10, %v1846_v27  ;;  %vm3142_vm0 = vcmp.gt.s32.totalorder %v3141_v53, 0  ;;  %v1862_v2 = vand.u32 3, %v1845_v47 }
 0x18b   :  { %v2198_v0 = vadd.f32 %v4665_v30, %v2197_v50  ;;  %v2019_v57 = vand.u32 3, %v2018_v58  ;;  %v2193_v59 = vsel %vm2186_vm11, %v2189_v63, %v2192_v56  ;;  %v2678_v23 = vsel %vm2676_vm12, %v2677_v36, %v2673_v45 }
 0x18c   :  { %v1850_v6 = vadd.f32 -0.4999988, %v1849_v9  ;;  %v1857_v40 = vadd.f32 -0.16666654, %v1856_v28  ;;  %v2679_v51 = vadd.s32 %v2678_v23, %v2674_v38  ;;  %v1717_v18 = vmul.f32 0.2, %v4846_v20 }
 0x18d   :  { %v2202_v29 = vsel %vm6191_vm14, %v4665_v30, %v2198_v0  ;;  %vm2174_vm1 = vweird.f32 %v6017_v22  ;;  %v3143_v62 = vsel %vm3142_vm0, %v3141_v53, 0  ;;  %vm1863_vm2 = vcmp.lt.s32.totalorder %v1862_v2, 2 }
 0x18e   :  { %v1851_v4 = vmul.f32 %v1850_v6, %v1846_v27  ;;  %v1858_v1 = vmul.f32 %v1857_v40, %v1846_v27  ;;  %v2207_v14 = vsel %vm6195_vm15, %v2206_v55, %v2202_v29  ;;  %v2680_v42 = vadd.s32 536870912, %v2679_v51 }
 0x18f   :  { %v2208_v12 = vmul.f32 %v2207_v14, %v2193_v59  ;;  %vm1864_vm3 = vcmp.eq.s32.totalorder %v1862_v2, 0  ;;  %vm1867_vm5 = vcmp.eq.s32.totalorder %v1862_v2, 2  ;;  %vm2024_vm6 = vcmp.eq.s32.totalorder %v2019_v57, 2 }
 0x190   :  { %v1852_v47 = vadd.f32 1.0, %v1851_v4  ;;  %v1859_v58 = vadd.f32 1.0, %v1858_v1  ;;  %v6207_v11 = vshrl.u32 %v2680_v42, 30  ;;  %vm2020_vm7 = vcmp.lt.s32.totalorder %v2019_v57, 2  ;;  %v6247_v42 = vld [vmem:[#allocation2 + $0x28] sm:$0xff] }
 0x191   :  { %v2209_v30 = vsel %vm2174_vm1, nan, %v2208_v12  ;;  %vm2021_vm10 = vcmp.eq.s32.totalorder %v2019_v57, 0  ;;  %v3145_v22 = vand.u32 31, %v3143_v62  ;;  %vm1861_vm11 = vweird.f32 %v5892_v61 }
 0x192   :  { %v1860_v27 = vmul.f32 %v1859_v58, %v1844_v48  ;;  %v1868_v56 = vxor.u32 2147483648, %v1852_v47  ;;  %v2210_v20 = vmul.f32 %v2209_v30, %v1717_v18  ;;  %v2682_v43 = vshll.u32 %v6207_v11, 30  ;;  %v6243_v58 = vld [vmem:[#allocation2 + $0x20] sm:$0xff] }
 0x193   :  { %v7504_v53 = vand.u32 2147483647, %v6164_v54  ;;  %v6219_v13 = vsub.s32 32, %v3145_v22  ;;  %v3148_v59 = vshll.u32 %v7535_v17, %v3145_v22  ;;  %v7564_v30 = vmov 2131351028  }
 0x194   :  { %v1865_v21 = vxor.u32 2147483648, %v1860_v27  ;;  %v1869_v32 = vsel %vm1867_vm5, %v1868_v56, %v1860_v27  ;;  %v2026_v10 = vsel %vm2024_vm6, %v1868_v56, %v1860_v27  ;;  %v2211_v63 = vmul.f32 0.5, %v2210_v20 }
 0x195   :  { %v6212_v48 = vsub.s32 %v2679_v51, %v2682_v43  ;;  %v3149_v29 = vshrl.u32 %v7553_v25, %v6219_v13  ;;  %v6239_v14 = vand.u32 8388607, %v7504_v53  ;;  %v3151_v56 = vshll.u32 %v7553_v25, %v3145_v22 }
 0x196   :  { %v1866_v45 = vsel %vm1864_vm3, %v1852_v47, %v1865_v21  ;;  %v2023_v38 = vsel %vm2021_vm10, %v1852_v47, %v1865_v21  ;;  %v6217_v50 = vadd.f32 %v2211_v63, %v5892_v61  ;;  %v6241_v47 = vshrl.u32 %v3143_v62, 5 }
 0x197   :  { %v1870_v9 = vsel %vm1863_vm2, %v1866_v45, %v1869_v32  ;;  %v2027_v28 = vsel %vm2020_vm7, %v2023_v38, %v2026_v10  ;;  %vm2684_vm13 = vcmp.lt.s32.totalorder %v6212_v48, 0  ;;  %v2685_v36 = vsub.s32 0, %v6212_v48 }
 0x198   :  { %7561 = vst [vmem:[#allocation18_spill] sm:$0xff] %v6217_v50  ;;  %v1871_v41 = vsel %vm1861_vm11, nan, %v1870_v9  ;;  %v2028_v55 = vsel %vm1861_vm11, nan, %v2027_v28  ;;  %v7505_v0 = vand.u32 2147483647, %v6217_v50  ;;  %v2271_v57 = vand.u32 2139095040, %v6217_v50 }
 0x199   :  { %v1872_v6 = vmul.f32 %v1871_v41, %v1717_v18  ;;  %v2029_v40 = vmul.f32 %v2028_v55, %v1717_v18  ;;  %v2686_v2 = vsel %vm2684_vm13, %v2685_v36, %v6212_v48  ;;  %v3152_v20 = vshrl.u32 %v7564_v30, %v6219_v13 }
 0x19a   :  { %v2275_v1 = vand.u32 8388607, %v7505_v0  ;;  %v2272_v51 = vshrl.u32 %v2271_v57, 23  ;;  %v2687_v18 = vclz %v2686_v2  ;;  %v3154_v62 = vshll.u32 %v7564_v30, %v3145_v22 }
 0x19b   :  { %v6228_v23 = vadd.f32 %v1872_v6, %v5957_v31  ;;  %v6231_v4 = vadd.f32 %v2029_v40, %v5960_v5  ;;  %v6255_v45 = vor.u32 %v3149_v29, %v3148_v59  ;;  %v3155_v38 = vshrl.u32 %v7547_v26, %v6219_v13 }
 0x19c   :  { %v4589_v21 = vadd.s32 4294967169, %v2272_v51  ;;  %v2276_v32 = vor.u32 8388608, %v2275_v1  ;;  %v4596_v10 = vadd.s32 4294967294, %v2687_v18  ;;  %v3157_v28 = vshll.u32 %v7547_v26, %v3145_v22 }
 0x19d   :  { %7562 = vst [vmem:[#allocation19_spill] sm:$0xff] %v6228_v23  ;;  %v2216_v12 = vsub.f32 %v6228_v23, %v6243_v58  ;;  %v2217_v27 = vsub.f32 %v6231_v4, %v6247_v42  ;;  %v3158_v41 = vshrl.u32 %v7512_v60, %v6219_v13  ;;  %v6267_v6 = vshll.u32 %v7512_v60, %v3145_v22 }
 0x19e   :  { %7563 = vst [vmem:[#allocation20_spill] sm:$0xff] %v6231_v4  ;;  %v2278_v9 = vadd.s32 1, %v4589_v21  ;;  %vm4597_vm9 = vcmp.lt.s32.totalorder %v4596_v10, 0  ;;  %v6271_v40 = vshrl.u32 %v7510_v7, %v6219_v13  ;;  %v6273_v57 = vshll.u32 %v2276_v32, 8 }
 0x19f   :  { %v2218_v43 = vmul.f32 %v2216_v12, %v2216_v12  ;;  %v2219_v63 = vmul.f32 %v2217_v27, %v2217_v27  ;;  %v6264_v36 = vsel %vm4597_vm9, 0, %v4596_v10  ;;  %v6276_v59 = vor.u32 %v3152_v20, %v3151_v56 }
 0x1a0   :  { %vm2279_vm8 = vcmp.gt.s32.totalorder %v2278_v9, 0  ;;  %v2695_v2 = vsub.s32 4294967266, %v6264_v36  ;;  %vm3163_vm4 = vcmp.lt.s32.totalorder %v6241_v47, 1  ;;  %v2675_v22 = vadd.s32 %v6182_v39, %v6179_v49 }
 0x1a1   :  { %v6262_v55 = vadd.f32 %v2219_v63, %v2218_v43  ;;  %v2280_v1 = vsel %vm2279_vm8, %v2278_v9, 0  ;;  %v6283_v51 = vor.u32 %v3155_v38, %v3154_v62  ;;  %v6285_v27 = vor.u32 %v3158_v41, %v3157_v28 }
 0x1a2   :  { %v2282_v18 = vand.u32 31, %v2280_v1  ;;  %v2696_v12 = vadd.s32 127, %v2695_v2  ;;  %v6289_v20 = vshrl.u32 %v2280_v1, 5  ;;  %v6292_v21 = vand.u32 65535, %v6273_v57 }
 0x1a3   :  { %4666 = vrsqrt.f32 %v6262_v55  ;;  %v6295_v32 = vshrl.u32 %v6273_v57, 16  ;;  %v6301_v49 = vsel %vm3163_vm4, %v6255_v45, %v6276_v59  ;;  %vm3166_vm12 = vcmp.lt.s32.totalorder %v6241_v47, 4 }
 0x1a4   :  { %v2283_v39 = vsub.s32 32, %v2282_v18  ;;  %v2285_v10 = vshll.u32 %v7535_v17, %v2282_v18  ;;  %v2288_v62 = vshll.u32 %v7553_v25, %v2282_v18  ;;  %v2291_v43 = vshll.u32 %v7564_v30, %v2282_v18 }
 0x1a5   :  { %v2294_v63 = vshll.u32 %v7547_v26, %v2282_v18  ;;  %v2297_v38 = vshll.u32 %v7512_v60, %v2282_v18  ;;  %v2691_v9 = vsub.s32 32, %v6264_v36  ;;  %v2692_v28 = vshll.u32 %v6212_v48, %v6264_v36 }
 0x1a6   :  { %v2286_v2 = vshrl.u32 %v7553_v25, %v2283_v39  ;;  %v2289_v1 = vshrl.u32 %v7564_v30, %v2283_v39  ;;  %v2292_v53 = vshrl.u32 %v7547_v26, %v2283_v39  ;;  %v2697_v0 = vshll.u32 %v2696_v12, 23 }
 0x1a7   :  { %v2295_v56 = vshrl.u32 %v7512_v60, %v2283_v39  ;;  %v2298_v61 = vshrl.u32 %v7510_v7, %v2283_v39  ;;  %vm2300_vm14 = vcmp.lt.s32.totalorder %v6289_v20, 1  ;;  %vm2228_vm15 = vcmp.eq.f32.partialorder %v6262_v55, inf }
 0x1a8   :  { %v2287_v18 = vor.u32 %v2286_v2, %v2285_v10  ;;  %v6320_v48 = vor.u32 %v2289_v1, %v2288_v62  ;;  %v2293_v36 = vor.u32 %v2292_v53, %v2291_v43  ;;  %vm2303_vm0 = vcmp.lt.s32.totalorder %v6289_v20, 4 }
 0x1a9   :  { %v4667_v41 = vpop.eup %4666  ;;  %v2296_v15 = vor.u32 %v2295_v56, %v2294_v63  ;;  %v2299_v24 = vor.u32 %v2298_v61, %v2297_v38  ;;  %vm2302_vm1 = vcmp.lt.s32.totalorder %v6289_v20, 3  ;;  %vm2301_vm2 = vcmp.lt.s32.totalorder %v6289_v20, 2 }
 0x1aa   :  { %v2222_v29 = vmul.f32 %v4667_v41, %v6262_v55  ;;  %v2308_v12 = vsel %vm2300_vm14, %v2287_v18, %v6320_v48  ;;  %v2312_v10 = vsel %vm2300_vm14, %v6320_v48, %v2293_v36  ;;  %v2693_v62 = vshrl.u32 %v2675_v22, %v2691_v9 }
 0x1ab   :  { %v2284_v53 = vshrl.u32 %v7535_v17, %v2283_v39  ;;  %v2313_v61 = vsel %vm2303_vm0, %v2299_v24, 1326507024  ;;  %vm2230_vm3 = vcmp.eq.f32.partialorder %v6262_v55, 0.0  ;;  %v2231_v56 = vand.u32 2147483648, %v6262_v55 }
 0x1ac   :  { %v2223_v8 = vmul.f32 %v4667_v41, %v2222_v29  ;;  %v2309_v29 = vsel %vm2303_vm0, %v2296_v15, 920167782  ;;  %v2314_v63 = vsel %vm2302_vm1, %v2296_v15, %v2313_v61  ;;  %v2698_v38 = vor.u32 4788187, %v2697_v0  ;;  %v6356_v61 = vld [vmem:[#allocation5 + $0x48] sm:$0xff] }
 0x1ad   :  { %v2310_v43 = vsel %vm2302_vm1, %v2293_v36, %v2309_v29  ;;  %v2315_v39 = vsel %vm2301_vm2, %v2312_v10, %v2314_v63  ;;  %v2304_v5 = vsel %vm2300_vm14, %v2284_v53, %v2287_v18  ;;  %v2694_v29 = vor.u32 %v2693_v62, %v2692_v28 }
 0x1ae   :  { %v2224_v2 = vmul.f32 0.5, %v2223_v8  ;;  %v2311_v8 = vsel %vm2301_vm2, %v2308_v12, %v2310_v43  ;;  %v2319_v9 = vand.u32 65535, %v2315_v39  ;;  %v2320_v24 = vshrl.u32 %v2315_v39, 16 }
 0x1af   :  { %v2341_v1 = vand.u32 65535, %v2311_v8  ;;  %v2342_v7 = vshrl.u32 %v2311_v8, 16  ;;  %v3172_v15 = vsel %vm3166_vm12, %v6285_v27, 920167782  ;;  %v2305_v12 = vsel %vm2303_vm0, %v2293_v36, 2102212464 }
 0x1b0   :  { %v2225_v22 = vsub.f32 1.5, %v2224_v2  ;;  %v2321_v2 = vmul.u32 %v2319_v9, %v6292_v21  ;;  %v2322_v0 = vmul.u32 %v2320_v24, %v6292_v21  ;;  %v2323_v10 = vmul.u32 %v2319_v9, %v6295_v32 }
 0x1b1   :  { %vm2583_vm5 = vcmp.lt.s32.totalorder %v6356_v61, 0  ;;  %vm3165_vm6 = vcmp.lt.s32.totalorder %v6241_v47, 3  ;;  %v2344_v18 = vmul.u32 %v2342_v7, %v6292_v21  ;;  %v2345_v36 = vmul.u32 %v2341_v1, %v6295_v32 }
 0x1b2   :  { %v2226_v60 = vmul.f32 %v4667_v41, %v2225_v22  ;;  %v2343_v41 = vmul.u32 %v2341_v1, %v6292_v21  ;;  %v7565_v62 = vand.u32 2147483647, %v5851_v19  ;;  %v2324_v43 = vmul.u32 %v2320_v24, %v6295_v32 }
 0x1b3   :  { %v2325_v63 = vshll.u32 %v2322_v0, 16  ;;  %v2327_v22 = vshll.u32 %v2323_v10, 16  ;;  %v2699_v8 = vand.u32 2147483647, %v2698_v38  ;;  %v2346_v39 = vmul.u32 %v2342_v7, %v6295_v32 }
 0x1b4   :  { %v2227_v28 = vmul.f32 %v2226_v60, %v6262_v55  ;;  %vm6366_vm7 = vcmp.le.f32.partialorder %v7565_v62, 0.7853982  ;;  %v2347_v21 = vshll.u32 %v2344_v18, 16  ;;  %v2701_v9 = vcvt.s32.f32 %v2694_v29 }
 0x1b5   :  { %vm3164_vm10 = vcmp.lt.s32.totalorder %v6241_v47, 2  ;;  %vm2329_vm11 = vc.u32 %v2321_v2, %v2325_v63  ;;  %v2331_v1 = vadd.s32 %v2325_v63, %v2321_v2  ;;  %v2349_v62 = vshll.u32 %v2345_v36, 16  ;;  %v6478_v47 = vld [vmem:[#allocation5 + $0x68] sm:$0xff] }
 0x1b6   :  { %v2229_v60 = vsel %vm2228_vm15, %v6262_v55, %v2227_v28  ;;  %v2326_v38 = vshrl.u32 %v2322_v0, 16  ;;  %v2330_v31 = vsel %vm2329_vm11, 1, %v7555_v52  ;;  %vm2351_vm13 = vc.u32 %v2343_v41, %v2347_v21 }
 0x1b7   :  { %v2232_v19 = vsel %vm2230_vm3, %v2231_v56, %v2229_v60  ;;  %v2332_v28 = vadd.s32 %v2330_v31, %v2324_v43  ;;  %vm2333_vm9 = vc.u32 %v2331_v1, %v2327_v22  ;;  %v2352_v7 = vsel %vm2351_vm13, 1, %v7555_v52 }
 0x1b8   :  { %v6379_v24 = vadd.f32 %v2232_v19, %v6058_v35  ;;  %v2353_v32 = vadd.s32 %v2347_v21, %v2343_v41  ;;  %v2306_v55 = vsel %vm2302_vm1, %v6320_v48, %v2305_v12  ;;  %v2334_v56 = vsel %vm2333_vm9, 1, %v7555_v52 }
 0x1b9   :  { %v2354_v29 = vadd.s32 %v2352_v7, %v2346_v39  ;;  %v2702_v2 = vmul.f32 %v2701_v9, %v2699_v8  ;;  %v2328_v63 = vshrl.u32 %v2323_v10, 16  ;;  %v2336_v35 = vadd.s32 %v2334_v56, %v2332_v28 }
 0x1ba   :  { %v2348_v60 = vshrl.u32 %v2344_v18, 16  ;;  %vm2355_vm8 = vc.u32 %v2353_v32, %v2349_v62  ;;  %v2705_v31 = vsub.s32 4, %v6207_v11  ;;  %v3175_v41 = vsel %vm3163_vm4, %v6276_v59, %v6283_v51 }
 0x1bb   :  { %v2356_v0 = vsel %vm2355_vm8, 1, %v7555_v52  ;;  %v2703_v19 = vxor.u32 2147483648, %v2702_v2  ;;  %v2337_v43 = vadd.s32 %v2336_v35, %v2326_v38  ;;  %v2350_v48 = vshrl.u32 %v2345_v36, 16 }
 0x1bc   :  { %v2358_v12 = vadd.s32 %v2356_v0, %v2354_v29  ;;  %v7568_v22 = vor.u32 %v6271_v40, %v6267_v6  ;;  %v2307_v18 = vsel %vm2301_vm2, %v2304_v5, %v2306_v55  ;;  %v6400_v8 = vadd.s32 %v2353_v32, %v2349_v62 }
 0x1bd   :  { %v2704_v39 = vsel %vm2583_vm5, %v2703_v19, %v2702_v2  ;;  %v3173_v21 = vsel %vm3165_vm6, %v6283_v51, %v3172_v15  ;;  %v6407_v36 = vadd.s32 %v2337_v43, %v2328_v63  ;;  %v7569_v40 = vor.u32 8388608, %v6239_v14 }
 0x1be   :  { %v3176_v10 = vsel %vm3166_vm12, %v7568_v22, 1326507024  ;;  %v2359_v9 = vadd.s32 %v2358_v12, %v2348_v60  ;;  %v2707_v6 = vsel %vm6366_vm7, %v6356_v61, %v2704_v39  ;;  %v2361_v38 = vmul.u32 %v6273_v57, %v2307_v18 }
 0x1bf   :  { %v6414_v20 = vshll.u32 %v7569_v40, 8  ;;  %v2709_v5 = vmul.f32 %v2707_v6, %v2707_v6  ;;  %v3177_v1 = vsel %vm3165_vm6, %v6285_v27, %v3176_v10  ;;  %v2706_v15 = vsel %vm2583_vm5, %v2705_v31, %v6207_v11 }
 0x1c0   :  { %v2360_v62 = vadd.s32 %v2359_v9, %v2350_v48  ;;  %v3178_v28 = vsel %vm3164_vm10, %v3175_v41, %v3177_v1  ;;  %vm2363_vm14 = vc.u32 %v6407_v36, %v6400_v8  ;;  %v3174_v32 = vsel %vm3164_vm10, %v6301_v49, %v3173_v21 }
 0x1c1   :  { %v2710_v14 = vmul.f32 -0.001358992, %v2709_v5  ;;  %v2717_v7 = vmul.f32 -0.00019511016, %v2709_v5  ;;  %v3180_v55 = vand.u32 65535, %v6414_v20  ;;  %v3181_v57 = vshrl.u32 %v6414_v20, 16 }
 0x1c2   :  { %v2364_v27 = vadd.s32 1, %v2360_v62  ;;  %v3182_v56 = vand.u32 65535, %v3178_v28  ;;  %v2708_v11 = vsel %vm6366_vm7, 0, %v2706_v15  ;;  %v3183_v63 = vshrl.u32 %v3178_v28, 16 }
 0x1c3   :  { %v2711_v29 = vadd.f32 0.041655596, %v2710_v14  ;;  %v2718_v2 = vadd.f32 0.008332121, %v2717_v7  ;;  %v3205_v0 = vshrl.u32 %v3174_v32, 16  ;;  %v2725_v49 = vand.u32 3, %v2708_v11 }
 0x1c4   :  { %v2365_v35 = vsel %vm2363_vm14, %v2364_v27, %v2360_v62  ;;  %v6434_v60 = vmul.u32 %v3182_v56, %v3181_v57  ;;  %v3147_v43 = vshrl.u32 %v7535_v17, %v6219_v13  ;;  %v3184_v48 = vmul.u32 %v3182_v56, %v3180_v55 }
 0x1c5   :  { %v2366_v19 = vadd.s32 %v2365_v35, %v2361_v38  ;;  %v2712_v31 = vmul.f32 %v2711_v29, %v2709_v5  ;;  %v2719_v41 = vmul.f32 %v2718_v2, %v2709_v5  ;;  %v3185_v12 = vmul.u32 %v3183_v63, %v3180_v55 }
 0x1c6   :  { %v3204_v18 = vand.u32 65535, %v3174_v32  ;;  %v3168_v39 = vsel %vm3166_vm12, %v6283_v51, 2102212464  ;;  %v3190_v9 = vshll.u32 %v6434_v60, 16  ;;  %v6442_v40 = vmul.u32 %v3205_v0, %v3180_v55 }
 0x1c7   :  { %v2367_v22 = vadd.s32 536870912, %v2366_v19  ;;  %v2713_v10 = vadd.f32 -0.4999988, %v2712_v31  ;;  %v2720_v53 = vadd.f32 -0.16666654, %v2719_v41  ;;  %v3188_v21 = vshll.u32 %v3185_v12, 16 }
 0x1c8   :  { %v2726_v13 = vadd.s32 3, %v2708_v11  ;;  %vm2732_vm15 = vcmp.eq.s32.totalorder %v2725_v49, 2  ;;  %v3187_v15 = vmul.u32 %v3183_v63, %v3181_v57  ;;  %v3206_v51 = vmul.u32 %v3204_v18, %v3180_v55 }
 0x1c9   :  { %v6444_v1 = vshrl.u32 %v2367_v22, 30  ;;  %v2714_v62 = vmul.f32 %v2713_v10, %v2709_v5  ;;  %v2721_v38 = vmul.f32 %v2720_v53, %v2709_v5  ;;  %vm3192_vm0 = vc.u32 %v3184_v48, %v3188_v21 }
 0x1ca   :  { %v3194_v28 = vadd.s32 %v3188_v21, %v3184_v48  ;;  %v3193_v27 = vsel %vm3192_vm0, 1, %v7555_v52  ;;  %v6450_v56 = vmul.u32 %v3204_v18, %v3181_v57  ;;  %v3210_v29 = vshll.u32 %v6442_v40, 16 }
 0x1cb   :  { %v2369_v14 = vshll.u32 %v6444_v1, 30  ;;  %v6447_v7 = vadd.f32 1.0, %v2714_v62  ;;  %v2722_v32 = vadd.f32 1.0, %v2721_v38  ;;  %vm2728_vm1 = vcmp.lt.s32.totalorder %v2725_v49, 2 }
 0x1cc   :  { %vm3196_vm12 = vc.u32 %v3194_v28, %v3190_v9  ;;  %vm2729_vm2 = vcmp.eq.s32.totalorder %v2725_v49, 0  ;;  %v3189_v63 = vshrl.u32 %v3185_v12, 16  ;;  %v3195_v35 = vadd.s32 %v3193_v27, %v3187_v15 }
 0x1cd   :  { %v2370_v2 = vsub.s32 %v2366_v19, %v2369_v14  ;;  %v2723_v5 = vmul.f32 %v2722_v32, %v2707_v6  ;;  %v2733_v11 = vxor.u32 2147483648, %v6447_v7  ;;  %v3197_v31 = vsel %vm3196_vm12, 1, %v7555_v52 }
 0x1ce   :  { %v3209_v22 = vmul.u32 %v3205_v0, %v3181_v57  ;;  %v3212_v10 = vshll.u32 %v6450_v56, 16  ;;  %vm3214_vm5 = vc.u32 %v3206_v51, %v3210_v29  ;;  %v3216_v53 = vadd.s32 %v3210_v29, %v3206_v51 }
 0x1cf   :  { %vm2371_vm3 = vcmp.lt.s32.totalorder %v2370_v2, 0  ;;  %v2372_v41 = vsub.s32 0, %v2370_v2  ;;  %v2730_v55 = vxor.u32 2147483648, %v2723_v5  ;;  %v2734_v48 = vsel %vm2732_vm15, %v2733_v11, %v2723_v5 }
 0x1d0   :  { %v3199_v18 = vadd.s32 %v3197_v31, %v3195_v35  ;;  %v3215_v21 = vsel %vm3214_vm5, 1, %v7555_v52  ;;  %v2727_v9 = vand.u32 3, %v2726_v13  ;;  %v3167_v38 = vsel %vm3163_vm4, %v3147_v43, %v6255_v45 }
 0x1d1   :  { %v2373_v19 = vsel %vm2371_vm3, %v2372_v41, %v2370_v2  ;;  %v2731_v6 = vsel %vm2729_vm2, %v6447_v7, %v2730_v55  ;;  %v3169_v0 = vsel %vm3165_vm6, %v6276_v59, %v3168_v39  ;;  %v3217_v15 = vadd.s32 %v3215_v21, %v3209_v22 }
 0x1d2   :  { %v2374_v12 = vclz %v2373_v19  ;;  %v2735_v62 = vsel %vm2728_vm1, %v2731_v6, %v2734_v48  ;;  %vm3218_vm7 = vc.u32 %v3216_v53, %v3212_v10  ;;  %v3191_v28 = vshrl.u32 %v6434_v60, 16 }
 0x1d3   :  { %4668 = vrcp.f32 %v2735_v62  ;;  %v3200_v14 = vadd.s32 %v3199_v18, %v3189_v63  ;;  %v3219_v32 = vsel %vm3218_vm7, 1, %v7555_v52  ;;  %v2362_v49 = vadd.s32 %v6400_v8, %v6407_v36 }
 0x1d4   :  { %v4590_v57 = vadd.s32 4294967294, %v2374_v12  ;;  %vm2740_vm13 = vcmp.eq.s32.totalorder %v2727_v9, 2  ;;  %v3170_v45 = vsel %vm3164_vm10, %v3167_v38, %v3169_v0  ;;  %v3211_v43 = vshrl.u32 %v6442_v40, 16 }
 0x1d5   :  { %v3221_v51 = vadd.s32 %v3219_v32, %v3217_v15  ;;  %vm2737_vm4 = vcmp.eq.s32.totalorder %v2727_v9, 0  ;;  %vm2736_vm6 = vcmp.lt.s32.totalorder %v2727_v9, 2  ;;  %v2742_v29 = vsel %vm2740_vm13, %v2733_v11, %v2723_v5 }
 0x1d6   :  { %vm4591_vm11 = vcmp.lt.s32.totalorder %v4590_v57, 0  ;;  %v6473_v63 = vadd.s32 %v3200_v14, %v3191_v28  ;;  %v3213_v8 = vshrl.u32 %v6450_v56, 16  ;;  %v6476_v41 = vadd.s32 %v3216_v53, %v3212_v10 }
 0x1d7   :  { %v2377_v13 = vsel %vm4591_vm11, 0, %v4590_v57  ;;  %vm2749_vm10 = vweird.f32 %v2735_v62  ;;  %v2753_v40 = vand.u32 2147483647, %v2735_v62  ;;  %v2755_v48 = vand.u32 2147483648, %v2735_v62 }
 0x1d8   :  { %v2378_v59 = vsub.s32 32, %v2377_v13  ;;  %v2379_v39 = vshll.u32 %v2370_v2, %v2377_v13  ;;  %v2382_v27 = vsub.s32 4294967266, %v2377_v13  ;;  %v3222_v2 = vadd.s32 %v3221_v51, %v3211_v43 }
 0x1d9   :  { %v4669_v60 = vpop.eup %4668  ;;  %v2739_v5 = vsel %vm2737_vm4, %v6447_v7, %v2730_v55  ;;  %v3224_v56 = vmul.u32 %v6414_v20, %v3170_v45  ;;  %v3684_v18 = vand.u32 2139095040, %v6478_v47  ;;  %vm3226_vm8 = vc.u32 %v6473_v63, %v6476_v41 }
 0x1da   :  { %v2380_v36 = vshrl.u32 %v2362_v49, %v2378_v59  ;;  %v2383_v35 = vadd.s32 127, %v2382_v27  ;;  %v2745_v31 = vmul.f32 %v4669_v60, %v2735_v62  ;;  %vm2750_vm9 = vweird.f32 %v4669_v60 }
 0x1db   :  { %v3223_v11 = vadd.s32 %v3222_v2, %v3213_v8  ;;  %vm6487_vm14 = vmor %vm2749_vm10, %vm2750_vm9  ;;  %v2756_v38 = vor.u32 1.1754944e-38, %v2755_v48  ;;  %vm2754_vm15 = vcmp.eq.f32.partialorder %v2753_v40, 8.507059e+37  ;;  %v2392_v20 = vsub.s32 4, %v6444_v1 }
 0x1dc   :  { %v2381_v22 = vor.u32 %v2380_v36, %v2379_v39  ;;  %v2384_v19 = vshll.u32 %v2383_v35, 23  ;;  %v2746_v6 = vsub.f32 1.0, %v2745_v31  ;;  %v2743_v55 = vsel %vm2736_vm6, %v2739_v5, %v2742_v29 }
 0x1dd   :  { %v3227_v57 = vadd.s32 1, %v3223_v11  ;;  %v3685_v28 = vshrl.u32 %v3684_v18, 23  ;;  %v6496_v49 = vmul.f32 0.2, %v4850_v33  ;;  %vm2270_vm0 = vcmp.lt.s32.totalorder %v6217_v50, 0 }
 0x1de   :  { %v2385_v10 = vor.u32 4788187, %v2384_v19  ;;  %v2388_v53 = vcvt.s32.f32 %v2381_v22  ;;  %v2747_v21 = vmul.f32 %v4669_v60, %v2746_v6  ;;  %vm2724_vm12 = vweird.f32 %v6356_v61 }
 0x1df   :  { %v3228_v15 = vsel %vm3226_vm8, %v3227_v57, %v3223_v11  ;;  %v7572_v45 = vand.u32 2147483647, %v6217_v50  ;;  %v2393_v59 = vsel %vm2270_vm0, %v2392_v20, %v6444_v1  ;;  %v4615_v39 = vadd.s32 4294967169, %v3685_v28 }
 0x1e0   :  { %v2386_v0 = vand.u32 2147483647, %v2385_v10  ;;  %v2748_v7 = vadd.f32 %v4669_v60, %v2747_v21  ;;  %v3229_v62 = vadd.s32 %v3228_v15, %v3224_v56  ;;  %vm2411_vm5 = vweird.f32 %v6217_v50 }
 0x1e1   :  { %vm2269_vm1 = vcmp.le.f32.partialorder %v7572_v45, 0.7853982  ;;  %v3691_v40 = vadd.s32 1, %v4615_v39 }
 0x1e2   :  { %v2389_v14 = vmul.f32 %v2388_v53, %v2386_v0  ;;  %v2752_v32 = vsel %vm6487_vm14, %v4669_v60, %v2748_v7  ;;  %v3230_v51 = vadd.s32 536870912, %v3229_v62  ;;  %v2395_v36 = vsel %vm2269_vm1, 0, %v2393_v59 }
 0x1e3   :  { %v2757_v13 = vsel %vm2754_vm15, %v2756_v38, %v2752_v32  ;;  %v6510_v1 = vand.u32 3, %v2395_v36  ;;  %v2568_v19 = vadd.s32 3, %v2395_v36  ;;  %v7516_v53 = vand.u32 2147483647, %v6478_v47 }
 0x1e4   :  { %v2390_v9 = vxor.u32 2147483648, %v2389_v14  ;;  %v2758_v43 = vmul.f32 %v2757_v13, %v2743_v55  ;;  %v6503_v29 = vshrl.u32 %v3230_v51, 30  ;;  %vm3692_vm3 = vcmp.gt.s32.totalorder %v3691_v40, 0 }
 0x1e5   :  { %v2569_v57 = vand.u32 3, %v2568_v19  ;;  %v3693_v28 = vsel %vm3692_vm3, %v3691_v40, 0  ;;  %vm2413_vm7 = vcmp.lt.s32.totalorder %v6510_v1, 2  ;;  %vm2414_vm11 = vcmp.eq.s32.totalorder %v6510_v1, 0 }
 0x1e6   :  { %v2391_v27 = vsel %vm2270_vm0, %v2390_v9, %v2389_v14  ;;  %v2759_v60 = vsel %vm2724_vm12, nan, %v2758_v43  ;;  %v3232_v35 = vshll.u32 %v6503_v29, 30  ;;  %vm2417_vm13 = vcmp.eq.s32.totalorder %v6510_v1, 2 }
 0x1e7   :  { %v2394_v33 = vsel %vm2269_vm1, %v6217_v50, %v2391_v27  ;;  %v2760_v8 = vmul.f32 %v2759_v60, %v6496_v49  ;;  %vm2571_vm4 = vcmp.eq.s32.totalorder %v2569_v57, 0  ;;  %v6531_v51 = vand.u32 31, %v3693_v28 }
 0x1e8   :  { %v2396_v61 = vmul.f32 %v2394_v33, %v2394_v33  ;;  %v6508_v22 = vsub.s32 %v3229_v62, %v3232_v35  ;;  %v6527_v62 = vand.u32 8388607, %v7516_v53  ;;  %vm2570_vm6 = vcmp.lt.s32.totalorder %v2569_v57, 2  ;;  %v6636_v53 = vld [vmem:[#allocation5 + $0x58] sm:$0xff] }
 0x1e9   :  { %v2761_v31 = vmul.f32 0.5, %v2760_v8  ;;  %vm2574_vm10 = vcmp.eq.s32.totalorder %v2569_v57, 2  ;;  %v3225_v60 = vadd.s32 %v6476_v41, %v6473_v63  ;;  %v6538_v40 = vshrl.u32 %v3693_v28, 5 }
 0x1ea   :  { %v2397_v48 = vmul.f32 -0.001358992, %v2396_v61  ;;  %v2404_v2 = vmul.f32 -0.00019511016, %v2396_v61  ;;  %vm3234_vm2 = vcmp.lt.s32.totalorder %v6508_v22, 0  ;;  %v3235_v56 = vsub.s32 0, %v6508_v22 }
 0x1eb   :  { %v6513_v6 = vadd.f32 %v2761_v31, %v6217_v50  ;;  %vm3133_vm1 = vcmp.lt.s32.totalorder %v6636_v53, 0 }
 0x1ec   :  { %v2398_v5 = vadd.f32 0.041655596, %v2397_v48  ;;  %v2405_v11 = vadd.f32 0.008332121, %v2404_v2  ;;  %v3236_v38 = vsel %vm3234_vm2, %v3235_v56, %v6508_v22  ;;  %v6541_v48 = vsub.s32 32, %v6531_v51 }
 0x1ed   :  { %v7517_v18 = vand.u32 2147483647, %v6513_v6  ;;  %v2821_v10 = vand.u32 2139095040, %v6513_v6  ;;  %v3237_v20 = vclz %v3236_v38  ;;  %v6545_v2 = vshll.u32 %v7535_v17, %v6531_v51 }
 0x1ee   :  { %v2399_v21 = vmul.f32 %v2398_v5, %v2396_v61  ;;  %v2406_v12 = vmul.f32 %v2405_v11, %v2396_v61 }
 0x1ef   :  { %v2822_v0 = vshrl.u32 %v2821_v10, 23  ;;  %v2825_v7 = vand.u32 8388607, %v7517_v18  ;;  %v4606_v9 = vadd.s32 4294967294, %v3237_v20 }
 0x1f0   :  { %v2400_v55 = vadd.f32 -0.4999988, %v2399_v21  ;;  %v2407_v15 = vadd.f32 -0.16666654, %v2406_v12 }
 0x1f1   :  { %v4599_v14 = vadd.s32 4294967169, %v2822_v0  ;;  %v2826_v32 = vor.u32 8388608, %v2825_v7  ;;  %vm4607_vm8 = vcmp.lt.s32.totalorder %v4606_v9, 0 }
 0x1f2   :  { %v2401_v13 = vmul.f32 %v2400_v55, %v2396_v61  ;;  %v2408_v45 = vmul.f32 %v2407_v15, %v2396_v61  ;;  %v3240_v10 = vsel %vm4607_vm8, 0, %v4606_v9  ;;  %vm3714_vm8 = vcmp.lt.s32.totalorder %v6538_v40, 2 }
 0x1f3   :  { %v2828_v43 = vadd.s32 1, %v4599_v14  ;;  %v6533_v27 = vshll.u32 %v2826_v32, 8 }
 0x1f4   :  { %v2402_v59 = vadd.f32 1.0, %v2401_v13  ;;  %v2409_v39 = vadd.f32 1.0, %v2408_v45  ;;  %v7573_v13 = vmov 920167782  }
 0x1f5   :  { %vm2829_vm9 = vcmp.gt.s32.totalorder %v2828_v43, 0  ;;  %v6556_v56 = vand.u32 65535, %v6533_v27 }
 0x1f6   :  { %v2410_v36 = vmul.f32 %v2409_v39, %v2394_v33  ;;  %v2418_v61 = vxor.u32 2147483648, %v2402_v59  ;;  %v2830_v35 = vsel %vm2829_vm9, %v2828_v43, 0  ;;  %v6551_v33 = vshll.u32 %v7553_v25, %v6531_v51 }
 0x1f7   :  { %v2832_v31 = vand.u32 31, %v2830_v35  ;;  %v6553_v5 = vshrl.u32 %v2830_v35, 5  ;;  %v3241_v43 = vsub.s32 32, %v3240_v10  ;;  %vm3716_vm9 = vcmp.lt.s32.totalorder %v6538_v40, 4 }
 0x1f8   :  { %v2415_v19 = vxor.u32 2147483648, %v2410_v36  ;;  %v2419_v63 = vsel %vm2417_vm13, %v2418_v61, %v2410_v36  ;;  %v2576_v41 = vsel %vm2574_vm10, %v2418_v61, %v2410_v36  ;;  %v7574_v61 = vmov 1326507024  }
 0x1f9   :  { %v2833_v11 = vsub.s32 32, %v2832_v31  ;;  %v2835_v38 = vshll.u32 %v7535_v17, %v2832_v31  ;;  %v2838_v0 = vshll.u32 %v7553_v25, %v2832_v31  ;;  %v2841_v15 = vshll.u32 %v7564_v30, %v2832_v31 }
 0x1fa   :  { %v2416_v21 = vsel %vm2414_vm11, %v2402_v59, %v2415_v19  ;;  %v2573_v12 = vsel %vm2571_vm4, %v2402_v59, %v2415_v19  ;;  %v2844_v32 = vshll.u32 %v7547_v26, %v2832_v31  ;;  %v2847_v45 = vshll.u32 %v7573_v13, %v2832_v31 }
 0x1fb   :  { %v2420_v7 = vsel %vm2413_vm7, %v2416_v21, %v2419_v63  ;;  %v2577_v20 = vsel %vm2570_vm6, %v2573_v12, %v2576_v41  ;;  %v2836_v55 = vshrl.u32 %v7553_v25, %v2833_v11  ;;  %v2839_v57 = vshrl.u32 %v7564_v30, %v2833_v11 }
 0x1fc   :  { %v2421_v28 = vsel %vm2411_vm5, nan, %v2420_v7  ;;  %v2578_v14 = vsel %vm2411_vm5, nan, %v2577_v20  ;;  %v2842_v39 = vshrl.u32 %v7547_v26, %v2833_v11  ;;  %v2845_v36 = vshrl.u32 %v7573_v13, %v2833_v11 }
 0x1fd   :  { %v2422_v9 = vmul.f32 %v2421_v28, %v6496_v49  ;;  %v2579_v1 = vmul.f32 %v2578_v14, %v6496_v49  ;;  %v2837_v59 = vor.u32 %v2836_v55, %v2835_v38  ;;  %v2848_v35 = vshrl.u32 %v7574_v61, %v2833_v11 }
 0x1fe   :  { %v2840_v31 = vor.u32 %v2839_v57, %v2838_v0  ;;  %vm2850_vm14 = vcmp.lt.s32.totalorder %v6553_v5, 1  ;;  %v2843_v49 = vor.u32 %v2842_v39, %v2841_v15  ;;  %v2846_v41 = vor.u32 %v2845_v36, %v2844_v32 }
 0x1ff   :  { %v6581_v19 = vadd.f32 %v2422_v9, %v6228_v23  ;;  %v6584_v63 = vadd.f32 %v2579_v1, %v6231_v4  ;;  %v2849_v21 = vor.u32 %v2848_v35, %v2847_v45  ;;  %vm2852_vm15 = vcmp.lt.s32.totalorder %v6553_v5, 3 }
 0x200   :  { %vm2851_vm0 = vcmp.lt.s32.totalorder %v6553_v5, 2  ;;  %vm2853_vm12 = vcmp.lt.s32.totalorder %v6553_v5, 4  ;;  %v2858_v0 = vsel %vm2850_vm14, %v2837_v59, %v2840_v31  ;;  %v2868_v20 = vshrl.u32 %v6533_v27, 16 }
 0x201   :  { %v2766_v12 = vsub.f32 %v6581_v19, %v6243_v58  ;;  %v2767_v38 = vsub.f32 %v6584_v63, %v6247_v42  ;;  %v2859_v7 = vsel %vm2853_vm12, %v2846_v41, 920167782  ;;  %v3245_v55 = vsub.s32 4294967266, %v3240_v10 }
 0x202   :  { %v2860_v58 = vsel %vm2852_vm15, %v2843_v49, %v2859_v7  ;;  %v2862_v42 = vsel %vm2850_vm14, %v2840_v31, %v2843_v49  ;;  %v2863_v32 = vsel %vm2853_vm12, %v2849_v21, 1326507024  ;;  %v3242_v45 = vshll.u32 %v6508_v22, %v3240_v10 }
 0x203   :  { %v2768_v15 = vmul.f32 %v2766_v12, %v2766_v12  ;;  %v2769_v28 = vmul.f32 %v2767_v38, %v2767_v38  ;;  %v2861_v14 = vsel %vm2851_vm0, %v2858_v0, %v2860_v58  ;;  %v3243_v9 = vshrl.u32 %v3225_v60, %v3241_v43 }
 0x204   :  { %v2864_v57 = vsel %vm2852_vm15, %v2846_v41, %v2863_v32  ;;  %v2891_v39 = vand.u32 65535, %v2861_v14  ;;  %v2892_v36 = vshrl.u32 %v2861_v14, 16  ;;  %v2834_v35 = vshrl.u32 %v7535_v17, %v2833_v11 }
 0x205   :  { %v6608_v1 = vadd.f32 %v2769_v28, %v2768_v15  ;;  %v2865_v12 = vsel %vm2851_vm0, %v2862_v42, %v2864_v57  ;;  %v3246_v38 = vadd.s32 127, %v3245_v55  ;;  %v3704_v0 = vshll.u32 %v7564_v30, %v6531_v51 }
 0x206   :  { %v2855_v22 = vsel %vm2853_vm12, %v2843_v49, 2102212464  ;;  %v6622_v60 = vshrl.u32 %v7553_v25, %v6541_v48  ;;  %v3702_v10 = vshrl.u32 %v7564_v30, %v6541_v48  ;;  %v2869_v11 = vand.u32 65535, %v2865_v12 }
 0x207   :  { %4670 = vrsqrt.f32 %v6608_v1  ;;  %v2870_v43 = vshrl.u32 %v2865_v12, 16  ;;  %v2894_v41 = vmul.u32 %v2892_v36, %v6556_v56  ;;  %v3244_v21 = vor.u32 %v3243_v9, %v3242_v45 }
 0x208   :  { %v2893_v7 = vmul.u32 %v2891_v39, %v6556_v56  ;;  %v2895_v55 = vmul.u32 %v2891_v39, %v2868_v20  ;;  %v3247_v15 = vshll.u32 %v3246_v38, 23  ;;  %v3705_v28 = vshrl.u32 %v7547_v26, %v6541_v48 }
 0x209   :  { %v2854_v49 = vsel %vm2850_vm14, %v2834_v35, %v2837_v59  ;;  %v2871_v58 = vmul.u32 %v2869_v11, %v6556_v56  ;;  %v2872_v42 = vmul.u32 %v2870_v43, %v6556_v56  ;;  %v2873_v14 = vmul.u32 %v2869_v11, %v2868_v20 }
 0x20a   :  { %v2856_v32 = vsel %vm2852_vm15, %v2840_v31, %v2855_v22  ;;  %v2896_v57 = vmul.u32 %v2892_v36, %v2868_v20  ;;  %v2897_v45 = vshll.u32 %v2894_v41, 16  ;;  %v2899_v9 = vshll.u32 %v2895_v55, 16 }
 0x20b   :  { %v2874_v12 = vmul.u32 %v2870_v43, %v2868_v20  ;;  %v2875_v39 = vshll.u32 %v2872_v42, 16  ;;  %v2877_v38 = vshll.u32 %v2873_v14, 16  ;;  %v3251_v18 = vcvt.s32.f32 %v3244_v21 }
 0x20c   :  { %v2898_v35 = vshrl.u32 %v2894_v41, 16  ;;  %vm2901_vm2 = vc.u32 %v2893_v7, %v2897_v45  ;;  %v2903_v8 = vadd.s32 %v2897_v45, %v2893_v7  ;;  %v7575_v56 = vand.u32 2147483647, %v6164_v54 }
 0x20d   :  { %v4671_v59 = vpop.eup %4670  ;;  %v3248_v31 = vor.u32 4788187, %v3247_v15  ;;  %vm2879_vm5 = vc.u32 %v2871_v58, %v2875_v39  ;;  %v2881_v36 = vadd.s32 %v2875_v39, %v2871_v58  ;;  %v2902_v22 = vsel %vm2901_vm2, 1, %v7555_v52 }
 0x20e   :  { %vm6641_vm3 = vcmp.le.f32.partialorder %v7575_v56, 0.7853982  ;;  %v2772_v20 = vmul.f32 %v4671_v59, %v6608_v1  ;;  %v2876_v43 = vshrl.u32 %v2872_v42, 16  ;;  %v2880_v21 = vsel %vm2879_vm5, 1, %v7555_v52 }
 0x20f   :  { %v2904_v50 = vadd.s32 %v2902_v22, %v2896_v57  ;;  %vm2905_vm7 = vc.u32 %v2903_v8, %v2899_v9  ;;  %v2882_v7 = vadd.s32 %v2880_v21, %v2874_v12  ;;  %vm2883_vm11 = vc.u32 %v2881_v36, %v2877_v38 }
 0x210   :  { %v2773_v41 = vmul.f32 %v4671_v59, %v2772_v20  ;;  %v2906_v54 = vsel %vm2905_vm7, 1, %v7555_v52  ;;  %v2884_v45 = vsel %vm2883_vm11, 1, %v7555_v52  ;;  %v2900_v56 = vshrl.u32 %v2895_v55, 16 }
 0x211   :  { %v2908_v15 = vadd.s32 %v2906_v54, %v2904_v50  ;;  %v3249_v4 = vand.u32 2147483647, %v3248_v31  ;;  %v2878_v16 = vshrl.u32 %v2873_v14, 16  ;;  %v2886_v58 = vadd.s32 %v2884_v45, %v2882_v7 }
 0x212   :  { %v2774_v23 = vmul.f32 0.5, %v2773_v41  ;;  %v6651_v39 = vor.u32 %v3702_v10, %v6551_v33  ;;  %v2857_v42 = vsel %vm2851_vm0, %v2854_v49, %v2856_v32  ;;  %v3707_v12 = vshll.u32 %v7547_v26, %v6531_v51 }
 0x213   :  { %v2909_v57 = vadd.s32 %v2908_v15, %v2898_v35  ;;  %v3252_v20 = vmul.f32 %v3251_v18, %v3249_v4  ;;  %v2887_v36 = vadd.s32 %v2886_v58, %v2876_v43  ;;  %v6657_v22 = vadd.s32 %v2903_v8, %v2899_v9 }
 0x214   :  { %v2775_v38 = vsub.f32 1.5, %v2774_v23  ;;  %v6659_v50 = vor.u32 %v3705_v28, %v3704_v0  ;;  %v3708_v33 = vshrl.u32 %v7573_v13, %v6541_v48  ;;  %v3710_v5 = vshll.u32 %v7573_v13, %v6531_v51 }
 0x215   :  { %v2910_v55 = vadd.s32 %v2909_v57, %v2900_v56  ;;  %v3253_v14 = vxor.u32 2147483648, %v3252_v20  ;;  %v6665_v49 = vadd.s32 %v2887_v36, %v2878_v16  ;;  %v2911_v4 = vmul.u32 %v6533_v27, %v2857_v42 }
 0x216   :  { %v2776_v10 = vmul.f32 %v4671_v59, %v2775_v38  ;;  %v3711_v23 = vshrl.u32 %v7574_v61, %v6541_v48  ;;  %vm2778_vm13 = vcmp.eq.f32.partialorder %v6608_v1, inf  ;;  %v2781_v18 = vand.u32 2147483648, %v6608_v1 }
 0x217   :  { %v2914_v8 = vadd.s32 1, %v2910_v55  ;;  %v3254_v0 = vsel %vm3133_vm1, %v3253_v14, %v3252_v20  ;;  %vm2780_vm4 = vcmp.eq.f32.partialorder %v6608_v1, 0.0  ;;  %vm2913_vm6 = vc.u32 %v6665_v49, %v6657_v22 }
 0x218   :  { %v2777_v28 = vmul.f32 %v2776_v10, %v6608_v1  ;;  %v3257_v16 = vsel %vm6641_vm3, %v6636_v53, %v3254_v0  ;;  %v3255_v27 = vsub.s32 4, %v6503_v29  ;;  %v3709_v9 = vor.u32 %v3708_v33, %v3707_v12 }
 0x219   :  { %v2915_v51 = vsel %vm2913_vm6, %v2914_v8, %v2910_v55  ;;  %v3259_v32 = vmul.f32 %v3257_v16, %v3257_v16  ;;  %v3712_v31 = vor.u32 %v3711_v23, %v3710_v5  ;;  %vm3713_vm10 = vcmp.lt.s32.totalorder %v6538_v40, 1 }
 0x21a   :  { %v2779_v59 = vsel %vm2778_vm13, %v6608_v1, %v2777_v28  ;;  %v2916_v35 = vadd.s32 %v2915_v51, %v2911_v4  ;;  %vm3715_vm14 = vcmp.lt.s32.totalorder %v6538_v40, 3  ;;  %v3256_v1 = vsel %vm3133_vm1, %v3255_v27, %v6503_v29 }
 0x21b   :  { %v2782_v43 = vsel %vm2780_vm4, %v2781_v18, %v2779_v59  ;;  %v3260_v21 = vmul.f32 -0.001358992, %v3259_v32  ;;  %v3267_v41 = vmul.f32 -0.00019511016, %v3259_v32  ;;  %v3725_v15 = vsel %vm3713_vm10, %v6651_v39, %v6659_v50 }
 0x21c   :  { %v6686_v7 = vadd.f32 %v2782_v43, %v6379_v24  ;;  %v2917_v54 = vadd.s32 536870912, %v2916_v35  ;;  %v3726_v24 = vsel %vm3716_vm9, %v3712_v31, 1326507024  ;;  %v7578_v42 = vor.u32 8388608, %v6527_v62 }
 0x21d   :  { %v3261_v45 = vadd.f32 0.041655596, %v3260_v21  ;;  %v3268_v56 = vadd.f32 0.008332121, %v3267_v41  ;;  %v3727_v29 = vsel %vm3715_vm14, %v3709_v9, %v3726_v24  ;;  %v3258_v36 = vsel %vm6641_vm3, 0, %v3256_v1 }
 0x21e   :  { %v6697_v58 = vshrl.u32 %v2917_v54, 30  ;;  %v6703_v57 = vshll.u32 %v7578_v42, 8  ;;  %v3728_v55 = vsel %vm3714_vm8, %v3725_v15, %v3727_v29  ;;  %v3700_v62 = vor.u32 %v6622_v60, %v6545_v2 }
 0x21f   :  { %v3262_v20 = vmul.f32 %v3261_v45, %v3259_v32  ;;  %v3269_v12 = vmul.f32 %v3268_v56, %v3259_v32  ;;  %v3722_v10 = vsel %vm3716_vm9, %v3709_v9, 920167782  ;;  %v3732_v18 = vand.u32 65535, %v3728_v55 }
 0x220   :  { %v2919_v38 = vshll.u32 %v6697_v58, 30  ;;  %v3730_v14 = vand.u32 65535, %v6703_v57  ;;  %v6718_v23 = vshrl.u32 %v6703_v57, 16  ;;  %v3733_v11 = vshrl.u32 %v3728_v55, 16 }
 0x221   :  { %v3263_v33 = vadd.f32 -0.4999988, %v3262_v20  ;;  %v3270_v5 = vadd.f32 -0.16666654, %v3269_v12  ;;  %v3275_v28 = vand.u32 3, %v3258_v36  ;;  %v3721_v2 = vsel %vm3713_vm10, %v3700_v62, %v6651_v39 }
 0x222   :  { %v2920_v4 = vsub.s32 %v2916_v35, %v2919_v38  ;;  %v6720_v27 = vmul.u32 %v3733_v11, %v3730_v14  ;;  %v3723_v60 = vsel %vm3715_vm14, %v6659_v50, %v3722_v10  ;;  %v3734_v35 = vmul.u32 %v3732_v18, %v3730_v14 }
 0x223   :  { %v3264_v8 = vmul.f32 %v3263_v33, %v3259_v32  ;;  %v3271_v0 = vmul.f32 %v3270_v5, %v3259_v32  ;;  %v6731_v32 = vmul.u32 %v3732_v18, %v6718_v23  ;;  %vm3282_vm0 = vcmp.eq.s32.totalorder %v3275_v28, 2 }
 0x224   :  { %vm2921_vm15 = vcmp.lt.s32.totalorder %v2920_v4, 0  ;;  %v2922_v51 = vsub.s32 0, %v2920_v4  ;;  %v3738_v43 = vshll.u32 %v6720_v27, 16  ;;  %vm3279_vm12 = vcmp.eq.s32.totalorder %v3275_v28, 0 }
 0x225   :  { %v6722_v59 = vadd.f32 1.0, %v3264_v8  ;;  %v3272_v31 = vadd.f32 1.0, %v3271_v0  ;;  %v3697_v1 = vshrl.u32 %v7535_v17, %v6541_v48  ;;  %v3724_v45 = vsel %vm3714_vm8, %v3721_v2, %v3723_v60 }
 0x226   :  { %v2923_v9 = vsel %vm2921_vm15, %v2922_v51, %v2920_v4  ;;  %vm3278_vm1 = vcmp.lt.s32.totalorder %v3275_v28, 2  ;;  %v3718_v24 = vsel %vm3716_vm9, %v6659_v50, 2102212464  ;;  %v3740_v48 = vshll.u32 %v6731_v32, 16 }
 0x227   :  { %v2924_v21 = vclz %v2923_v9  ;;  %v6734_v41 = vmul.f32 %v3272_v31, %v3257_v16  ;;  %v3283_v54 = vxor.u32 2147483648, %v6722_v59  ;;  %v2912_v16 = vadd.s32 %v6657_v22, %v6665_v49 }
 0x228   :  { %v3744_v20 = vadd.s32 %v3738_v43, %v3734_v35  ;;  %vm3742_vm3 = vc.u32 %v3734_v35, %v3738_v43  ;;  %v3755_v29 = vshrl.u32 %v3724_v45, 16  ;;  %v3276_v55 = vadd.s32 3, %v3258_v36 }
 0x229   :  { %v4600_v56 = vadd.s32 4294967294, %v2924_v21  ;;  %v3280_v15 = vxor.u32 2147483648, %v6734_v41  ;;  %v3284_v42 = vsel %vm3282_vm0, %v3283_v54, %v6734_v41  ;;  %v3737_v50 = vmul.u32 %v3733_v11, %v6718_v23 }
 0x22a   :  { %v3754_v33 = vand.u32 65535, %v3724_v45  ;;  %v3717_v18 = vsel %vm3713_vm10, %v3697_v1, %v3700_v62  ;;  %v3743_v8 = vsel %vm3742_vm3, 1, %v7555_v52  ;;  %vm3746_vm5 = vc.u32 %v3744_v20, %v3740_v48 }
 0x22b   :  { %vm4601_vm2 = vcmp.lt.s32.totalorder %v4600_v56, 0  ;;  %v3281_v12 = vsel %vm3279_vm12, %v6722_v59, %v3280_v15  ;;  %v3719_v36 = vsel %vm3715_vm14, %v6651_v39, %v3718_v24  ;;  %v3757_v11 = vmul.u32 %v3755_v29, %v3730_v14 }
 0x22c   :  { %v2927_v38 = vsel %vm4601_vm2, 0, %v4600_v56  ;;  %v6756_v10 = vsel %vm3278_vm1, %v3281_v12, %v3284_v42  ;;  %vm2820_vm7 = vcmp.lt.s32.totalorder %v6513_v6, 0  ;;  %v3756_v28 = vmul.u32 %v3754_v33, %v3730_v14 }
 0x22d   :  { %v2928_v22 = vsub.s32 32, %v2927_v38  ;;  %v2929_v49 = vshll.u32 %v2920_v4, %v2927_v38  ;;  %v2932_v5 = vsub.s32 4294967266, %v2927_v38  ;;  %v3277_v4 = vand.u32 3, %v3276_v55 }
 0x22e   :  { %4672 = vrcp.f32 %v6756_v10  ;;  %v7579_v31 = vand.u32 2147483647, %v6513_v6  ;;  %v3745_v9 = vadd.s32 %v3743_v8, %v3737_v50  ;;  %v3747_v35 = vsel %vm3746_vm5, 1, %v7555_v52 }
 0x22f   :  { %v2930_v0 = vshrl.u32 %v2912_v16, %v2928_v22  ;;  %v2933_v51 = vadd.s32 127, %v2932_v5  ;;  %v2942_v39 = vsub.s32 4, %v6697_v58  ;;  %v6776_v43 = vsel %vm3714_vm8, %v3717_v18, %v3719_v36 }
 0x230   :  { %vm6768_vm11 = vcmp.le.f32.partialorder %v7579_v31, 0.7853982  ;;  %v3739_v21 = vshrl.u32 %v6720_v27, 16  ;;  %v3758_v14 = vmul.u32 %v3754_v33, %v6718_v23  ;;  %v3749_v56 = vadd.s32 %v3747_v35, %v3745_v9 }
 0x231   :  { %v2931_v2 = vor.u32 %v2930_v0, %v2929_v49  ;;  %v2934_v60 = vshll.u32 %v2933_v51, 23  ;;  %v3760_v24 = vshll.u32 %v3757_v11, 16  ;;  %vm3286_vm13 = vcmp.lt.s32.totalorder %v3277_v4, 2 }
 0x232   :  { %vm3287_vm4 = vcmp.eq.s32.totalorder %v3277_v4, 0  ;;  %v3759_v16 = vmul.u32 %v3755_v29, %v6718_v23  ;;  %v3762_v42 = vshll.u32 %v3758_v14, 16  ;;  %vm3290_vm6 = vcmp.eq.s32.totalorder %v3277_v4, 2 }
 0x233   :  { %v2935_v1 = vor.u32 4788187, %v2934_v60  ;;  %v2938_v45 = vcvt.s32.f32 %v2931_v2  ;;  %vm3764_vm10 = vc.u32 %v3756_v28, %v3760_v24  ;;  %v3766_v20 = vadd.s32 %v3760_v24, %v3756_v28 }
 0x234   :  { %v4673_v40 = vpop.eup %4672  ;;  %v2943_v27 = vsel %vm2820_vm7, %v2942_v39, %v6697_v58  ;;  %vm3299_vm9 = vweird.f32 %v6756_v10  ;;  %v3741_v12 = vshrl.u32 %v6731_v32, 16  ;;  %v3765_v38 = vsel %vm3764_vm10, 1, %v7555_v52 }
 0x235   :  { %v2936_v48 = vand.u32 2147483647, %v2935_v1  ;;  %v3295_v50 = vmul.f32 %v4673_v40, %v6756_v10  ;;  %v3303_v23 = vand.u32 2147483647, %v6756_v10  ;;  %v3750_v29 = vadd.s32 %v3749_v56, %v3739_v21 }
 0x236   :  { %v3305_v33 = vand.u32 2147483648, %v6756_v10  ;;  %v3761_v22 = vshrl.u32 %v3757_v11, 16  ;;  %v3767_v49 = vadd.s32 %v3765_v38, %v3759_v16  ;;  %vm3768_vm8 = vc.u32 %v3766_v20, %v3762_v42 }
 0x237   :  { %v2939_v55 = vmul.f32 %v2938_v45, %v2936_v48  ;;  %v3296_v18 = vsub.f32 1.0, %v3295_v50  ;;  %vm3300_vm14 = vweird.f32 %v4673_v40  ;;  %v3769_v58 = vsel %vm3768_vm8, 1, %v7555_v52 }
 0x238   :  { %v3289_v32 = vsel %vm3287_vm4, %v6722_v59, %v3280_v15  ;;  %v3292_v8 = vsel %vm3290_vm6, %v3283_v54, %v6734_v41  ;;  %v3763_v0 = vshrl.u32 %v3758_v14, 16  ;;  %v3771_v51 = vadd.s32 %v3769_v58, %v3767_v49  ;;  %vm6810_vm15 = vmor %vm3299_vm9, %vm3300_vm14 }
 0x239   :  { %v2940_v5 = vxor.u32 2147483648, %v2939_v55  ;;  %v3297_v11 = vmul.f32 %v4673_v40, %v3296_v18  ;;  %v6801_v28 = vadd.s32 %v3750_v29, %v3741_v12  ;;  %v6803_v31 = vadd.s32 %v3766_v20, %v3762_v42 }
 0x23a   :  { %v3306_v41 = vor.u32 1.1754944e-38, %v3305_v33  ;;  %v3772_v54 = vadd.s32 %v3771_v51, %v3761_v22  ;;  %vm3304_vm0 = vcmp.eq.f32.partialorder %v3303_v23, 8.507059e+37  ;;  %v2945_v9 = vsel %vm6768_vm11, 0, %v2943_v27 }
 0x23b   :  { %v2941_v36 = vsel %vm2820_vm7, %v2940_v5, %v2939_v55  ;;  %v3298_v60 = vadd.f32 %v4673_v40, %v3297_v11  ;;  %v3293_v35 = vsel %vm3286_vm13, %v3289_v32, %v3292_v8  ;;  %v3774_v21 = vmul.u32 %v6703_v57, %v6776_v43 }
 0x23c   :  { %v2944_v2 = vsel %vm6768_vm11, %v6513_v6, %v2941_v36  ;;  %v3773_v39 = vadd.s32 %v3772_v54, %v3763_v0  ;;  %vm3776_vm12 = vc.u32 %v6801_v28, %v6803_v31  ;;  %v2817_v45 = vmul.f32 0.2, %v4859_v46 }
 0x23d   :  { %v2946_v15 = vmul.f32 %v2944_v2, %v2944_v2  ;;  %v3302_v1 = vsel %vm6810_vm15, %v4673_v40, %v3298_v60  ;;  %vm3274_vm1 = vweird.f32 %v6636_v53  ;;  %v3118_v42 = vadd.s32 3, %v2945_v9 }
 0x23e   :  { %v3307_v62 = vsel %vm3304_vm0, %v3306_v41, %v3302_v1  ;;  %v3777_v56 = vadd.s32 1, %v3773_v39  ;;  %v2962_v50 = vand.u32 3, %v2945_v9  ;;  %vm2961_vm4 = vweird.f32 %v6513_v6 }
 0x23f   :  { %v2947_v14 = vmul.f32 -0.001358992, %v2946_v15  ;;  %v2954_v10 = vmul.f32 -0.00019511016, %v2946_v15  ;;  %v3308_v16 = vmul.f32 %v3307_v62, %v3293_v35  ;;  %v3119_v23 = vand.u32 3, %v3118_v42 }
 0x240   :  { %v3778_v48 = vsel %vm3776_vm12, %v3777_v56, %v3773_v39  ;;  %vm2967_vm2 = vcmp.eq.s32.totalorder %v2962_v50, 2  ;;  %vm2963_vm5 = vcmp.lt.s32.totalorder %v2962_v50, 2  ;;  %vm2964_vm7 = vcmp.eq.s32.totalorder %v2962_v50, 0 }
 0x241   :  { %v2948_v4 = vadd.f32 0.041655596, %v2947_v14  ;;  %v2955_v24 = vadd.f32 0.008332121, %v2954_v10  ;;  %v3309_v20 = vsel %vm3274_vm1, nan, %v3308_v16  ;;  %v3779_v27 = vadd.s32 %v3778_v48, %v3774_v21 }
 0x242   :  { %v3310_v12 = vmul.f32 %v3309_v20, %v2817_v45  ;;  %vm3124_vm3 = vcmp.eq.s32.totalorder %v3119_v23, 2  ;;  %vm3120_vm11 = vcmp.lt.s32.totalorder %v3119_v23, 2  ;;  %vm3121_vm13 = vcmp.eq.s32.totalorder %v3119_v23, 0  ;;  %v6854_v20 = vld [vmem:[#allocation2 + $0x28] sm:$0xff] }
 0x243   :  { %v2949_v57 = vmul.f32 %v2948_v4, %v2946_v15  ;;  %v2956_v43 = vmul.f32 %v2955_v24, %v2946_v15  ;;  %v3780_v55 = vadd.s32 536870912, %v3779_v27 }
 0x244   :  { %v3311_v46 = vmul.f32 0.5, %v3310_v12 }
 0x245   :  { %v2950_v40 = vadd.f32 -0.4999988, %v2949_v57  ;;  %v2957_v38 = vadd.f32 -0.16666654, %v2956_v43  ;;  %v6828_v22 = vshrl.u32 %v3780_v55, 30  ;;  %v6850_v43 = vld [vmem:[#allocation2 + $0x20] sm:$0xff] }
 0x246   :  { %v6826_v33 = vadd.f32 %v3311_v46, %v6513_v6 }
 0x247   :  { %v2951_v29 = vmul.f32 %v2950_v40, %v2946_v15  ;;  %v2958_v53 = vmul.f32 %v2957_v38, %v2946_v15  ;;  %v3782_v51 = vshll.u32 %v6828_v22, 30 }
 0x248   :  { %v3368_v18 = vand.u32 2147483647, %v6826_v33  ;;  %v3371_v58 = vand.u32 2139095040, %v6826_v33 }
 0x249   :  { %v2952_v49 = vadd.f32 1.0, %v2951_v29  ;;  %v2959_v5 = vadd.f32 1.0, %v2958_v53  ;;  %v6836_v39 = vsub.s32 %v3779_v27, %v3782_v51 }
 0x24a   :  { %v3372_v0 = vshrl.u32 %v3371_v58, 23  ;;  %v3375_v41 = vand.u32 8388607, %v3368_v18 }
 0x24b   :  { %v2960_v32 = vmul.f32 %v2959_v5, %v2944_v2  ;;  %v2968_v8 = vxor.u32 2147483648, %v2952_v49  ;;  %v3785_v42 = vsub.s32 0, %v6836_v39  ;;  %vm3784_vm10 = vcmp.lt.s32.totalorder %v6836_v39, 0 }
 0x24c   :  { %v4609_v54 = vadd.s32 4294967169, %v3372_v0  ;;  %v3376_v10 = vor.u32 8388608, %v3375_v41 }
 0x24d   :  { %v2965_v36 = vxor.u32 2147483648, %v2960_v32  ;;  %v2969_v11 = vsel %vm2967_vm2, %v2968_v8, %v2960_v32  ;;  %v3126_v59 = vsel %vm3124_vm3, %v2968_v8, %v2960_v32 }
 0x24e   :  { %v3378_v35 = vadd.s32 1, %v4609_v54  ;;  %v6847_v57 = vshll.u32 %v3376_v10, 8 }
 0x24f   :  { %v2966_v15 = vsel %vm2964_vm7, %v2952_v49, %v2965_v36  ;;  %v3123_v60 = vsel %vm3121_vm13, %v2952_v49, %v2965_v36  ;;  %v3786_v49 = vsel %vm3784_vm10, %v3785_v42, %v6836_v39 }
 0x250   :  { %v2970_v2 = vsel %vm2963_vm5, %v2966_v15, %v2969_v11  ;;  %v3127_v9 = vsel %vm3120_vm11, %v3123_v60, %v3126_v59  ;;  %vm3379_vm6 = vcmp.gt.s32.totalorder %v3378_v35, 0  ;;  %v3417_v54 = vand.u32 65535, %v6847_v57 }
 0x251   :  { %v2971_v21 = vsel %vm2961_vm4, nan, %v2970_v2  ;;  %v3128_v14 = vsel %vm2961_vm4, nan, %v3127_v9  ;;  %v3380_v56 = vsel %vm3379_vm6, %v3378_v35, 0  ;;  %v3787_v15 = vclz %v3786_v49 }
 0x252   :  { %v2972_v1 = vmul.f32 %v2971_v21, %v2817_v45  ;;  %v3129_v62 = vmul.f32 %v3128_v14, %v2817_v45  ;;  %v3382_v16 = vand.u32 31, %v3380_v56  ;;  %v6845_v48 = vshrl.u32 %v3380_v56, 5 }
 0x253   :  { %v4616_v42 = vadd.s32 4294967294, %v3787_v15 }
 0x254   :  { %v6839_v4 = vadd.f32 %v2972_v1, %v6581_v19  ;;  %v6842_v24 = vadd.f32 %v3129_v62, %v6584_v63  ;;  %v3383_v12 = vsub.s32 32, %v3382_v16  ;;  %v3385_v40 = vshll.u32 %v7535_v17, %v3382_v16 }
 0x255   :  { %v3388_v38 = vshll.u32 %v7553_v25, %v3382_v16  ;;  %v3391_v55 = vshll.u32 %v7564_v30, %v3382_v16  ;;  %v3394_v50 = vshll.u32 %v7547_v26, %v3382_v16  ;;  %v3397_v23 = vshll.u32 %v7573_v13, %v3382_v16 }
 0x256   :  { %v3316_v45 = vsub.f32 %v6839_v4, %v6850_v43  ;;  %v3317_v27 = vsub.f32 %v6842_v24, %v6854_v20  ;;  %v3386_v53 = vshrl.u32 %v7553_v25, %v3383_v12  ;;  %v3389_v5 = vshrl.u32 %v7564_v30, %v3383_v12 }
 0x257   :  { %v3392_v58 = vshrl.u32 %v7547_v26, %v3383_v12  ;;  %v3395_v32 = vshrl.u32 %v7573_v13, %v3383_v12  ;;  %v3398_v8 = vshrl.u32 %v7574_v61, %v3383_v12  ;;  %vm3400_vm9 = vcmp.lt.s32.totalorder %v6845_v48, 1 }
 0x258   :  { %v3318_v46 = vmul.f32 %v3316_v45, %v3316_v45  ;;  %v3319_v29 = vmul.f32 %v3317_v27, %v3317_v27  ;;  %v3387_v51 = vor.u32 %v3386_v53, %v3385_v40  ;;  %v3390_v36 = vor.u32 %v3389_v5, %v3388_v38 }
 0x259   :  { %v3393_v11 = vor.u32 %v3392_v58, %v3391_v55  ;;  %v3396_v59 = vor.u32 %v3395_v32, %v3394_v50  ;;  %v3399_v41 = vor.u32 %v3398_v8, %v3397_v23  ;;  %vm3401_vm8 = vcmp.lt.s32.totalorder %v6845_v48, 2 }
 0x25a   :  { %v6869_v0 = vadd.f32 %v3319_v29, %v3318_v46  ;;  %vm3402_vm14 = vcmp.lt.s32.totalorder %v6845_v48, 3  ;;  %vm3403_vm15 = vcmp.lt.s32.totalorder %v6845_v48, 4  ;;  %v3408_v60 = vsel %vm3400_vm9, %v3387_v51, %v3390_v36 }
 0x25b   :  { %v3384_v2 = vshrl.u32 %v7535_v17, %v3383_v12  ;;  %v3409_v9 = vsel %vm3403_vm15, %v3396_v59, 920167782  ;;  %v3412_v35 = vsel %vm3400_vm9, %v3390_v36, %v3393_v11  ;;  %v3413_v21 = vsel %vm3403_vm15, %v3399_v41, 1326507024 }
 0x25c   :  { %4674 = vrsqrt.f32 %v6869_v0  ;;  %v3405_v14 = vsel %vm3403_vm15, %v3393_v11, 2102212464  ;;  %v3410_v10 = vsel %vm3402_vm14, %v3393_v11, %v3409_v9  ;;  %v3414_v1 = vsel %vm3402_vm14, %v3396_v59, %v3413_v21 }
 0x25d   :  { %v3418_v62 = vshrl.u32 %v6847_v57, 16  ;;  %v3411_v56 = vsel %vm3401_vm8, %v3408_v60, %v3410_v10  ;;  %v3415_v16 = vsel %vm3401_vm8, %v3412_v35, %v3414_v1  ;;  %v3331_v55 = vand.u32 2147483648, %v6869_v0 }
 0x25e   :  { %v3419_v45 = vand.u32 65535, %v3415_v16  ;;  %v3420_v27 = vshrl.u32 %v3415_v16, 16  ;;  %v3441_v12 = vand.u32 65535, %v3411_v56  ;;  %v3442_v40 = vshrl.u32 %v3411_v56, 16 }
 0x25f   :  { %v3404_v50 = vsel %vm3400_vm9, %v3384_v2, %v3387_v51  ;;  %v3406_v23 = vsel %vm3402_vm14, %v3390_v36, %v3405_v14  ;;  %v3775_v46 = vadd.s32 %v6803_v31, %v6801_v28  ;;  %vm3328_vm0 = vcmp.eq.f32.partialorder %v6869_v0, inf }
 0x260   :  { %v3421_v53 = vmul.u32 %v3419_v45, %v3417_v54  ;;  %v3422_v49 = vmul.u32 %v3420_v27, %v3417_v54  ;;  %v3423_v5 = vmul.u32 %v3419_v45, %v3418_v62  ;;  %v3443_v58 = vmul.u32 %v3441_v12, %v3417_v54 }
 0x261   :  { %v3444_v32 = vmul.u32 %v3442_v40, %v3417_v54  ;;  %v3445_v8 = vmul.u32 %v3441_v12, %v3418_v62  ;;  %vm4617_vm12 = vcmp.lt.s32.totalorder %v4616_v42, 0  ;;  %v3424_v59 = vmul.u32 %v3420_v27, %v3418_v62 }
 0x262   :  { %v4675_v38 = vpop.eup %4674  ;;  %v3425_v51 = vshll.u32 %v3422_v49, 16  ;;  %v3427_v41 = vshll.u32 %v3423_v5, 16  ;;  %v3426_v15 = vshrl.u32 %v3422_v49, 16  ;;  %v3428_v36 = vshrl.u32 %v3423_v5, 16 }
 0x263   :  { %v3322_v29 = vmul.f32 %v4675_v38, %v6869_v0  ;;  %v3446_v60 = vmul.u32 %v3442_v40, %v3418_v62  ;;  %v3447_v2 = vshll.u32 %v3444_v32, 16  ;;  %v3449_v9 = vshll.u32 %v3445_v8, 16 }
 0x264   :  { %vm3429_vm1 = vc.u32 %v3421_v53, %v3425_v51  ;;  %v3431_v31 = vadd.s32 %v3425_v51, %v3421_v53  ;;  %v3448_v21 = vshrl.u32 %v3444_v32, 16  ;;  %v3450_v16 = vshrl.u32 %v3445_v8, 16 }
 0x265   :  { %v3323_v11 = vmul.f32 %v4675_v38, %v3322_v29  ;;  %v3430_v35 = vsel %vm3429_vm1, 1, %v7555_v52  ;;  %vm3451_vm2 = vc.u32 %v3443_v58, %v3447_v2  ;;  %v3453_v14 = vadd.s32 %v3447_v2, %v3443_v58 }
 0x266   :  { %v3432_v10 = vadd.s32 %v3430_v35, %v3424_v59  ;;  %vm3433_vm3 = vc.u32 %v3431_v31, %v3427_v41  ;;  %v3452_v1 = vsel %vm3451_vm2, 1, %v7555_v52  ;;  %v3790_v40 = vsel %vm4617_vm12, 0, %v4616_v42 }
 0x267   :  { %v3324_v28 = vmul.f32 0.5, %v3323_v11  ;;  %v3434_v56 = vsel %vm3433_vm3, 1, %v7555_v52  ;;  %v3454_v45 = vadd.s32 %v3452_v1, %v3446_v60  ;;  %vm3455_vm5 = vc.u32 %v3453_v14, %v3449_v9 }
 0x268   :  { %v3436_v27 = vadd.s32 %v3434_v56, %v3432_v10  ;;  %v3456_v12 = vsel %vm3455_vm5, 1, %v7555_v52  ;;  %v3791_v53 = vsub.s32 32, %v3790_v40  ;;  %v3792_v49 = vshll.u32 %v6836_v39, %v3790_v40 }
 0x269   :  { %v3325_v54 = vsub.f32 1.5, %v3324_v28  ;;  %v3458_v29 = vadd.s32 %v3456_v12, %v3454_v45  ;;  %v3795_v5 = vsub.s32 4294967266, %v3790_v40  ;;  %vm3330_vm7 = vcmp.eq.f32.partialorder %v6869_v0, 0.0 }
 0x26a   :  { %v3437_v32 = vadd.s32 %v3436_v27, %v3426_v15  ;;  %v3457_v11 = vadd.s32 %v3453_v14, %v3449_v9  ;;  %v3407_v8 = vsel %vm3401_vm8, %v3404_v50, %v3406_v23  ;;  %v3793_v59 = vshrl.u32 %v3775_v46, %v3791_v53 }
 0x26b   :  { %v3326_v62 = vmul.f32 %v4675_v38, %v3325_v54  ;;  %v3459_v38 = vadd.s32 %v3458_v29, %v3448_v21  ;;  %v3796_v51 = vadd.s32 127, %v3795_v5  ;;  %v3461_v15 = vmul.u32 %v6847_v57, %v3407_v8 }
 0x26c   :  { %v3438_v41 = vadd.s32 %v3437_v32, %v3428_v36  ;;  %v3794_v2 = vor.u32 %v3793_v59, %v3792_v49  ;;  %v3805_v45 = vsub.s32 4, %v6828_v22  ;;  %vm3370_vm15 = vcmp.lt.s32.totalorder %v6826_v33, 0 }
 0x26d   :  { %v3327_v58 = vmul.f32 %v3326_v62, %v6869_v0  ;;  %v3460_v39 = vadd.s32 %v3459_v38, %v3450_v16  ;;  %v3797_v28 = vshll.u32 %v3796_v51, 23 }
 0x26e   :  { %vm3463_vm11 = vc.u32 %v3438_v41, %v3457_v11  ;;  %v3801_v23 = vcvt.s32.f32 %v3794_v2  ;;  %v3462_v51 = vadd.s32 %v3457_v11, %v3438_v41 }
 0x26f   :  { %v3329_v42 = vsel %vm3328_vm0, %v6869_v0, %v3327_v58  ;;  %v3464_v48 = vadd.s32 1, %v3460_v39  ;;  %v3798_v50 = vor.u32 4788187, %v3797_v28  ;;  %v6917_v0 = vld [vmem:[#allocation5 + $0x68] sm:$0xff]  ;;  %vm3369_vm0 = vcmp.le.f32.partialorder %v3368_v18, 0.7853982 }
 0x270   :  { %v3332_v60 = vsel %vm3330_vm7, %v3331_v55, %v3329_v42  ;;  %vm3683_vm13 = vcmp.lt.s32.totalorder %v6917_v0, 0  ;;  %v7584_v55 = vand.u32 2147483647, %v6478_v47 }
 0x271   :  { %v6914_v31 = vadd.f32 %v3332_v60, %v6686_v7  ;;  %v3465_v46 = vsel %vm3463_vm11, %v3464_v48, %v3460_v39  ;;  %v3799_v9 = vand.u32 2147483647, %v3798_v50  ;;  %v3806_v49 = vsel %vm3683_vm13, %v3805_v45, %v6828_v22 }
 0x272   :  { %v3466_v35 = vadd.s32 %v3465_v46, %v3461_v15  ;;  %vm6922_vm4 = vcmp.le.f32.partialorder %v7584_v55, 0.7853982 }
 0x273   :  { %v3802_v21 = vmul.f32 %v3801_v23, %v3799_v9  ;;  %v3808_v59 = vsel %vm6922_vm4, 0, %v3806_v49 }
 0x274   :  { %v3467_v14 = vadd.s32 536870912, %v3466_v35  ;;  %v3825_v48 = vand.u32 3, %v3808_v59 }
 0x275   :  { %v3803_v57 = vxor.u32 2147483648, %v3802_v21 }
 0x276   :  { %v3468_v36 = vshrl.u32 %v3467_v14, 30  ;;  %vm3832_vm9 = vcmp.eq.s32.totalorder %v3825_v48, 2  ;;  %vm3829_vm8 = vcmp.eq.s32.totalorder %v3825_v48, 0  ;;  %vm3828_vm14 = vcmp.lt.s32.totalorder %v3825_v48, 2 }
 0x277   :  { %v3804_v54 = vsel %vm3683_vm13, %v3803_v57, %v3802_v21 }
 0x278   :  { %v3469_v10 = vshll.u32 %v3468_v36, 30  ;;  %v3807_v1 = vsel %vm6922_vm4, %v6917_v0, %v3804_v54  ;;  %v3826_v54 = vadd.s32 3, %v3808_v59  ;;  %vm3824_vm4 = vweird.f32 %v6917_v0 }
 0x279   :  { %v3809_v56 = vmul.f32 %v3807_v1, %v3807_v1 }
 0x27a   :  { %v3470_v16 = vsub.s32 %v3466_v35, %v3469_v10 }
 0x27b   :  { %v3810_v62 = vmul.f32 -0.001358992, %v3809_v56  ;;  %v3817_v47 = vmul.f32 -0.00019511016, %v3809_v56 }
 0x27c   :  { %vm3471_vm6 = vcmp.lt.s32.totalorder %v3470_v16, 0  ;;  %v3472_v27 = vsub.s32 0, %v3470_v16 }
 0x27d   :  { %v3811_v12 = vadd.f32 0.041655596, %v3810_v62  ;;  %v3818_v40 = vadd.f32 0.008332121, %v3817_v47  ;;  %v6938_v62 = vld [vmem:[#allocation5 + $0x78] sm:$0xff] }
 0x27e   :  { %v3473_v29 = vsel %vm3471_vm6, %v3472_v27, %v3470_v16  ;;  %v4234_v47 = vand.u32 2139095040, %v6938_v62  ;;  %v3827_v27 = vand.u32 3, %v3826_v54  ;;  %vm3511_vm6 = vweird.f32 %v6826_v33 }
 0x27f   :  { %v3474_v53 = vclz %v3473_v29  ;;  %v3812_v5 = vmul.f32 %v3811_v12, %v3809_v56  ;;  %v3819_v58 = vmul.f32 %v3818_v40, %v3809_v56 }
 0x280   :  { %v4235_v29 = vshrl.u32 %v4234_v47, 23  ;;  %vm3837_vm12 = vcmp.eq.s32.totalorder %v3827_v27, 0  ;;  %vm3840_vm1 = vcmp.eq.s32.totalorder %v3827_v27, 2  ;;  %vm3836_vm2 = vcmp.lt.s32.totalorder %v3827_v27, 2 }
 0x281   :  { %v4610_v32 = vadd.s32 4294967294, %v3474_v53  ;;  %v3813_v8 = vadd.f32 -0.4999988, %v3812_v5  ;;  %v3820_v38 = vadd.f32 -0.16666654, %v3819_v58 }
 0x282   :  { %v4625_v5 = vadd.s32 4294967169, %v4235_v29 }
 0x283   :  { %vm4611_vm10 = vcmp.lt.s32.totalorder %v4610_v32, 0  ;;  %v3814_v42 = vmul.f32 %v3813_v8, %v3809_v56  ;;  %v3821_v39 = vmul.f32 %v3820_v38, %v3809_v56 }
 0x284   :  { %v3477_v60 = vsel %vm4611_vm10, 0, %v4610_v32 }
 0x285   :  { %v3478_v2 = vsub.s32 32, %v3477_v60  ;;  %v3479_v28 = vshll.u32 %v3470_v16, %v3477_v60  ;;  %v3482_v15 = vsub.s32 4294967266, %v3477_v60  ;;  %v3815_v22 = vadd.f32 1.0, %v3814_v42 }
 0x286   :  { %v3822_v46 = vadd.f32 1.0, %v3821_v39  ;;  %v3492_v16 = vsub.s32 4, %v3468_v36  ;;  %v4241_v42 = vadd.s32 1, %v4625_v5 }
 0x287   :  { %v3480_v50 = vshrl.u32 %v3462_v51, %v3478_v2  ;;  %v3483_v23 = vadd.s32 127, %v3482_v15  ;;  %v3833_v21 = vxor.u32 2147483648, %v3815_v22 }
 0x288   :  { %v3823_v14 = vmul.f32 %v3822_v46, %v3807_v1  ;;  %v3493_v40 = vsel %vm3370_vm15, %v3492_v16, %v3468_v36  ;;  %vm4242_vm7 = vcmp.gt.s32.totalorder %v4241_v42, 0  ;;  %v4231_v16 = vand.u32 2147483647, %v6938_v62 }
 0x289   :  { %v3481_v9 = vor.u32 %v3480_v50, %v3479_v28  ;;  %v3484_v35 = vshll.u32 %v3483_v23, 23  ;;  %v3495_v32 = vsel %vm3369_vm0, 0, %v3493_v40  ;;  %v4243_v46 = vsel %vm4242_vm7, %v4241_v42, 0 }
 0x28a   :  { %v3830_v11 = vxor.u32 2147483648, %v3823_v14  ;;  %v3834_v41 = vsel %vm3832_vm9, %v3833_v21, %v3823_v14  ;;  %v3668_v2 = vadd.s32 3, %v3495_v32  ;;  %v3842_v15 = vsel %vm3840_vm1, %v3833_v21, %v3823_v14 }
 0x28b   :  { %v3485_v55 = vor.u32 4788187, %v3484_v35  ;;  %v3488_v7 = vcvt.s32.f32 %v3481_v9  ;;  %v3367_v9 = vmul.f32 0.2, %v4879_v3  ;;  %v3512_v35 = vand.u32 3, %v3495_v32 }
 0x28c   :  { %v3831_v10 = vsel %vm3829_vm8, %v3815_v22, %v3830_v11  ;;  %v3839_v28 = vsel %vm3837_vm12, %v3815_v22, %v3830_v11  ;;  %v3669_v22 = vand.u32 3, %v3668_v2  ;;  %v4245_v14 = vand.u32 31, %v4243_v46 }
 0x28d   :  { %v3486_v57 = vand.u32 2147483647, %v3485_v55  ;;  %v3835_v45 = vsel %vm3828_vm14, %v3831_v10, %v3834_v41  ;;  %v3843_v21 = vsel %vm3836_vm2, %v3839_v28, %v3842_v15  ;;  %vm3513_vm10 = vcmp.lt.s32.totalorder %v3512_v35, 2 }
 0x28e   :  { %4676 = vrcp.f32 %v3835_v45  ;;  %vm3849_vm3 = vweird.f32 %v3835_v45  ;;  %v3853_v18 = vand.u32 2147483647, %v3835_v45  ;;  %v3855_v51 = vand.u32 2147483648, %v3835_v45 }
 0x28f   :  { %v3489_v56 = vmul.f32 %v3488_v7, %v3486_v57  ;;  %vm3514_vm9 = vcmp.eq.s32.totalorder %v3512_v35, 0  ;;  %vm3517_vm8 = vcmp.eq.s32.totalorder %v3512_v35, 2  ;;  %vm3670_vm14 = vcmp.lt.s32.totalorder %v3669_v22, 2 }
 0x290   :  { %v3856_v7 = vor.u32 1.1754944e-38, %v3855_v51  ;;  %vm3854_vm13 = vcmp.eq.f32.partialorder %v3853_v18, 8.507059e+37  ;;  %v6956_v27 = vsub.s32 32, %v4245_v14  ;;  %v6963_v32 = vshrl.u32 %v4243_v46, 5 }
 0x291   :  { %v3490_v1 = vxor.u32 2147483648, %v3489_v56  ;;  %v4260_v51 = vshll.u32 %v7573_v13, %v4245_v14  ;;  %v4254_v42 = vshll.u32 %v7564_v30, %v4245_v14 }
 0x292   :  { %v4252_v0 = vshrl.u32 %v7564_v30, %v6956_v27  ;;  %v4255_v2 = vshrl.u32 %v7547_v26, %v6956_v27  ;;  %v4258_v28 = vshrl.u32 %v7573_v13, %v6956_v27  ;;  %vm4266_vm12 = vcmp.lt.s32.totalorder %v6963_v32, 4 }
 0x293   :  { %v3491_v12 = vsel %vm3370_vm15, %v3490_v1, %v3489_v56  ;;  %vm3671_vm15 = vcmp.eq.s32.totalorder %v3669_v22, 0  ;;  %vm4263_vm1 = vcmp.lt.s32.totalorder %v6963_v32, 1  ;;  %vm4265_vm2 = vcmp.lt.s32.totalorder %v6963_v32, 3 }
 0x294   :  { %v3494_v53 = vsel %vm3369_vm0, %v6826_v33, %v3491_v12  ;;  %v4677_v58 = vpop.eup %4676  ;;  %vm3674_vm0 = vcmp.eq.s32.totalorder %v3669_v22, 2 }
 0x295   :  { %v3496_v49 = vmul.f32 %v3494_v53, %v3494_v53  ;;  %v3845_v59 = vmul.f32 %v4677_v58, %v3835_v45  ;;  %vm3850_vm5 = vweird.f32 %v4677_v58 }
 0x296   :  { %vm6946_vm11 = vmor %vm3849_vm3, %vm3850_vm5  ;;  %vm4264_vm3 = vcmp.lt.s32.totalorder %v6963_v32, 2 }
 0x297   :  { %v3497_v8 = vmul.f32 -0.001358992, %v3496_v49  ;;  %v3504_v38 = vmul.f32 -0.00019511016, %v3496_v49  ;;  %v3846_v36 = vsub.f32 1.0, %v3845_v59 }
 0x299   :  { %v3498_v60 = vadd.f32 0.041655596, %v3497_v8  ;;  %v3505_v39 = vadd.f32 0.008332121, %v3504_v38  ;;  %v3847_v23 = vmul.f32 %v4677_v58, %v3846_v36  ;;  %v4251_v8 = vshll.u32 %v7553_v25, %v4245_v14 }
 0x29b   :  { %v3499_v48 = vmul.f32 %v3498_v60, %v3496_v49  ;;  %v3506_v50 = vmul.f32 %v3505_v39, %v3496_v49  ;;  %v3848_v54 = vadd.f32 %v4677_v58, %v3847_v23  ;;  %v4261_v60 = vshrl.u32 %v7574_v61, %v6956_v27 }
 0x29c   :  { %v4248_v23 = vshll.u32 %v7535_v17, %v4245_v14  ;;  %v6991_v22 = vor.u32 %v4252_v0, %v4251_v8 }
 0x29d   :  { %v3500_v41 = vadd.f32 -0.4999988, %v3499_v48  ;;  %v3507_v57 = vadd.f32 -0.16666654, %v3506_v50  ;;  %v3852_v3 = vsel %vm6946_vm11, %v4677_v58, %v3848_v54  ;;  %v4238_v58 = vand.u32 8388607, %v4231_v16 }
 0x29e   :  { %v3857_v56 = vsel %vm3854_vm13, %v3856_v7, %v3852_v3  ;;  %v4249_v7 = vshrl.u32 %v7553_v25, %v6956_v27 }
 0x29f   :  { %v3501_v11 = vmul.f32 %v3500_v41, %v3496_v49  ;;  %v3508_v10 = vmul.f32 %v3507_v57, %v3496_v49  ;;  %v3858_v47 = vmul.f32 %v3857_v56, %v3843_v21  ;;  %v4257_v49 = vshll.u32 %v7547_v26, %v4245_v14 }
 0x2a0   :  { %v4262_v41 = vor.u32 %v4261_v60, %v4260_v51 }
 0x2a1   :  { %v3502_v45 = vadd.f32 1.0, %v3501_v11  ;;  %v3509_v1 = vadd.f32 1.0, %v3508_v10  ;;  %v3859_v29 = vsel %vm3824_vm4, nan, %v3858_v47  ;;  %v6994_v11 = vor.u32 %v4255_v2, %v4254_v42 }
 0x2a2   :  { %v3860_v5 = vmul.f32 %v3859_v29, %v3367_v9  ;;  %v4259_v14 = vor.u32 %v4258_v28, %v4257_v49 }
 0x2a3   :  { %v3510_v12 = vmul.f32 %v3509_v1, %v3494_v53  ;;  %v3518_v40 = vxor.u32 2147483648, %v3502_v45 }
 0x2a4   :  { %v3861_v53 = vmul.f32 0.5, %v3860_v5  ;;  %v4275_v5 = vsel %vm4263_vm1, %v6991_v22, %v6994_v11 }
 0x2a5   :  { %v3515_v38 = vxor.u32 2147483648, %v3510_v12  ;;  %v3519_v59 = vsel %vm3517_vm8, %v3518_v40, %v3510_v12  ;;  %v3676_v18 = vsel %vm3674_vm0, %v3518_v40, %v3510_v12  ;;  %v4239_v12 = vor.u32 8388608, %v4238_v58 }
 0x2a6   :  { %v6981_v50 = vadd.f32 %v3861_v53, %v6826_v33  ;;  %v7013_v40 = vor.u32 %v4249_v7, %v4248_v23 }
 0x2a7   :  { %v3516_v39 = vsel %vm3514_vm9, %v3502_v45, %v3515_v38  ;;  %v3673_v36 = vsel %vm3671_vm15, %v3502_v45, %v3515_v38  ;;  %v4276_v45 = vsel %vm4266_vm12, %v4262_v41, 1326507024  ;;  %v7030_v51 = vshll.u32 %v4239_v12, 8 }
 0x2a8   :  { %v3520_v15 = vsel %vm3513_vm10, %v3516_v39, %v3519_v59  ;;  %v3677_v48 = vsel %vm3670_vm14, %v3673_v36, %v3676_v18  ;;  %v3918_v54 = vand.u32 2147483647, %v6981_v50  ;;  %v3921_v21 = vand.u32 2139095040, %v6981_v50 }
 0x2a9   :  { %v3521_v46 = vsel %vm3511_vm6, nan, %v3520_v15  ;;  %v3678_v55 = vsel %vm3511_vm6, nan, %v3677_v48  ;;  %v4271_v18 = vsel %vm4263_vm1, %v7013_v40, %v6991_v22  ;;  %v7045_v28 = vand.u32 65535, %v7030_v51 }
 0x2aa   :  { %v3522_v57 = vmul.f32 %v3521_v46, %v3367_v9  ;;  %v3679_v35 = vmul.f32 %v3678_v55, %v3367_v9  ;;  %v3925_v9 = vand.u32 8388607, %v3918_v54  ;;  %v3922_v56 = vshrl.u32 %v3921_v21, 23 }
 0x2ab   :  { %v7054_v55 = vshrl.u32 %v7030_v51, 16 }
 0x2ac   :  { %v6998_v10 = vadd.f32 %v3522_v57, %v6839_v4  ;;  %v7001_v3 = vadd.f32 %v3679_v35, %v6842_v24  ;;  %v4619_v29 = vadd.s32 4294967169, %v3922_v56  ;;  %v3926_v49 = vor.u32 8388608, %v3925_v9 }
 0x2ae   :  { %v3866_v1 = vsub.f32 %v6998_v10, %v6850_v43  ;;  %v3867_v47 = vsub.f32 %v7001_v3, %v6854_v20  ;;  %v4272_v43 = vsel %vm4266_vm12, %v4259_v14, 920167782  ;;  %v4277_v20 = vsel %vm4265_vm2, %v4259_v14, %v4276_v45 }
 0x2af   :  { %v3928_v58 = vadd.s32 1, %v4619_v29  ;;  %v7032_v53 = vshll.u32 %v3926_v49, 8  ;;  %v4273_v0 = vsel %vm4265_vm2, %v6994_v11, %v4272_v43  ;;  %v4278_v42 = vsel %vm4264_vm3, %v4275_v5, %v4277_v20 }
 0x2b0   :  { %v3868_v8 = vmul.f32 %v3866_v1, %v3866_v1  ;;  %v3869_v38 = vmul.f32 %v3867_v47, %v3867_v47  ;;  %v4282_v39 = vand.u32 65535, %v4278_v42  ;;  %v7042_v2 = vsel %vm4264_vm3, %v4271_v18, %v4273_v0 }
 0x2b1   :  { %vm3929_vm5 = vcmp.gt.s32.totalorder %v3928_v58, 0  ;;  %v4283_v15 = vshrl.u32 %v4278_v42, 16  ;;  %v3967_v23 = vand.u32 65535, %v7032_v53  ;;  %v7051_v46 = vshrl.u32 %v7032_v53, 16 }
 0x2b2   :  { %v7024_v59 = vadd.f32 %v3869_v38, %v3868_v8  ;;  %v3930_v60 = vsel %vm3929_vm5, %v3928_v58, 0  ;;  %v4284_v9 = vmul.u32 %v4282_v39, %v7045_v28  ;;  %v4304_v56 = vand.u32 65535, %v7042_v2 }
 0x2b3   :  { %v3932_v36 = vand.u32 31, %v3930_v60  ;;  %v7047_v48 = vshrl.u32 %v3930_v60, 5  ;;  %v7067_v29 = vmul.u32 %v4283_v15, %v7045_v28  ;;  %v7083_v58 = vmul.u32 %v4282_v39, %v7054_v55 }
 0x2b4   :  { %4678 = vrsqrt.f32 %v7024_v59  ;;  %vm3878_vm11 = vcmp.eq.f32.partialorder %v7024_v59, inf  ;;  %vm3880_vm4 = vcmp.eq.f32.partialorder %v7024_v59, 0.0 }
 0x2b5   :  { %v3933_v7 = vsub.s32 32, %v3932_v36  ;;  %v3935_v41 = vshll.u32 %v7535_v17, %v3932_v36  ;;  %v3938_v57 = vshll.u32 %v7553_v25, %v3932_v36  ;;  %v3941_v35 = vshll.u32 %v7564_v30, %v3932_v36 }
 0x2b6   :  { %v3944_v21 = vshll.u32 %v7547_v26, %v3932_v36  ;;  %v3947_v14 = vshll.u32 %v7573_v13, %v3932_v36  ;;  %vm3950_vm7 = vcmp.lt.s32.totalorder %v7047_v48, 1  ;;  %vm3953_vm13 = vcmp.lt.s32.totalorder %v7047_v48, 4 }
 0x2b7   :  { %v3936_v1 = vshrl.u32 %v7553_v25, %v3933_v7  ;;  %v3939_v47 = vshrl.u32 %v7564_v30, %v3933_v7  ;;  %v3942_v12 = vshrl.u32 %v7547_v26, %v3933_v7  ;;  %v3945_v5 = vshrl.u32 %v7573_v13, %v3933_v7 }
 0x2b8   :  { %v3948_v8 = vshrl.u32 %v7574_v61, %v3933_v7  ;;  %vm3952_vm6 = vcmp.lt.s32.totalorder %v7047_v48, 3  ;;  %vm3951_vm10 = vcmp.lt.s32.totalorder %v7047_v48, 2  ;;  %v3934_v0 = vshrl.u32 %v7535_v17, %v3933_v7 }
 0x2b9   :  { %v3937_v38 = vor.u32 %v3936_v1, %v3935_v41  ;;  %v3940_v43 = vor.u32 %v3939_v47, %v3938_v57  ;;  %v3943_v25 = vor.u32 %v3942_v12, %v3941_v35  ;;  %v3946_v26 = vor.u32 %v3945_v5, %v3944_v21 }
 0x2ba   :  { %v4679_v45 = vpop.eup %4678  ;;  %v3949_v20 = vor.u32 %v3948_v8, %v3947_v14  ;;  %v3881_v36 = vand.u32 2147483648, %v7024_v59  ;;  %v4288_v39 = vshll.u32 %v7067_v29, 16  ;;  %v4287_v14 = vmul.u32 %v4283_v15, %v7054_v55 }
 0x2bb   :  { %v3872_v49 = vmul.f32 %v4679_v45, %v7024_v59  ;;  %v3958_v13 = vsel %vm3950_vm7, %v3937_v38, %v3940_v43  ;;  %v3962_v61 = vsel %vm3950_vm7, %v3940_v43, %v3943_v25  ;;  %v3959_v42 = vsel %vm3953_vm13, %v3946_v26, 920167782 }
 0x2bc   :  { %v3963_v60 = vsel %vm3953_vm13, %v3949_v20, 1326507024  ;;  %v3960_v41 = vsel %vm3952_vm6, %v3943_v25, %v3959_v42  ;;  %v3954_v8 = vsel %vm3950_vm7, %v3934_v0, %v3937_v38  ;;  %vm7107_vm9 = vc.u32 %v4284_v9, %v4288_v39 }
 0x2bd   :  { %v3873_v30 = vmul.f32 %v4679_v45, %v3872_v49  ;;  %v3964_v57 = vsel %vm3952_vm6, %v3946_v26, %v3963_v60  ;;  %v3961_v7 = vsel %vm3951_vm10, %v3958_v13, %v3960_v41  ;;  %v4290_v26 = vshll.u32 %v7083_v58, 16 }
 0x2be   :  { %v3965_v21 = vsel %vm3951_vm10, %v3962_v61, %v3964_v57  ;;  %v3991_v12 = vand.u32 65535, %v3961_v7  ;;  %v3992_v49 = vshrl.u32 %v3961_v7, 16  ;;  %v4294_v41 = vadd.s32 %v4288_v39, %v4284_v9 }
 0x2bf   :  { %v3874_v18 = vmul.f32 0.5, %v3873_v30  ;;  %v3969_v1 = vand.u32 65535, %v3965_v21  ;;  %v3970_v47 = vshrl.u32 %v3965_v21, 16  ;;  %v3955_v30 = vsel %vm3953_vm13, %v3943_v25, 2102212464 }
 0x2c0   :  { %v3993_v42 = vmul.u32 %v3991_v12, %v3967_v23  ;;  %v3995_v60 = vmul.u32 %v3991_v12, %v7051_v46  ;;  %v4305_v21 = vshrl.u32 %v7042_v2, 16  ;;  %vm4296_vm5 = vc.u32 %v4294_v41, %v4290_v26 }
 0x2c1   :  { %v3875_v35 = vsub.f32 1.5, %v3874_v18  ;;  %v3971_v20 = vmul.u32 %v3969_v1, %v3967_v23  ;;  %v3972_v13 = vmul.u32 %v3970_v47, %v3967_v23  ;;  %v3973_v18 = vmul.u32 %v3969_v1, %v7051_v46 }
 0x2c2   :  { %v3974_v38 = vmul.u32 %v3970_v47, %v7051_v46  ;;  %v3999_v12 = vshll.u32 %v3995_v60, 16  ;;  %v4308_v61 = vmul.u32 %v4304_v56, %v7054_v55 }
 0x2c3   :  { %v3876_v5 = vmul.f32 %v4679_v45, %v3875_v35  ;;  %v3994_v45 = vmul.u32 %v3992_v49, %v3967_v23  ;;  %v3975_v0 = vshll.u32 %v3972_v13, 16  ;;  %v3977_v25 = vshll.u32 %v3973_v18, 16 }
 0x2c4   :  { %v3996_v35 = vmul.u32 %v3992_v49, %v7051_v46 }
 0x2c5   :  { %v3877_v15 = vmul.f32 %v3876_v5, %v7024_v59  ;;  %v3997_v7 = vshll.u32 %v3994_v45, 16  ;;  %vm3979_vm8 = vc.u32 %v3971_v20, %v3975_v0  ;;  %v3981_v23 = vadd.s32 %v3975_v0, %v3971_v20 }
 0x2c6   :  { %v3976_v5 = vshrl.u32 %v3972_v13, 16  ;;  %v3980_v9 = vsel %vm3979_vm8, 1, %v7555_v52  ;;  %v3978_v20 = vshrl.u32 %v3973_v18, 16  ;;  %v3998_v0 = vshrl.u32 %v3994_v45, 16 }
 0x2c7   :  { %v3879_v57 = vsel %vm3878_vm11, %v7024_v59, %v3877_v15  ;;  %vm4001_vm14 = vc.u32 %v3993_v42, %v3997_v7  ;;  %v3982_v39 = vadd.s32 %v3980_v9, %v3974_v38  ;;  %vm3983_vm15 = vc.u32 %v3981_v23, %v3977_v25 }
 0x2c8   :  { %v3882_v1 = vsel %vm3880_vm4, %v3881_v36, %v3879_v57  ;;  %v4002_v46 = vsel %vm4001_vm14, 1, %v7555_v52  ;;  %v4003_v49 = vadd.s32 %v3997_v7, %v3993_v42  ;;  %v3956_v15 = vsel %vm3952_vm6, %v3940_v43, %v3955_v30 }
 0x2c9   :  { %v7122_v47 = vadd.f32 %v3882_v1, %v6914_v31  ;;  %v3984_v59 = vsel %vm3983_vm15, 1, %v7555_v52  ;;  %v4004_v36 = vadd.s32 %v4002_v46, %v3996_v35  ;;  %v4293_v31 = vsel %vm7107_vm9, 1, %v7555_v52 }
 0x2ca   :  { %v3986_v13 = vadd.s32 %v3984_v59, %v3982_v39  ;;  %vm4005_vm0 = vc.u32 %v4003_v49, %v3999_v12  ;;  %v4000_v57 = vshrl.u32 %v3995_v60, 16  ;;  %v4306_v42 = vmul.u32 %v4304_v56, %v7045_v28 }
 0x2cb   :  { %v4006_v38 = vsel %vm4005_vm0, 1, %v7555_v52  ;;  %v4307_v43 = vmul.u32 %v4305_v21, %v7045_v28  ;;  %v3957_v18 = vsel %vm3951_vm10, %v3954_v8, %v3956_v15  ;;  %v4007_v45 = vadd.s32 %v4003_v49, %v3999_v12 }
 0x2cc   :  { %v3987_v30 = vadd.s32 %v3986_v13, %v3976_v5  ;;  %v4008_v25 = vadd.s32 %v4006_v38, %v4004_v36  ;;  %v4309_v60 = vmul.u32 %v4305_v21, %v7054_v55  ;;  %v4295_v23 = vadd.s32 %v4293_v31, %v4287_v14 }
 0x2cd   :  { %v4310_v35 = vshll.u32 %v4307_v43, 16  ;;  %v4312_v9 = vshll.u32 %v4308_v61, 16  ;;  %v4297_v28 = vsel %vm4296_vm5, 1, %v7555_v52  ;;  %v4011_v41 = vmul.u32 %v7032_v53, %v3957_v18 }
 0x2ce   :  { %v3988_v7 = vadd.s32 %v3987_v30, %v3978_v20  ;;  %v4009_v1 = vadd.s32 %v4008_v25, %v3998_v0  ;;  %v4311_v48 = vshrl.u32 %v4307_v43, 16  ;;  %v4289_v55 = vshrl.u32 %v7067_v29, 16 }
 0x2cf   :  { %vm4314_vm7 = vc.u32 %v4306_v42, %v4310_v35  ;;  %v4316_v5 = vadd.s32 %v4310_v35, %v4306_v42  ;;  %v4299_v21 = vadd.s32 %v4297_v28, %v4295_v23  ;;  %v4313_v49 = vshrl.u32 %v4308_v61, 16 }
 0x2d0   :  { %v4010_v26 = vadd.s32 %v4009_v1, %v4000_v57  ;;  %v4315_v2 = vsel %vm4314_vm7, 1, %v7555_v52  ;;  %vm4013_vm11 = vc.u32 %v3988_v7, %v4007_v45  ;;  %v4247_v53 = vshrl.u32 %v7535_v17, %v6956_v27 }
 0x2d1   :  { %v4317_v56 = vadd.s32 %v4315_v2, %v4309_v60  ;;  %vm4318_vm13 = vc.u32 %v4316_v5, %v4312_v9  ;;  %v4291_v59 = vshrl.u32 %v7083_v58, 16  ;;  %v4300_v36 = vadd.s32 %v4299_v21, %v4289_v55 }
 0x2d2   :  { %v4014_v8 = vadd.s32 1, %v4010_v26  ;;  %v4319_v14 = vsel %vm4318_vm13, 1, %v7555_v52  ;;  %v4268_v20 = vsel %vm4266_vm12, %v6994_v11, 2102212464  ;;  %v4267_v52 = vsel %vm4263_vm1, %v4247_v53, %v7013_v40 }
 0x2d3   :  { %v4321_v12 = vadd.s32 %v4319_v14, %v4317_v56  ;;  %v4269_v0 = vsel %vm4265_vm2, %v6991_v22, %v4268_v20  ;;  %v7160_v57 = vadd.s32 %v4300_v36, %v4291_v59  ;;  %v7162_v17 = vadd.s32 %v4316_v5, %v4312_v9  ;;  %v7596_v20 = vld [vmem:[#allocation19_spill] sm:$0xff] }
 0x2d4   :  { %v4015_v39 = vsel %vm4013_vm11, %v4014_v8, %v4010_v26  ;;  %v4270_v38 = vsel %vm4264_vm3, %v4267_v52, %v4269_v0  ;;  %v4012_v60 = vadd.s32 %v4007_v45, %v3988_v7  ;;  %vm3920_vm2 = vcmp.lt.s32.totalorder %v6981_v50, 0  ;;  %v7181_v7 = vld [vmem:[#allocation2 + $0x38] sm:$0xff]  ;;  %v7183_v26 = vld [vmem:[#allocation2 + $0x40] sm:$0xff] }
 0x2d5   :  { %v4016_v46 = vadd.s32 %v4015_v39, %v4011_v41  ;;  %v4322_v15 = vadd.s32 %v4321_v12, %v4311_v48  ;;  %vm4326_vm12 = vc.u32 %v7160_v57, %v7162_v17  ;;  %v4324_v40 = vmul.u32 %v7030_v51, %v4270_v38 }
 0x2d6   :  { %vm7177_vm3 = vcmp.le.f32.partialorder %v3918_v54, 0.7853982  ;;  %v593_v41 = vsub.f32 %v5211_v34, %v7181_v7  ;;  %v594_v2 = vsub.f32 %v5213_v37, %v7183_v26  ;;  %v1143_v48 = vsub.f32 %v5711_v44, %v7181_v7  ;;  %v7593_v54 = vld [vmem:[#allocation14_spill] sm:$0xff]  ;;  %v7594_v37 = vld [vmem:[#allocation16_spill] sm:$0xff]  ;;  %v7595_v44 = vld [vmem:[#allocation17_spill] sm:$0xff] }
 0x2d7   :  { %v4017_v31 = vadd.s32 536870912, %v4016_v46  ;;  %v4323_v13 = vadd.s32 %v4322_v15, %v4313_v49  ;;  %v1144_v56 = vsub.f32 %v7593_v54, %v7183_v26  ;;  %v1693_v53 = vsub.f32 %v7594_v37, %v7181_v7 }
 0x2d8   :  { %v595_v12 = vmul.f32 %v593_v41, %v593_v41  ;;  %v596_v39 = vmul.f32 %v594_v2, %v594_v2  ;;  %v1694_v59 = vsub.f32 %v7595_v44, %v7183_v26  ;;  %vm4061_vm0 = vweird.f32 %v6981_v50 }
 0x2d9   :  { %v4018_v29 = vshrl.u32 %v4017_v31, 30  ;;  %v4327_v11 = vadd.s32 1, %v4323_v13  ;;  %v1146_v34 = vmul.f32 %v1144_v56, %v1144_v56 }
 0x2da   :  { %v7201_v36 = vadd.f32 %v596_v39, %v595_v12  ;;  %v7598_v12 = vld [vmem:[#allocation11_spill] sm:$0xff] }
 0x2db   :  { %v4019_v27 = vshll.u32 %v4018_v29, 30  ;;  %v4328_v30 = vsel %vm4326_vm12, %v4327_v11, %v4323_v13  ;;  %v4042_v18 = vsub.s32 4, %v4018_v29  ;;  %v7597_v13 = vld [vmem:[#allocation20_spill] sm:$0xff]  ;;  %v7253_v39 = vmul.f32 0.2, %v7598_v12 }
 0x2dc   :  { %v7169_v61 = vadd.s32 %v4328_v30, %v4324_v40  ;;  %v2244_v52 = vsub.f32 %v7597_v13, %v7183_v26  ;;  %4680 = vrsqrt.f32 %v7201_v36  ;;  %v2793_v40 = vsub.f32 %v6581_v19, %v7181_v7 }
 0x2dd   :  { %v4020_v58 = vsub.s32 %v4016_v46, %v4019_v27  ;;  %v4043_v51 = vsel %vm3920_vm2, %v4042_v18, %v4018_v29  ;;  %v1145_v46 = vmul.f32 %v1143_v48, %v1143_v48  ;;  %v2243_v29 = vsub.f32 %v7596_v20, %v7181_v7 }
 0x2de   :  { %v4330_v9 = vadd.s32 536870912, %v7169_v61  ;;  %v4045_v21 = vsel %vm7177_vm3, 0, %v4043_v51  ;;  %v1695_v27 = vmul.f32 %v1693_v53, %v1693_v53  ;;  %v2795_v18 = vmul.f32 %v2793_v40, %v2793_v40 }
 0x2df   :  { %vm4021_vm4 = vcmp.lt.s32.totalorder %v4020_v58, 0  ;;  %v4022_v42 = vsub.s32 0, %v4020_v58  ;;  %v7203_v31 = vadd.f32 %v1146_v34, %v1145_v46  ;;  %v2245_v11 = vmul.f32 %v2243_v29, %v2243_v29 }
 0x2e0   :  { %v7195_v14 = vshrl.u32 %v4330_v9, 30  ;;  %v7255_v28 = vand.u32 3, %v4045_v21  ;;  %vm605_vm5 = vweird.f32 %v7201_v36 }
 0x2e1   :  { %v4023_v43 = vsel %vm4021_vm4, %v4022_v42, %v4020_v58  ;;  %v2246_v42 = vmul.f32 %v2244_v52, %v2244_v52  ;;  %4682 = vrsqrt.f32 %v7203_v31  ;;  %vm1155_vm11 = vweird.f32 %v7203_v31 }
 0x2e2   :  { %v4024_v22 = vclz %v4023_v43  ;;  %v4332_v38 = vshll.u32 %v7195_v14, 30  ;;  %vm4067_vm6 = vcmp.eq.s32.totalorder %v7255_v28, 2  ;;  %vm4064_vm9 = vcmp.eq.s32.totalorder %v7255_v28, 0 }
 0x2e3   :  { %vm4063_vm14 = vcmp.lt.s32.totalorder %v7255_v28, 2 }
 0x2e4   :  { %v4620_v25 = vadd.s32 4294967294, %v4024_v22  ;;  %v2794_v22 = vsub.f32 %v6584_v63, %v7183_v26  ;;  %v3893_v63 = vsub.f32 %v6998_v10, %v7181_v7  ;;  %v7244_v48 = vsub.s32 %v7169_v61, %v4332_v38 }
 0x2e6   :  { %vm4621_vm1 = vcmp.lt.s32.totalorder %v4620_v25, 0  ;;  %v2796_v19 = vmul.f32 %v2794_v22, %v2794_v22  ;;  %v3895_v2 = vmul.f32 %v3893_v63, %v3893_v63  ;;  %v4335_v20 = vsub.s32 0, %v7244_v48 }
 0x2e7   :  { %v4027_v32 = vsel %vm4621_vm1, 0, %v4620_v25  ;;  %v7218_v25 = vadd.f32 %v2246_v42, %v2245_v11 }
 0x2e8   :  { %v4028_v35 = vsub.s32 32, %v4027_v32  ;;  %v4029_v1 = vshll.u32 %v4020_v58, %v4027_v32  ;;  %v4032_v23 = vsub.s32 4294967266, %v4027_v32  ;;  %v1696_v58 = vmul.f32 %v1694_v59, %v1694_v59 }
 0x2e9   :  { %v3344_v32 = vsub.f32 %v6842_v24, %v7183_v26  ;;  %v7234_v24 = vpop.eup %4680 }
 0x2ea   :  { %v4030_v5 = vshrl.u32 %v4012_v60, %v4028_v35  ;;  %v4033_v45 = vadd.s32 127, %v4032_v23  ;;  %v7214_v30 = vadd.f32 %v1696_v58, %v1695_v27  ;;  %v3343_v60 = vsub.f32 %v6839_v4, %v7181_v7  ;;  %v7246_v54 = vpop.eup %4682  ;;  %v62_v27 = vld [vmem:[#allocation2 + $0x48] sm:$0xff] }
 0x2eb   :  { %v3346_v9 = vmul.f32 %v3344_v32, %v3344_v32  ;;  %v3894_v4 = vsub.f32 %v7001_v3, %v7183_v26  ;;  %v1150_v61 = vmul.f32 %v7246_v54, %v7203_v31  ;;  %v63_v40 = vmax.f32 %v62_v27, 0.0 }
 0x2ec   :  { %v4031_v8 = vor.u32 %v4030_v5, %v4029_v1  ;;  %v4034_v55 = vshll.u32 %v4033_v45, 23  ;;  %v4218_v1 = vadd.s32 3, %v4045_v21  ;;  %4684 = vrsqrt.f32 %v7214_v30 }
 0x2ed   :  { %4686 = vrsqrt.f32 %v7218_v25  ;;  %v3345_v23 = vmul.f32 %v3343_v60, %v3343_v60  ;;  %v7230_v5 = vadd.f32 %v2796_v19, %v2795_v18  ;;  %v1151_v59 = vmul.f32 %v7246_v54, %v1150_v61 }
 0x2ee   :  { %v4035_v49 = vor.u32 4788187, %v4034_v55  ;;  %v4038_v15 = vcvt.s32.f32 %v4031_v8  ;;  %v600_v8 = vmul.f32 %v7234_v24, %v7201_v36  ;;  %v3896_v55 = vmul.f32 %v3894_v4, %v3894_v4 }
 0x2ef   :  { %v7241_v41 = vadd.f32 %v3346_v9, %v3345_v23  ;;  %v7257_v46 = vand.u32 3, %v4218_v1  ;;  %4688 = vrsqrt.f32 %v7230_v5  ;;  %v1152_v58 = vmul.f32 0.5, %v1151_v59 }
 0x2f0   :  { %v4036_v0 = vand.u32 2147483647, %v4035_v49  ;;  %v601_v37 = vmul.f32 %v7234_v24, %v600_v8  ;;  %v7264_v53 = vadd.f32 %v3896_v55, %v3895_v2  ;;  %v7285_v1 = vmul.f32 %v63_v40, %v63_v40 }
 0x2f1   :  { %vm4224_vm10 = vcmp.eq.s32.totalorder %v7257_v46, 2  ;;  %4690 = vrsqrt.f32 %v7241_v41  ;;  %vm4221_vm8 = vcmp.eq.s32.totalorder %v7257_v46, 0  ;;  %v1153_v22 = vsub.f32 1.5, %v1152_v58 }
 0x2f2   :  { %v4039_v43 = vmul.f32 %v4038_v15, %v4036_v0  ;;  %v7261_v34 = vpop.eup %4684  ;;  %v602_v52 = vmul.f32 0.5, %v601_v37  ;;  %4692 = vrsqrt.f32 %v7264_v53  ;;  %vm4220_vm15 = vcmp.lt.s32.totalorder %v7257_v46, 2 }
 0x2f3   :  { %v7266_v44 = vpop.eup %4686  ;;  %v1700_v21 = vmul.f32 %v7261_v34, %v7214_v30  ;;  %vm606_vm7 = vweird.f32 %v7234_v24  ;;  %v1154_v9 = vmul.f32 %v7246_v54, %v1153_v22  ;;  %vm598_vm13 = vcmp.lt.f32.partialorder %v7201_v36, %v7285_v1 }
 0x2f4   :  { %v4040_v35 = vxor.u32 2147483648, %v4039_v43  ;;  %v2250_v0 = vmul.f32 %v7266_v44, %v7218_v25  ;;  %vm607_vm12 = vmor %vm605_vm5, %vm606_vm7  ;;  %vm1148_vm4 = vcmp.lt.f32.partialorder %v7203_v31, %v7285_v1  ;;  %vm1156_vm1 = vweird.f32 %v7246_v54 }
 0x2f5   :  { %v1701_v38 = vmul.f32 %v7261_v34, %v1700_v21  ;;  %v7288_v23 = vpop.eup %4688  ;;  %vm1698_vm5 = vcmp.lt.f32.partialorder %v7214_v30, %v7285_v1  ;;  %vm1706_vm7 = vweird.f32 %v7261_v34 }
 0x2f6   :  { %v4041_v51 = vsel %vm3920_vm2, %v4040_v35, %v4039_v43  ;;  %v603_v43 = vsub.f32 1.5, %v602_v52  ;;  %v2251_v60 = vmul.f32 %v7266_v44, %v2250_v0  ;;  %vm1705_vm2 = vweird.f32 %v7214_v30 }
 0x2f7   :  { %v7239_v45 = vsel %vm7177_vm3, %v6981_v50, %v4041_v51  ;;  %v1702_v18 = vmul.f32 0.5, %v1701_v38  ;;  %v7299_v4 = vpop.eup %4690  ;;  %vm1157_vm3 = vmor %vm1155_vm11, %vm1156_vm1  ;;  %vm2248_vm1 = vcmp.lt.f32.partialorder %v7218_v25, %v7285_v1 }
 0x2f8   :  { %v4046_v56 = vmul.f32 %v7239_v45, %v7239_v45  ;;  %v604_v19 = vmul.f32 %v7234_v24, %v603_v43  ;;  %v7309_v61 = vpop.eup %4692  ;;  %vm1707_vm11 = vmor %vm1705_vm2, %vm1706_vm7  ;;  %vm2256_vm2 = vweird.f32 %v7266_v44  ;;  %vm3905_vm7 = vweird.f32 %v7264_v53 }
 0x2f9   :  { %v1703_v8 = vsub.f32 1.5, %v1702_v18 }
 0x2fa   :  { %v4047_v49 = vmul.f32 -0.001358992, %v4046_v56  ;;  %v4054_v15 = vmul.f32 -0.00019511016, %v4046_v56  ;;  %v608_v2 = vsel %vm607_vm12, %v7234_v24, %v604_v19  ;;  %vm2255_vm12 = vweird.f32 %v7218_v25 }
 0x2fb   :  { %v1704_v24 = vmul.f32 %v7261_v34, %v1703_v8 }
 0x2fc   :  { %v4048_v29 = vadd.f32 0.041655596, %v4047_v49  ;;  %v4055_v13 = vadd.f32 0.008332121, %v4054_v15  ;;  %v1158_v49 = vsel %vm1157_vm3, %v7246_v54, %v1154_v9  ;;  %v2252_v15 = vmul.f32 0.5, %v2251_v60 }
 0x2fd   :  { %v1159_v21 = vsel %vm1148_vm4, %v1158_v49, 0.0  ;;  %v1708_v52 = vsel %vm1707_vm11, %v7261_v34, %v1704_v24  ;;  %vm2806_vm3 = vweird.f32 %v7288_v23  ;;  %vm3906_vm11 = vweird.f32 %v7309_v61  ;;  %v4714_v49 = vld [vmem:[#allocation2 + $0x28] sm:$0xff] }
 0x2fe   :  { %v4049_v11 = vmul.f32 %v4048_v29, %v4046_v56  ;;  %v4056_v42 = vmul.f32 %v4055_v13, %v4046_v56  ;;  %v2800_v29 = vmul.f32 %v7288_v23, %v7230_v5  ;;  %v2253_v54 = vsub.f32 1.5, %v2252_v15 }
 0x2ff   :  { %v1709_v58 = vsel %vm1698_vm5, %v1708_v52, 0.0 }
 0x300   :  { %v4050_v32 = vadd.f32 -0.4999988, %v4049_v11  ;;  %v4057_v35 = vadd.f32 -0.16666654, %v4056_v42  ;;  %v2254_v34 = vmul.f32 %v7266_v44, %v2253_v54  ;;  %v2801_v40 = vmul.f32 %v7288_v23, %v2800_v29 }
 0x302   :  { %v4051_v63 = vmul.f32 %v4050_v32, %v4046_v56  ;;  %v4058_v51 = vmul.f32 %v4057_v35, %v4046_v56  ;;  %v609_v56 = vsel %vm598_vm13, %v608_v2, 0.0  ;;  %v2802_v19 = vmul.f32 0.5, %v2801_v40 }
 0x303   :  { %v1160_v13 = vadd.f32 %v1159_v21, %v609_v56 }
 0x304   :  { %v4052_v55 = vadd.f32 1.0, %v4051_v63  ;;  %v4059_v12 = vadd.f32 1.0, %v4058_v51  ;;  %v3350_v63 = vmul.f32 %v7299_v4, %v7241_v41 }
 0x305   :  { %v1710_v38 = vadd.f32 %v1709_v58, %v1160_v13 }
 0x306   :  { %v4060_v37 = vmul.f32 %v4059_v12, %v7239_v45  ;;  %v4068_v59 = vxor.u32 2147483648, %v4052_v55  ;;  %v3351_v56 = vmul.f32 %v7299_v4, %v3350_v63 }
 0x308   :  { %v4065_v0 = vxor.u32 2147483648, %v4060_v37  ;;  %v4069_v27 = vsel %vm4067_vm6, %v4068_v59, %v4060_v37  ;;  %v4226_v45 = vsel %vm4224_vm10, %v4068_v59, %v4060_v37  ;;  %vm2257_vm6 = vmor %vm2255_vm12, %vm2256_vm2  ;;  %vm2805_vm10 = vweird.f32 %v7230_v5 }
 0x309   :  { %v2258_v18 = vsel %vm2257_vm6, %v7266_v44, %v2254_v34  ;;  %v2803_v44 = vsub.f32 1.5, %v2802_v19  ;;  %v3352_v21 = vmul.f32 0.5, %v3351_v56  ;;  %vm3907_vm2 = vmor %vm3905_vm7, %vm3906_vm11 }
 0x30a   :  { %v4066_v11 = vsel %vm4064_vm9, %v4052_v55, %v4065_v0  ;;  %v4223_v42 = vsel %vm4221_vm8, %v4052_v55, %v4065_v0  ;;  %v2259_v35 = vsel %vm2248_vm1, %v2258_v18, 0.0  ;;  %vm2798_vm9 = vcmp.lt.f32.partialorder %v7230_v5, %v7285_v1 }
 0x30b   :  { %v4070_v43 = vsel %vm4063_vm14, %v4066_v11, %v4069_v27  ;;  %v4227_v22 = vsel %vm4220_vm15, %v4223_v42, %v4226_v45  ;;  %v2260_v9 = vadd.f32 %v2259_v35, %v1710_v38  ;;  %vm3348_vm8 = vcmp.lt.f32.partialorder %v7241_v41, %v7285_v1  ;;  %vm7367_vm15 = vmor %vm2805_vm10, %vm2806_vm3 }
 0x30c   :  { %v4071_v60 = vsel %vm4061_vm0, nan, %v4070_v43  ;;  %v4228_v32 = vsel %vm4061_vm0, nan, %v4227_v22  ;;  %vm3355_vm14 = vweird.f32 %v7241_v41  ;;  %vm3356_vm0 = vweird.f32 %v7299_v4 }
 0x30d   :  { %v4072_v28 = vmul.f32 %v4071_v60, %v7253_v39  ;;  %v4229_v46 = vmul.f32 %v4228_v32, %v7253_v39  ;;  %v3900_v55 = vmul.f32 %v7309_v61, %v7264_v53  ;;  %v2804_v12 = vmul.f32 %v7288_v23, %v2803_v44  ;;  %vm7393_vm12 = vmor %vm3355_vm14, %vm3356_vm0 }
 0x30e   :  { %v3353_v45 = vsub.f32 1.5, %v3352_v21 }
 0x30f   :  { %v4073_v51 = vadd.f32 %v4072_v28, %v6998_v10  ;;  %v4230_v2 = vadd.f32 %v4229_v46, %v7001_v3  ;;  %v4713_v10 = vld [vmem:[#allocation2 + $0x20] sm:$0xff]  ;;  %v3901_v15 = vmul.f32 %v7309_v61, %v3900_v55  ;;  %v2808_v59 = vsel %vm7367_vm15, %v7288_v23, %v2804_v12 }
 0x310   :  { %v2809_v54 = vsel %vm2798_vm9, %v2808_v59, 0.0  ;;  %v4805_v23 = vmov 0.0   ;;  %v3354_v40 = vmul.f32 %v7299_v4, %v3353_v45  ;;  %vm4232_vm15 = vcmp.le.f32.partialorder %v4231_v16, 0.7853982 }
 0x311   :  { %v4416_v3 = vsub.f32 %v4073_v51, %v4713_v10  ;;  %v4417_v24 = vsub.f32 %v4230_v2, %v4714_v49  ;;  %v4443_v37 = vsub.f32 %v4073_v51, %v7181_v7  ;;  %v4444_v29 = vsub.f32 %v4230_v2, %v7183_v26 }
 0x312   :  { %v3902_v0 = vmul.f32 0.5, %v3901_v15  ;;  %v2810_v27 = vadd.f32 %v2809_v54, %v2260_v9  ;;  %v4558_v11 = vsel %vm598_vm13, 1.0, %v4805_v23  ;;  %v4568_v42 = vsel %vm1148_vm4, 1.0, %v4805_v23 }
 0x313   :  { %v4418_v13 = vmul.f32 %v4416_v3, %v4416_v3  ;;  %v4419_v52 = vmul.f32 %v4417_v24, %v4417_v24  ;;  %v4445_v58 = vmul.f32 %v4443_v37, %v4443_v37  ;;  %v4446_v38 = vmul.f32 %v4444_v29, %v4444_v29 }
 0x314   :  { %v3903_v26 = vsub.f32 1.5, %v3902_v0  ;;  %v1163_v22 = vadd.f32 %v4568_v42, %v4558_v11  ;;  %v4578_v18 = vsel %vm1698_vm5, 1.0, %v4805_v23  ;;  %vm4334_vm13 = vcmp.lt.s32.totalorder %v7244_v48, 0 }
 0x315   :  { %v7387_v34 = vadd.f32 %v4419_v52, %v4418_v13  ;;  %v4447_v43 = vadd.f32 %v4446_v38, %v4445_v58  ;;  %v3358_v36 = vsel %vm7393_vm12, %v7299_v4, %v3354_v40  ;;  %vm3898_vm4 = vcmp.lt.f32.partialorder %v7264_v53, %v7285_v1 }
 0x316   :  { %v3904_v31 = vmul.f32 %v7309_v61, %v3903_v26  ;;  %v3359_v30 = vsel %vm3348_vm8, %v3358_v36, 0.0  ;;  %v1713_v60 = vadd.f32 %v4578_v18, %v1163_v22  ;;  %v4588_v32 = vsel %vm2248_vm1, 1.0, %v4805_v23 }
 0x317   :  { %4694 = vrsqrt.f32 %v7387_v34  ;;  %v3360_v35 = vadd.f32 %v3359_v30, %v2810_v27  ;;  %v4598_v4 = vsel %vm2798_vm9, 1.0, %v4805_v23  ;;  %v4336_v28 = vsel %vm4334_vm13, %v4335_v20, %v7244_v48 }
 0x318   :  { %4696 = vrsqrt.f32 %v4447_v43  ;;  %v3908_v19 = vsel %vm3907_vm2, %v7309_v61, %v3904_v31  ;;  %v2263_v9 = vadd.f32 %v4588_v32, %v1713_v60  ;;  %v4608_v25 = vsel %vm3348_vm8, 1.0, %v4805_v23  ;;  %v7456_v31 = vld [vmem:[#allocation5 + $0x78] sm:$0xff]  ;;  %v7603_v32 = vld [vmem:[#allocation12_spill] sm:$0xff] }
 0x319   :  { %v3909_v46 = vsel %vm3898_vm4, %v3908_v19, 0.0  ;;  %vm4448_vm5 = vcmp.lt.f32.partialorder %v4447_v43, %v7285_v1  ;;  %v4337_v5 = vclz %v4336_v28  ;;  %v4618_v20 = vsel %vm3898_vm4, 1.0, %v4805_v23  ;;  %v7604_v28 = vld [vmem:[#allocation13_spill] sm:$0xff] }
 0x31a   :  { %v3910_v44 = vadd.f32 %v3909_v46, %v3360_v35  ;;  %v2813_v61 = vadd.f32 %v4598_v4, %v2263_v9  ;;  %v4628_v56 = vsel %vm4448_vm5, 1.0, %v4805_v23  ;;  %vm4455_vm1 = vweird.f32 %v4447_v43 }
 0x31b   :  { %v4626_v3 = vadd.s32 4294967294, %v4337_v5  ;;  %vm4428_vm9 = vcmp.eq.f32.partialorder %v7387_v34, inf  ;;  %v4431_v21 = vand.u32 2147483648, %v7387_v34  ;;  %vm4430_vm8 = vcmp.eq.f32.partialorder %v7387_v34, 0.0 }
 0x31c   :  { %v3363_v55 = vadd.f32 %v4608_v25, %v2813_v61  ;;  %v4325_v0 = vadd.s32 %v7162_v17, %v7160_v57  ;;  %vm4233_vm14 = vcmp.lt.s32.totalorder %v7456_v31, 0 }
 0x31d   :  { %v4695_v63 = vpop.eup %4694  ;;  %vm4627_vm10 = vcmp.lt.s32.totalorder %v4626_v3, 0 }
 0x31e   :  { %v4697_v51 = vpop.eup %4696  ;;  %v4422_v2 = vmul.f32 %v4695_v63, %v7387_v34  ;;  %v3913_v10 = vadd.f32 %v4618_v20, %v3363_v55  ;;  %v4340_v52 = vsel %vm4627_vm10, 0, %v4626_v3  ;;  %v7605_v55 = vld [vmem:[#allocation15_spill] sm:$0xff]  ;;  %v7606_v3 = vld [vmem:[#allocation18_spill] sm:$0xff]  ;;  %vm4374_vm10 = vweird.f32 %v7456_v31 }
 0x31f   :  { %v4450_v8 = vmul.f32 %v4697_v51, %v4447_v43  ;;  %vm4456_vm6 = vweird.f32 %v4697_v51  ;;  %v4341_v27 = vsub.s32 32, %v4340_v52  ;;  %v4342_v23 = vshll.u32 %v7244_v48, %v4340_v52  ;;  %v7461_v48 = vld [vmem:[#allocation2 + $0x30] sm:$0xff] }
 0x320   :  { %v4423_v12 = vmul.f32 %v4695_v63, %v4422_v2  ;;  %v4463_v15 = vadd.f32 %v4628_v56, %v3913_v10  ;;  %vm4457_vm3 = vmor %vm4455_vm1, %vm4456_vm6  ;;  %v4345_v42 = vsub.s32 4294967266, %v4340_v52  ;;  %v4355_v43 = vsub.s32 4, %v7195_v14 }
 0x321   :  { %v4451_v41 = vmul.f32 %v4697_v51, %v4450_v8  ;;  %v4343_v11 = vshrl.u32 %v4325_v0, %v4341_v27  ;;  %v584_v35 = vsub.f32 %v7603_v32, %v7461_v48  ;;  %v1134_v46 = vsub.f32 %v7604_v28, %v7461_v48 }
 0x322   :  { %v4424_v49 = vmul.f32 0.5, %v4423_v12  ;;  %4504 = vadd.xlane.f32.xlu2 %v4463_v15  ;;  %v4346_v22 = vadd.s32 127, %v4345_v42  ;;  %v4356_v62 = vsel %vm4233_vm14, %v4355_v43, %v7195_v14  ;;  %v1684_v12 = vsub.f32 %v7605_v55, %v7461_v48 }
 0x323   :  { %v4452_v24 = vmul.f32 0.5, %v4451_v41  ;;  %v4344_v40 = vor.u32 %v4343_v11, %v4342_v23  ;;  %v4358_v25 = vsel %vm4232_vm15, 0, %v4356_v62  ;;  %v1135_v5 = vmul.f32 0.15915494, %v1134_v46 }
 0x324   :  { %v4425_v37 = vsub.f32 1.5, %v4424_v49  ;;  %v4347_v18 = vshll.u32 %v4346_v22, 23  ;;  %v4375_v20 = vand.u32 3, %v4358_v25  ;;  %v2234_v14 = vsub.f32 %v7606_v3, %v7461_v48 }
 0x325   :  { %v4453_v59 = vsub.f32 1.5, %v4452_v24  ;;  %v4351_v17 = vcvt.s32.f32 %v4344_v40  ;;  %v1136_v10 = vfloor.f32 %v1135_v5  ;;  %v4376_v23 = vadd.s32 3, %v4358_v25 }
 0x326   :  { %v4426_v53 = vmul.f32 %v4695_v63, %v4425_v37  ;;  %v4348_v57 = vor.u32 4788187, %v4347_v18  ;;  %vm4382_vm0 = vcmp.eq.s32.totalorder %v4375_v20, 2  ;;  %v1685_v37 = vmul.f32 0.15915494, %v1684_v12 }
 0x327   :  { %v4454_v29 = vmul.f32 %v4697_v51, %v4453_v59  ;;  %vm4379_vm7 = vcmp.eq.s32.totalorder %v4375_v20, 0  ;;  %vm4378_vm11 = vcmp.lt.s32.totalorder %v4375_v20, 2  ;;  %v3334_v42 = vsub.f32 %v6826_v33, %v7461_v48 }
 0x328   :  { %v4427_v13 = vmul.f32 %v4426_v53, %v7387_v34  ;;  %v4349_v36 = vand.u32 2147483647, %v4348_v57  ;;  %v1686_v0 = vfloor.f32 %v1685_v37  ;;  %v4377_v57 = vand.u32 3, %v4376_v23 }
 0x329   :  { %v4458_v54 = vsel %vm4457_vm3, %v4697_v51, %v4454_v29  ;;  %v2235_v29 = vmul.f32 0.15915494, %v2234_v14 }
 0x32a   :  { %v4429_v45 = vsel %vm4428_vm9, %v7387_v34, %v4427_v13  ;;  %v4459_v58 = vsel %vm4448_vm5, %v4458_v54, 0.0  ;;  %v4352_v34 = vmul.f32 %v4351_v17, %v4349_v36  ;;  %v2784_v13 = vsub.f32 %v6513_v6, %v7461_v48 }
 0x32b   :  { %v4432_v38 = vsel %vm4430_vm8, %v4431_v21, %v4429_v45  ;;  %v4460_v7 = vadd.f32 %v4459_v58, %v3910_v44  ;;  %v585_v44 = vmul.f32 0.15915494, %v584_v35  ;;  %v1137_v21 = vmul.f32 6.2831855, %v1136_v10 }
 0x32c   :  { %v4433_v26 = vadd.f32 %v4432_v38, %v7122_v47  ;;  %v4353_v47 = vxor.u32 2147483648, %v4352_v34  ;;  %v2236_v38 = vfloor.f32 %v2235_v29  ;;  %v1687_v11 = vmul.f32 6.2831855, %v1686_v0 }
 0x32d   :  { %4495 = vadd.xlane.f32.xlu1 %v4460_v7  ;;  %v586_v8 = vfloor.f32 %v585_v44  ;;  %v1138_v58 = vsub.f32 %v1134_v46, %v1137_v21  ;;  %vm4387_vm12 = vcmp.eq.s32.totalorder %v4377_v57, 0  ;;  %vm4390_vm2 = vcmp.eq.s32.totalorder %v4377_v57, 2 }
 0x32e   :  { %4468 = vadd.xlane.f32.xlu0 %v4433_v26  ;;  %v4354_v1 = vsel %vm4233_vm14, %v4353_v47, %v4352_v34  ;;  %v2785_v26 = vmul.f32 0.15915494, %v2784_v13  ;;  %v2237_v18 = vmul.f32 6.2831855, %v2236_v38  ;;  %v1688_v36 = vsub.f32 %v1684_v12, %v1687_v11 }
 0x32f   :  { %v4357_v30 = vsel %vm4232_vm15, %v7456_v31, %v4354_v1  ;;  %v587_v15 = vmul.f32 6.2831855, %v586_v8  ;;  %v1139_v22 = vsub.f32 6.2831855, %v1138_v58  ;;  %v3335_v34 = vmul.f32 0.15915494, %v3334_v42 }
 0x330   :  { %v4359_v60 = vmul.f32 %v4357_v30, %v4357_v30  ;;  %v2786_v6 = vfloor.f32 %v2785_v26  ;;  %v3884_v47 = vsub.f32 %v6981_v50, %v7461_v48  ;;  %vm4386_vm5 = vcmp.lt.s32.totalorder %v4377_v57, 2 }
 0x331   :  { %v588_v45 = vsub.f32 %v584_v35, %v587_v15  ;;  %v1140_v43 = vmin.f32 %v1138_v58, %v1139_v22  ;;  %v3336_v28 = vfloor.f32 %v3335_v34 }
 0x332   :  { %v4360_v19 = vmul.f32 -0.001358992, %v4359_v60  ;;  %v4367_v4 = vmul.f32 -0.00019511016, %v4359_v60  ;;  %v2787_v32 = vmul.f32 6.2831855, %v2786_v6 }
 0x333   :  { %v589_v40 = vsub.f32 6.2831855, %v588_v45  ;;  %v3885_v46 = vmul.f32 0.15915494, %v3884_v47  ;;  %v1141_v25 = vmul.f32 %v1140_v43, %v1140_v43  ;;  %v3337_v20 = vmul.f32 6.2831855, %v3336_v28 }
 0x334   :  { %v4361_v16 = vadd.f32 0.041655596, %v4360_v19  ;;  %v4368_v9 = vadd.f32 0.008332121, %v4367_v4  ;;  %v1689_v4 = vsub.f32 6.2831855, %v1688_v36  ;;  %v2788_v5 = vsub.f32 %v2784_v13, %v2787_v32  ;;  %v4487_v32 = vpop.xlane.xlu1 %4486 }
 0x335   :  { %v590_v1 = vmin.f32 %v588_v45, %v589_v40  ;;  %v3886_v8 = vfloor.f32 %v3885_v46 }
 0x336   :  { %v4362_v63 = vmul.f32 %v4361_v16, %v4359_v60  ;;  %v4369_v61 = vmul.f32 %v4368_v9, %v4359_v60  ;;  %v2789_v10 = vsub.f32 6.2831855, %v2788_v5 }
 0x337   :  { %v591_v44 = vmul.f32 %v590_v1, %v590_v1  ;;  %v3887_v15 = vmul.f32 6.2831855, %v3886_v8 }
 0x338   :  { %v4363_v51 = vadd.f32 -0.4999988, %v4362_v63  ;;  %v4370_v2 = vadd.f32 -0.16666654, %v4369_v61  ;;  %v2790_v21 = vmin.f32 %v2788_v5, %v2789_v10 }
 0x33a   :  { %v4364_v56 = vmul.f32 %v4363_v51, %v4359_v60  ;;  %v4371_v41 = vmul.f32 %v4370_v2, %v4359_v60  ;;  %v1690_v2 = vmin.f32 %v1688_v36, %v1689_v4  ;;  %v2791_v31 = vmul.f32 %v2790_v21, %v2790_v21 }
 0x33c   :  { %v4365_v49 = vadd.f32 1.0, %v4364_v56  ;;  %v4372_v24 = vadd.f32 1.0, %v4371_v41 }
 0x33e   :  { %v4373_v59 = vmul.f32 %v4372_v24, %v4357_v30  ;;  %v4383_v53 = vxor.u32 2147483648, %v4365_v49  ;;  %v2238_v30 = vsub.f32 %v2234_v14, %v2237_v18  ;;  %v1142_v14 = vadd.f32 %v1141_v25, %v591_v44 }
 0x33f   :  { %v3338_v24 = vsub.f32 %v3334_v42, %v3337_v20 }
 0x340   :  { %v4380_v52 = vxor.u32 2147483648, %v4373_v59  ;;  %v4384_v54 = vsel %vm4382_vm0, %v4383_v53, %v4373_v59  ;;  %v4392_v16 = vsel %vm4390_vm2, %v4383_v53, %v4373_v59  ;;  %v2239_v61 = vsub.f32 6.2831855, %v2238_v30 }
 0x341   :  { %v3339_v13 = vsub.f32 6.2831855, %v3338_v24 }
 0x342   :  { %v4381_v27 = vsel %vm4379_vm7, %v4365_v49, %v4380_v52  ;;  %v4389_v62 = vsel %vm4387_vm12, %v4365_v49, %v4380_v52  ;;  %v2240_v41 = vmin.f32 %v2238_v30, %v2239_v61  ;;  %v1691_v49 = vmul.f32 %v1690_v2, %v1690_v2 }
 0x343   :  { %v4385_v7 = vsel %vm4378_vm11, %v4381_v27, %v4384_v54  ;;  %v4393_v55 = vsel %vm4386_vm5, %v4389_v62, %v4392_v16  ;;  %v3888_v52 = vsub.f32 %v3884_v47, %v3887_v15  ;;  %v3340_v45 = vmin.f32 %v3338_v24, %v3339_v13 }
 0x344   :  { %4698 = vrcp.f32 %v4385_v7  ;;  %v4405_v35 = vand.u32 2147483648, %v4385_v7  ;;  %vm4399_vm13 = vweird.f32 %v4385_v7  ;;  %v4403_v19 = vand.u32 2147483647, %v4385_v7 }
 0x345   :  { %v2241_v53 = vmul.f32 %v2240_v41, %v2240_v41  ;;  %v1692_v29 = vadd.f32 %v1691_v49, %v1142_v14  ;;  %v3889_v58 = vsub.f32 6.2831855, %v3888_v52  ;;  %v3341_v23 = vmul.f32 %v3340_v45, %v3340_v45 }
 0x346   :  { %v4406_v63 = vor.u32 1.1754944e-38, %v4405_v35  ;;  %vm4404_vm6 = vcmp.eq.f32.partialorder %v4403_v19, 8.507059e+37  ;;  %v4488_v19 = vrot.slane %v4487_v32, 4  ;;  %v4513_v15 = vlaneseq }
 0x347   :  { %v2242_v27 = vadd.f32 %v2241_v53, %v1692_v29  ;;  %v3890_v11 = vmin.f32 %v3888_v52, %v3889_v58 }
 0x348   :  { %v4489_v46 = vadd.f32 %v4488_v19, %v4487_v32 }
 0x349   :  { %v2792_v26 = vadd.f32 %v2791_v31, %v2242_v27  ;;  %v3891_v22 = vmul.f32 %v3890_v11, %v3890_v11 }
 0x34a   :  { %v4699_v17 = vpop.eup %4698  ;;  %v4490_v44 = vrot.slane %v4489_v46, 2 }
 0x34b   :  { %v4395_v60 = vmul.f32 %v4699_v17, %v4385_v7  ;;  %vm4400_vm4 = vweird.f32 %v4699_v17  ;;  %v3342_v40 = vadd.f32 %v3341_v23, %v2792_v26 }
 0x34c   :  { %vm4401_vm1 = vmor %vm4399_vm13, %vm4400_vm4 }
 0x34d   :  { %v4396_v33 = vsub.f32 1.0, %v4395_v60  ;;  %v3892_v57 = vadd.f32 %v3891_v22, %v3342_v40 }
 0x34f   :  { %v4397_v9 = vmul.f32 %v4699_v17, %v4396_v33 }
 0x351   :  { %v4398_v51 = vadd.f32 %v4699_v17, %v4397_v9 }
 0x353   :  { %v4402_v12 = vsel %vm4401_vm1, %v4699_v17, %v4398_v51  ;;  %v4491_v51 = vadd.f32 %v4490_v44, %v4489_v46 }
 0x354   :  { %v4407_v56 = vsel %vm4404_vm6, %v4406_v63, %v4402_v12 }
 0x355   :  { %v4408_v3 = vmul.f32 %v4407_v56, %v4393_v55  ;;  %v4492_v12 = vrot.slane %v4491_v51, 1 }
 0x357   :  { %v4409_v37 = vsel %vm4374_vm10, nan, %v4408_v3  ;;  %v4493_v14 = vadd.f32 %v4492_v12, %v4491_v51 }
 0x358   :  { %v4410_v59 = vmul.f32 %v4409_v37, %v7253_v39  ;;  %v4514_v37 = vshrl.u32 %v4513_v15, 7 }
 0x35a   :  { %v4411_v54 = vmul.f32 0.5, %v4410_v59  ;;  %vm4515_vm3 = vcmp.eq.s32.totalorder %v4514_v37, 0  ;;  %vm4518_vm9 = vcmp.eq.s32.totalorder %v4514_v37, 1  ;;  %vm4521_vm8 = vcmp.eq.s32.totalorder %v4514_v37, 4 }
 0x35b   :  { %vm4524_vm14 = vcmp.eq.s32.totalorder %v4514_v37, 2  ;;  %vm4527_vm15 = vcmp.eq.s32.totalorder %v4514_v37, 3 }
 0x35c   :  { %v4412_v0 = vadd.f32 %v4411_v54, %v6981_v50 }
 0x35e   :  { %v4434_v38 = vsub.f32 %v4412_v0, %v7461_v48 }
 0x360   :  { %v4435_v7 = vmul.f32 0.15915494, %v4434_v38 }
 0x362   :  { %v4436_v42 = vfloor.f32 %v4435_v7 }
 0x364   :  { %v4437_v39 = vmul.f32 6.2831855, %v4436_v42 }
 0x366   :  { %v4438_v18 = vsub.f32 %v4434_v38, %v4437_v39 }
 0x368   :  { %v4439_v6 = vsub.f32 6.2831855, %v4438_v18 }
 0x36a   :  { %v4440_v17 = vmin.f32 %v4438_v18, %v4439_v6 }
 0x36c   :  { %v4441_v36 = vmul.f32 %v4440_v17, %v4440_v17 }
 0x36e   :  { %v4442_v50 = vadd.f32 %v4441_v36, %v3892_v57 }
 0x370   :  { %4477 = vadd.xlane.f32.xlu0 %v4442_v50 }
 0x395   :  { %v4505_v33 = vpop.xlane.xlu2 %4504 }
 0x396   :  { %v4506_v28 = vrot.slane %v4505_v33, 4 }
 0x398   :  { %v4507_v16 = vadd.f32 %v4506_v28, %v4505_v33 }
 0x39a   :  { %v4508_v61 = vrot.slane %v4507_v16, 2 }
 0x39c   :  { %v4509_v8 = vadd.f32 %v4508_v61, %v4507_v16 }
 0x39e   :  { %v4510_v10 = vrot.slane %v4509_v8, 1 }
 0x3a0   :  { %v4496_v35 = vpop.xlane.xlu1 %4495  ;;  %v4511_v24 = vadd.f32 %v4510_v10, %v4509_v8 }
 0x3a1   :  { %v4469_v34 = vpop.xlane.xlu0 %4468  ;;  %v4497_v4 = vrot.slane %v4496_v35, 4 }
 0x3a2   :  { %v4470_v47 = vrot.slane %v4469_v34, 4 }
 0x3a3   :  { %v4498_v62 = vadd.f32 %v4497_v4, %v4496_v35 }
 0x3a4   :  { %v4471_v1 = vadd.f32 %v4470_v47, %v4469_v34 }
 0x3a5   :  { %v4499_v63 = vrot.slane %v4498_v62, 2 }
 0x3a6   :  { %v4472_v43 = vrot.slane %v4471_v1, 2 }
 0x3a7   :  { %v4500_v20 = vadd.f32 %v4499_v63, %v4498_v62 }
 0x3a8   :  { %v4473_v48 = vadd.f32 %v4472_v43, %v4471_v1 }
 0x3a9   :  { %v4501_v41 = vrot.slane %v4500_v20, 1 }
 0x3aa   :  { %v4474_v30 = vrot.slane %v4473_v48, 1 }
 0x3ab   :  { %v4502_v49 = vadd.f32 %v4501_v41, %v4500_v20 }
 0x3ac   :  { %v4475_v60 = vadd.f32 %v4474_v30, %v4473_v48 }
 0x3ae   :  { %4629 = vpush %v4475_v60 }
 0x3df   :  { %s4630_s0 = spop %4629 }
 0x3e0   :  { %v4516_v59 = vstv %s4630_s0 }
 0x3e1   :  { %v4517_v53 = vsel %vm4515_vm3, %v4516_v59, 0.0 }
 0x3e3   :  { %v4478_v9 = vpop.xlane.xlu0 %4477 }
 0x3e4   :  { %v4479_v25 = vrot.slane %v4478_v9, 4 }
 0x3e6   :  { %v4480_v5 = vadd.f32 %v4479_v25, %v4478_v9 }
 0x3e8   :  { %v4481_v2 = vrot.slane %v4480_v5, 2 }
 0x3ea   :  { %v4482_v55 = vadd.f32 %v4481_v2, %v4480_v5 }
 0x3ec   :  { %v4483_v56 = vrot.slane %v4482_v55, 1 }
 0x3ee   :  { %v4484_v3 = vadd.f32 %v4483_v56, %v4482_v55 }
 0x3f0   :  { %4631 = vpush %v4484_v3 }
 0x3f1   :  { %4633 = vpush %v4493_v14 }
 0x3f2   :  { %4635 = vpush %v4502_v49 }
 0x3f3   :  { %4637 = vpush %v4511_v24 }
 0x421   :  { %s4632_s1 = spop %4631 }
 0x422   :  { %s4634_s24 = spop %4633  ;;  %v4519_v21 = vstv %s4632_s1 }
 0x423   :  { %s4636_s27 = spop %4635  ;;  %v4520_v29 = vsel %vm4518_vm9, %v4519_v21, %v4517_v53  ;;  %v4522_v13 = vstv %s4634_s24 }
 0x424   :  { %s4638_s28 = spop %4637  ;;  %v4523_v52 = vsel %vm4521_vm8, %v4522_v13, %v4520_v29  ;;  %v4525_v54 = vstv %s4636_s27 }
 0x425   :  { %v4526_v0 = vsel %vm4524_vm14, %v4525_v54, %v4523_v52  ;;  %v4528_v31 = vstv %s4638_s28 }
 0x426   :  { %v4529_v27 = vsel %vm4527_vm15, %v4528_v31, %v4526_v0 }
 0x427   :  { %4530 = vst [vmem:[#allocation7] sm:$0xff] %v4529_v27 }
 0x428   :  { %4541 = dma.vmem_to_hbm [thread:$0]  %s4537_s26, 128, %s4539_s23, [#allocation4]  }
 0x429   :  { %4792 = dma.done.wait [#allocation4], 128  }
 0x42a   :  { %4793 = vsyncadd [#allocation4], 4294967168 }
 0x42b   :  { %4546 = vsyncpa [#allocation3], 1 }
 0x42c   :  { %4547 = vsyncpa [#allocation6], 1 }
 0x42d   :  { %4548 = vsyncpa [#allocation4], 1 }

</bundles_post_ra>
